<compile_context>
chip_gen: v5e
topology: v5e:2x2
jax: 0.10.0
libtpu: 0.0.40
codegen_flags: <defaults>
</compile_context>

<pallas_src>
import math
from functools import partial

import jax
import jax.numpy as jnp
from jax.experimental import pallas as pl
from jax.experimental.pallas import tpu as pltpu


# ----------------------------------------------------------------------------
# Fused Pallas kernel: all transformer layers + policy/value heads, one call
# ----------------------------------------------------------------------------
def fused_encoder_kernel(
    x_in_ref, mask_ref,
    wqkv_ref, bqkv_ref,          # (L, D, QKVp) bf16, (L, 1, QKVp) f32
    wo_ref, bo_ref,              # (L, D, D)   bf16, (L, 1, D)    f32
    g1_ref, be1_ref,             # (L, 1, D) f32
    w1_ref, b1_ref,              # (L, D, FF)  bf16, (L, 1, FF)   f32
    w2_ref, b2_ref,              # (L, FF, D)  bf16, (L, 1, D)    f32
    g2_ref, be2_ref,             # (L, 1, D) f32
    wpv_ref, bpv_ref,            # (D, A_pad) bf16, (1, A_pad) f32
    heads_ref,                   # out: (1, A_pad) f32
    ctx_ref,                     # scratch: (S_pad, D) f32
    *, num_layers: int, num_heads: int, head_dim: int, d_model: int,
    ff_dim: int, ff_chunk: int, s_actual: int, eps: float = 1e-5):
  """All nn.TransformerEncoderLayer's + fused policy/value head, no grid.

  Activation x is carried through a static layer loop; all weights are VMEM
  resident (bf16 for MXU operands, f32 accumulation / LayerNorm / softmax).
  """
  x = x_in_ref[...]                      # (S_pad, D) f32
  key_bias = mask_ref[...]               # (S_pad, S_pad) f32, hoisted (const)
  scale = 1.0 / math.sqrt(head_dim)

  for l in range(num_layers):            # static unroll (small L)
    x_b = x.astype(jnp.bfloat16)

    # ---- packed QKV projection: one lane-dense matmul -----------------------
    qkv = jnp.dot(x_b, wqkv_ref[l],
                  preferred_element_type=jnp.float32) + bqkv_ref[l]   # (S_pad, QKVp)

    # ---- per-head attention; contexts written into lane offsets of ctx_ref --
    for h in range(num_heads):           # static unroll (tiny H)
      q_h = qkv[:, h * head_dim:(h + 1) * head_dim]
      k_h = qkv[:, d_model + h * head_dim: d_model + (h + 1) * head_dim]
      v_h = qkv[:, 2 * d_model + h * head_dim: 2 * d_model + (h + 1) * head_dim]
      s = jnp.dot(q_h, k_h.T, preferred_element_type=jnp.float32) * scale + key_bias
      s = s - jnp.max(s, axis=-1, keepdims=True)
      p = jnp.exp(s)
      p = p * pl.reciprocal(jnp.sum(p, axis=-1, keepdims=True), approx=False)
      ctx_ref[:, h * head_dim:(h + 1) * head_dim] = jnp.dot(
          p, v_h, preferred_element_type=jnp.float32)

    # ---- dense output projection (un-folded) --------------------------------
    attn = jnp.dot(ctx_ref[...].astype(jnp.bfloat16), wo_ref[l],
                   preferred_element_type=jnp.float32) + bo_ref[l]

    # residual + LayerNorm 1 (post-norm, PyTorch default), f32 math
    y = x + attn
    mu = jnp.mean(y, axis=-1, keepdims=True)
    var = jnp.mean((y - mu) ** 2, axis=-1, keepdims=True)
    y = (y - mu) * jax.lax.rsqrt(var + eps) * g1_ref[l] + be1_ref[l]

    # ---- feed-forward, chunked over the 2048-wide hidden dim ----------------
    y_b = y.astype(jnp.bfloat16)
    ff = jnp.zeros((y.shape[0], d_model), jnp.float32)
    for c in range(ff_dim // ff_chunk):  # static unroll
      c0 = c * ff_chunk
      h1 = jnp.dot(y_b, w1_ref[l, :, c0:c0 + ff_chunk],
                   preferred_element_type=jnp.float32) + b1_ref[l, :, c0:c0 + ff_chunk]
      h1 = jnp.maximum(h1, 0.0)
      ff = ff + jnp.dot(h1.astype(jnp.bfloat16), w2_ref[l, c0:c0 + ff_chunk, :],
                        preferred_element_type=jnp.float32)
    ff = ff + b2_ref[l]

    # residual + LayerNorm 2
    z = y + ff
    mu2 = jnp.mean(z, axis=-1, keepdims=True)
    var2 = jnp.mean((z - mu2) ** 2, axis=-1, keepdims=True)
    x = (z - mu2) * jax.lax.rsqrt(var2 + eps) * g2_ref[l] + be2_ref[l]

  # Fused policy + value heads on the last *real* token: lane-dense (1, A_pad).
  last = x[s_actual - 1:s_actual, :].astype(jnp.bfloat16)            # (1, D)
  heads_ref[...] = (jnp.dot(last, wpv_ref[...],
                            preferred_element_type=jnp.float32) + bpv_ref[...])


# ----------------------------------------------------------------------------
# pallas_call wrapper
# ----------------------------------------------------------------------------
def fused_transformer_and_heads(x0, key_bias, params, *, num_heads, head_dim,
                                s_actual):
  num_layers = params['wqkv_s'].shape[0]
  s_pad, d_model = x0.shape
  ff_dim = params['w1_s'].shape[-1]
  a_pad = params['wpv'].shape[-1]
  qkv_pad = params['wqkv_s'].shape[-1]
  ff_chunk = 256 if ff_dim % 256 == 0 else ff_dim

  args = (x0, key_bias,
          params['wqkv_s'], params['bqkv_s'],
          params['wo_s'], params['bo_s'],
          params['g1_s'], params['be1_s'],
          params['w1_s'], params['b1_s'], params['w2_s'], params['b2_s'],
          params['g2_s'], params['be2_s'],
          params['wpv'], params['bpv'])

  # Advisory cost estimate so XLA doesn't serialize around the custom call.
  flops = (num_layers * (2 * s_pad * d_model * qkv_pad            # packed QKV
                         + num_heads * 4 * s_pad * s_pad * head_dim  # scores + ctx
                         + 2 * s_pad * d_model * d_model          # Wo
                         + 4 * s_pad * d_model * ff_dim)          # FFN
           + 2 * d_model * a_pad)                                 # heads
  transcendentals = num_layers * num_heads * s_pad * s_pad        # exp in softmax
  bytes_accessed = sum(int(a.size) * a.dtype.itemsize for a in args) + 4 * a_pad

  kernel = partial(fused_encoder_kernel,
                   num_layers=num_layers, num_heads=num_heads,
                   head_dim=head_dim, d_model=d_model,
                   ff_dim=ff_dim, ff_chunk=ff_chunk, s_actual=s_actual)

  heads = pl.pallas_call(
      kernel,
      out_shape=jax.ShapeDtypeStruct((1, a_pad), jnp.float32),
      in_specs=[pl.BlockSpec(memory_space=pltpu.MemorySpace.VMEM)] * len(args),
      out_specs=pl.BlockSpec(memory_space=pltpu.MemorySpace.VMEM),
      scratch_shapes=[pltpu.VMEM((s_pad, d_model), jnp.float32)],
      compiler_params=pltpu.CompilerParams(
          vmem_limit_bytes=32 * 1024 * 1024),   # <1 MiB actually used; fits v7x
      cost_estimate=pl.CostEstimate(flops=int(flops),
                                    transcendentals=int(transcendentals),
                                    bytes_accessed=int(bytes_accessed)),
  )(*args)
  return heads


# ----------------------------------------------------------------------------
# Forward pass (tiny glue in XLA: embeddings / gathers / concat / pos-enc add)
# ----------------------------------------------------------------------------
def actor_critic_forward(params, state, action_seq, panel_idx, *,
                         num_heads, action_vocab):
  # empty action_seq -> [0]   (trace-time check; matches the torch branch)
  if action_seq.size == 0:
    action_seq = jnp.array([0], dtype=jnp.int32)

  d_model = params['state_embed_w'].shape[0]
  head_dim = d_model // num_heads

  s_emb = state @ params['state_embed_w'].T + params['state_embed_b']    # (D,)
  a_emb = params['action_embed'][action_seq]                             # (L, D)
  p_emb = params['panel_embed'][panel_idx]                               # (D,)

  seq = jnp.concatenate([s_emb[None, :], a_emb + p_emb[None, :]], axis=0)  # (S, D)
  S = seq.shape[0]
  seq = seq + params['pe'][:S]            # positional encoding; dropout = identity

  # pad sequence rows to a sublane multiple; padded keys masked via key_bias
  s_pad = max(8, ((S + 7) // 8) * 8)
  x0 = jnp.zeros((s_pad, d_model), jnp.float32).at[:S].set(seq)

  # key-padding bias hoisted out of the kernel's layer loop (const input)
  col = jnp.arange(s_pad)
  key_bias = jnp.broadcast_to(
      jnp.where(col[None, :] < S, 0.0, -1e30).astype(jnp.float32),
      (s_pad, s_pad))

  heads = fused_transformer_and_heads(x0, key_bias, params,
                                      num_heads=num_heads, head_dim=head_dim,
                                      s_actual=S)

  logits = heads[0, :action_vocab]                         # matches .squeeze(0)
  value = heads[0, action_vocab:action_vocab + 1]          # (1,)
  return logits, value


# ----------------------------------------------------------------------------
# Deterministic parameter initialization (synthetic; PyTorch-shaped, then packed)
# ----------------------------------------------------------------------------
def init_params(key, state_dim, action_vocab, panel_vocab, d_model, num_heads,
                num_layers, dim_feedforward=2048, max_len=5000):
  ks = jax.random.split(key, 9)

  def rn(k, shape, scale=0.02):
    return (scale * jax.random.normal(k, shape)).astype(jnp.float32)

  params = {
      'state_embed_w': rn(ks[0], (d_model, state_dim)),
      'state_embed_b': rn(ks[1], (d_model,)),
      'action_embed': rn(ks[2], (action_vocab, d_model)),
      'panel_embed': rn(ks[3], (panel_vocab, d_model)),
  }

  # PositionalEncoding buffer (assumes even d_model, like the torch code here)
  pos = jnp.arange(max_len, dtype=jnp.float32)[:, None]
  div = jnp.exp(jnp.arange(0, d_model, 2, dtype=jnp.float32)
                * (-math.log(10000.0) / d_model))
  pe = jnp.zeros((max_len, d_model), jnp.float32)
  pe = pe.at[:, 0::2].set(jnp.sin(pos * div))
  pe = pe.at[:, 1::2].set(jnp.cos(pos * div))
  params['pe'] = pe

  # One encoder layer's weights (pre-transposed for x @ W), replicated L times:
  # nn.TransformerEncoder deep-copies one initialized layer, so all layers match.
  lk = jax.random.split(ks[8], 12)
  wq = rn(lk[0], (d_model, d_model))
  wk = rn(lk[1], (d_model, d_model))
  wv = rn(lk[2], (d_model, d_model))
  bq = rn(lk[3], (d_model,))
  bk = rn(lk[4], (d_model,))
  bv = rn(lk[5], (d_model,))
  wo = rn(lk[6], (d_model, d_model))
  bo = rn(lk[7], (d_model,))
  w1 = rn(lk[8], (d_model, dim_feedforward))
  b1 = rn(lk[9], (dim_feedforward,))
  w2 = rn(lk[10], (dim_feedforward, d_model))
  b2 = rn(lk[11], (d_model,))
  g1 = jnp.ones((d_model,), jnp.float32); be1 = jnp.zeros((d_model,), jnp.float32)
  g2 = jnp.ones((d_model,), jnp.float32); be2 = jnp.zeros((d_model,), jnp.float32)

  # Packed lane-dense QKV weight: columns [0:D)=Wq, [D:2D)=Wk, [2D:3D)=Wv, rest 0.
  qkv_pad = ((3 * d_model + 127) // 128) * 128
  wqkv = jnp.zeros((d_model, qkv_pad), jnp.float32)
  wqkv = wqkv.at[:, 0:d_model].set(wq)
  wqkv = wqkv.at[:, d_model:2 * d_model].set(wk)
  wqkv = wqkv.at[:, 2 * d_model:3 * d_model].set(wv)
  bqkv = jnp.zeros((1, qkv_pad), jnp.float32)
  bqkv = bqkv.at[0, 0:d_model].set(bq)
  bqkv = bqkv.at[0, d_model:2 * d_model].set(bk)
  bqkv = bqkv.at[0, 2 * d_model:3 * d_model].set(bv)

  def stack(a, dtype=jnp.float32):
    return jnp.broadcast_to(a[None], (num_layers,) + a.shape).astype(dtype)

  params.update({
      'wqkv_s': stack(wqkv, jnp.bfloat16),
      'bqkv_s': stack(bqkv),
      'wo_s': stack(wo, jnp.bfloat16),            # dense Wo: ctx(head-major cols) @ wo
      'bo_s': stack(bo[None, :]),
      'g1_s': stack(g1[None, :]),
      'be1_s': stack(be1[None, :]),
      'w1_s': stack(w1, jnp.bfloat16),
      'b1_s': stack(b1[None, :]),
      'w2_s': stack(w2, jnp.bfloat16),
      'b2_s': stack(b2[None, :]),
      'g2_s': stack(g2[None, :]),
      'be2_s': stack(be2[None, :]),
  })

  # Policy + value heads packed into one lane-dense (D, A_pad) weight (bf16):
  # columns [0:A) = policy, column A = value, rest zero-padded.
  policy_w = rn(ks[4], (action_vocab, d_model))   # torch layout (A, D)
  policy_b = rn(ks[5], (action_vocab,))
  value_w = rn(ks[6], (1, d_model))
  value_b = rn(ks[7], (1,))
  a_pad = ((action_vocab + 1 + 127) // 128) * 128
  wpv = jnp.zeros((d_model, a_pad), jnp.float32)
  wpv = wpv.at[:, :action_vocab].set(policy_w.T)
  wpv = wpv.at[:, action_vocab].set(value_w[0])
  bpv = jnp.zeros((1, a_pad), jnp.float32)
  bpv = bpv.at[0, :action_vocab].set(policy_b)
  bpv = bpv.at[0, action_vocab].set(value_b[0])
  params['wpv'] = wpv.astype(jnp.bfloat16)
  params['bpv'] = bpv
  return params


# ----------------------------------------------------------------------------
if __name__ == "__main__":
  # Small shapes consistent with the module's forward:
  state_dim = 32
  action_vocab_size = 16
  panel_vocab_size = 8
  d_model = 32
  num_heads = 4
  num_layers = 2
  seq_len_actions = 8            # -> transformer sequence length S = 9 (padded to 16)

  root = jax.random.PRNGKey(0)
  kp, kstate, kact, kpan = jax.random.split(root, 4)

  params = init_params(kp, state_dim, action_vocab_size, panel_vocab_size,
                       d_model, num_heads, num_layers)

  state = jax.random.normal(kstate, (state_dim,), jnp.float32)
  action_seq = jax.random.randint(kact, (seq_len_actions,), 0, action_vocab_size,
                                  dtype=jnp.int32)
  panel_idx = jax.random.randint(kpan, (), 0, panel_vocab_size, dtype=jnp.int32)

  fwd = jax.jit(actor_critic_forward,
                static_argnames=('num_heads', 'action_vocab'))
  logits, value = fwd(params, state, action_seq, panel_idx,
                      num_heads=num_heads, action_vocab=action_vocab_size)
  logits, value = jax.block_until_ready((logits, value))

  assert logits.shape == (action_vocab_size,), logits.shape
  assert value.shape == (1,), value.shape
  assert logits.dtype == jnp.float32 and value.dtype == jnp.float32
  assert bool(jnp.all(jnp.isfinite(logits))) and bool(jnp.all(jnp.isfinite(value)))
  print("KERNEL_OK")
</pallas_src>

<mosaic_0001>
module attributes {stable_mosaic.version = 11 : i64} {
  func.func @fused_encoder_kernel(%arg0: memref<16x32xf32, #tpu.memory_space<vmem>>, %arg1: memref<16x16xf32, #tpu.memory_space<vmem>>, %arg2: memref<2x32x128xbf16, #tpu.memory_space<vmem>>, %arg3: memref<2x1x128xf32, #tpu.memory_space<vmem>>, %arg4: memref<2x32x32xbf16, #tpu.memory_space<vmem>>, %arg5: memref<2x1x32xf32, #tpu.memory_space<vmem>>, %arg6: memref<2x1x32xf32, #tpu.memory_space<vmem>>, %arg7: memref<2x1x32xf32, #tpu.memory_space<vmem>>, %arg8: memref<2x32x2048xbf16, #tpu.memory_space<vmem>>, %arg9: memref<2x1x2048xf32, #tpu.memory_space<vmem>>, %arg10: memref<2x2048x32xbf16, #tpu.memory_space<vmem>>, %arg11: memref<2x1x32xf32, #tpu.memory_space<vmem>>, %arg12: memref<2x1x32xf32, #tpu.memory_space<vmem>>, %arg13: memref<2x1x32xf32, #tpu.memory_space<vmem>>, %arg14: memref<32x128xbf16, #tpu.memory_space<vmem>>, %arg15: memref<1x128xf32, #tpu.memory_space<vmem>>, %arg16: memref<1x128xf32, #tpu.memory_space<vmem>>, %arg17: memref<16x32xf32, #tpu.memory_space<vmem>>) attributes {dimension_semantics = [], scalar_prefetch = 0 : i64, scratch_operands = 1 : i64, tpu.core_type = #tpu.core_type<tc>} {
    %c0 = arith.constant 0 : index
    %c0_0 = arith.constant 0 : index
    %0 = vector.load %arg0[%c0, %c0_0] : memref<16x32xf32, #tpu.memory_space<vmem>>, vector<16x32xf32>
    %c0_1 = arith.constant 0 : index
    %c0_2 = arith.constant 0 : index
    %1 = vector.load %arg1[%c0_1, %c0_2] : memref<16x16xf32, #tpu.memory_space<vmem>>, vector<16x16xf32>
    %2 = arith.truncf %0 : vector<16x32xf32> to vector<16x32xbf16>
    %c0_3 = arith.constant 0 : index
    %c0_4 = arith.constant 0 : index
    %c0_5 = arith.constant 0 : index
    %3 = vector.load %arg2[%c0_3, %c0_4, %c0_5] : memref<2x32x128xbf16, #tpu.memory_space<vmem>>, vector<1x32x128xbf16>
    %4 = vector.shape_cast %3 : vector<1x32x128xbf16> to vector<32x128xbf16>
    %cst = arith.constant dense<0.000000e+00> : vector<16x128xf32>
    %5 = tpu.matmul %2, %4, %cst {dimension_numbers = #tpu.dot_dimension_numbers<[1], [0], [0], [1], [0, 0, 1, 1], [], []>} : vector<16x32xbf16>, vector<32x128xbf16>, vector<16x128xf32> -> vector<16x128xf32>
    %c0_6 = arith.constant 0 : index
    %c0_7 = arith.constant 0 : index
    %c0_8 = arith.constant 0 : index
    %6 = vector.load %arg3[%c0_6, %c0_7, %c0_8] : memref<2x1x128xf32, #tpu.memory_space<vmem>>, vector<1x1x128xf32>
    %7 = vector.shape_cast %6 : vector<1x1x128xf32> to vector<1x128xf32>
    %8 = vector.broadcast %7 : vector<1x128xf32> to vector<16x128xf32>
    %9 = arith.addf %5, %8 : vector<16x128xf32>
    %10 = vector.extract_strided_slice %9 {offsets = [0, 0], sizes = [16, 8], strides = [1, 1]} : vector<16x128xf32> to vector<16x8xf32>
    %11 = vector.extract_strided_slice %9 {offsets = [0, 32], sizes = [16, 8], strides = [1, 1]} : vector<16x128xf32> to vector<16x8xf32>
    %12 = vector.extract_strided_slice %9 {offsets = [0, 64], sizes = [16, 8], strides = [1, 1]} : vector<16x128xf32> to vector<16x8xf32>
    %13 = tpu.transpose %11, [1, 0] : vector<16x8xf32> -> vector<8x16xf32>
    %cst_9 = arith.constant dense<0.000000e+00> : vector<16x16xf32>
    %14 = tpu.matmul %10, %13, %cst_9 {dimension_numbers = #tpu.dot_dimension_numbers<[1], [0], [0], [1], [0, 0, 1, 1], [], []>} : vector<16x8xf32>, vector<8x16xf32>, vector<16x16xf32> -> vector<16x16xf32>
    %cst_10 = arith.constant 0.353553385 : f32
    %15 = vector.broadcast %cst_10 : f32 to vector<16x16xf32>
    %16 = arith.mulf %14, %15 : vector<16x16xf32>
    %17 = arith.addf %16, %1 : vector<16x16xf32>
    %cst_11 = arith.constant dense<0xFF800000> : vector<16xf32>
    %18 = vector.multi_reduction <maximumf>, %17, %cst_11 [1] : vector<16x16xf32> to vector<16xf32>
    %19 = vector.shape_cast %18 : vector<16xf32> to vector<16x1xf32>
    %20 = vector.broadcast %19 : vector<16x1xf32> to vector<16x16xf32>
    %21 = arith.subf %17, %20 : vector<16x16xf32>
    %22 = math.exp %21 : vector<16x16xf32>
    %cst_12 = arith.constant dense<0.000000e+00> : vector<16xf32>
    %23 = vector.multi_reduction <add>, %22, %cst_12 [1] : vector<16x16xf32> to vector<16xf32>
    %24 = vector.shape_cast %23 : vector<16xf32> to vector<16x1xf32>
    %25 = tpu.reciprocal %24 : vector<16x1xf32> -> vector<16x1xf32>
    %26 = vector.broadcast %25 : vector<16x1xf32> to vector<16x16xf32>
    %27 = arith.mulf %22, %26 : vector<16x16xf32>
    %cst_13 = arith.constant dense<0.000000e+00> : vector<16x8xf32>
    %28 = tpu.matmul %27, %12, %cst_13 {dimension_numbers = #tpu.dot_dimension_numbers<[1], [0], [0], [1], [0, 0, 1, 1], [], []>} : vector<16x16xf32>, vector<16x8xf32>, vector<16x8xf32> -> vector<16x8xf32>
    %c0_14 = arith.constant 0 : index
    %c0_15 = arith.constant 0 : index
    %29 = vector.load %arg17[%c0_14, %c0_15] : memref<16x32xf32, #tpu.memory_space<vmem>>, vector<16x8xf32>
    tpu.vector_store %arg17[%c0_14, %c0_15], %28 {strides = array<i32>} : memref<16x32xf32, #tpu.memory_space<vmem>>, vector<16x8xf32>,
    %30 = vector.extract_strided_slice %9 {offsets = [0, 8], sizes = [16, 8], strides = [1, 1]} : vector<16x128xf32> to vector<16x8xf32>
    %31 = vector.extract_strided_slice %9 {offsets = [0, 40], sizes = [16, 8], strides = [1, 1]} : vector<16x128xf32> to vector<16x8xf32>
    %32 = vector.extract_strided_slice %9 {offsets = [0, 72], sizes = [16, 8], strides = [1, 1]} : vector<16x128xf32> to vector<16x8xf32>
    %33 = tpu.transpose %31, [1, 0] : vector<16x8xf32> -> vector<8x16xf32>
    %cst_16 = arith.constant dense<0.000000e+00> : vector<16x16xf32>
    %34 = tpu.matmul %30, %33, %cst_16 {dimension_numbers = #tpu.dot_dimension_numbers<[1], [0], [0], [1], [0, 0, 1, 1], [], []>} : vector<16x8xf32>, vector<8x16xf32>, vector<16x16xf32> -> vector<16x16xf32>
    %cst_17 = arith.constant 0.353553385 : f32
    %35 = vector.broadcast %cst_17 : f32 to vector<16x16xf32>
    %36 = arith.mulf %34, %35 : vector<16x16xf32>
    %37 = arith.addf %36, %1 : vector<16x16xf32>
    %cst_18 = arith.constant dense<0xFF800000> : vector<16xf32>
    %38 = vector.multi_reduction <maximumf>, %37, %cst_18 [1] : vector<16x16xf32> to vector<16xf32>
    %39 = vector.shape_cast %38 : vector<16xf32> to vector<16x1xf32>
    %40 = vector.broadcast %39 : vector<16x1xf32> to vector<16x16xf32>
    %41 = arith.subf %37, %40 : vector<16x16xf32>
    %42 = math.exp %41 : vector<16x16xf32>
    %cst_19 = arith.constant dense<0.000000e+00> : vector<16xf32>
    %43 = vector.multi_reduction <add>, %42, %cst_19 [1] : vector<16x16xf32> to vector<16xf32>
    %44 = vector.shape_cast %43 : vector<16xf32> to vector<16x1xf32>
    %45 = tpu.reciprocal %44 : vector<16x1xf32> -> vector<16x1xf32>
    %46 = vector.broadcast %45 : vector<16x1xf32> to vector<16x16xf32>
    %47 = arith.mulf %42, %46 : vector<16x16xf32>
    %cst_20 = arith.constant dense<0.000000e+00> : vector<16x8xf32>
    %48 = tpu.matmul %47, %32, %cst_20 {dimension_numbers = #tpu.dot_dimension_numbers<[1], [0], [0], [1], [0, 0, 1, 1], [], []>} : vector<16x16xf32>, vector<16x8xf32>, vector<16x8xf32> -> vector<16x8xf32>
    %c0_21 = arith.constant 0 : index
    %c8 = arith.constant 8 : index
    %49 = vector.load %arg17[%c0_21, %c8] : memref<16x32xf32, #tpu.memory_space<vmem>>, vector<16x8xf32>
    tpu.vector_store %arg17[%c0_21, %c8], %48 {strides = array<i32>} : memref<16x32xf32, #tpu.memory_space<vmem>>, vector<16x8xf32>,
    %50 = vector.extract_strided_slice %9 {offsets = [0, 16], sizes = [16, 8], strides = [1, 1]} : vector<16x128xf32> to vector<16x8xf32>
    %51 = vector.extract_strided_slice %9 {offsets = [0, 48], sizes = [16, 8], strides = [1, 1]} : vector<16x128xf32> to vector<16x8xf32>
    %52 = vector.extract_strided_slice %9 {offsets = [0, 80], sizes = [16, 8], strides = [1, 1]} : vector<16x128xf32> to vector<16x8xf32>
    %53 = tpu.transpose %51, [1, 0] : vector<16x8xf32> -> vector<8x16xf32>
    %cst_22 = arith.constant dense<0.000000e+00> : vector<16x16xf32>
    %54 = tpu.matmul %50, %53, %cst_22 {dimension_numbers = #tpu.dot_dimension_numbers<[1], [0], [0], [1], [0, 0, 1, 1], [], []>} : vector<16x8xf32>, vector<8x16xf32>, vector<16x16xf32> -> vector<16x16xf32>
    %cst_23 = arith.constant 0.353553385 : f32
    %55 = vector.broadcast %cst_23 : f32 to vector<16x16xf32>
    %56 = arith.mulf %54, %55 : vector<16x16xf32>
    %57 = arith.addf %56, %1 : vector<16x16xf32>
    %cst_24 = arith.constant dense<0xFF800000> : vector<16xf32>
    %58 = vector.multi_reduction <maximumf>, %57, %cst_24 [1] : vector<16x16xf32> to vector<16xf32>
    %59 = vector.shape_cast %58 : vector<16xf32> to vector<16x1xf32>
    %60 = vector.broadcast %59 : vector<16x1xf32> to vector<16x16xf32>
    %61 = arith.subf %57, %60 : vector<16x16xf32>
    %62 = math.exp %61 : vector<16x16xf32>
    %cst_25 = arith.constant dense<0.000000e+00> : vector<16xf32>
    %63 = vector.multi_reduction <add>, %62, %cst_25 [1] : vector<16x16xf32> to vector<16xf32>
    %64 = vector.shape_cast %63 : vector<16xf32> to vector<16x1xf32>
    %65 = tpu.reciprocal %64 : vector<16x1xf32> -> vector<16x1xf32>
    %66 = vector.broadcast %65 : vector<16x1xf32> to vector<16x16xf32>
    %67 = arith.mulf %62, %66 : vector<16x16xf32>
    %cst_26 = arith.constant dense<0.000000e+00> : vector<16x8xf32>
    %68 = tpu.matmul %67, %52, %cst_26 {dimension_numbers = #tpu.dot_dimension_numbers<[1], [0], [0], [1], [0, 0, 1, 1], [], []>} : vector<16x16xf32>, vector<16x8xf32>, vector<16x8xf32> -> vector<16x8xf32>
    %c0_27 = arith.constant 0 : index
    %c16 = arith.constant 16 : index
    %69 = vector.load %arg17[%c0_27, %c16] : memref<16x32xf32, #tpu.memory_space<vmem>>, vector<16x8xf32>
    tpu.vector_store %arg17[%c0_27, %c16], %68 {strides = array<i32>} : memref<16x32xf32, #tpu.memory_space<vmem>>, vector<16x8xf32>,
    %70 = vector.extract_strided_slice %9 {offsets = [0, 24], sizes = [16, 8], strides = [1, 1]} : vector<16x128xf32> to vector<16x8xf32>
    %71 = vector.extract_strided_slice %9 {offsets = [0, 56], sizes = [16, 8], strides = [1, 1]} : vector<16x128xf32> to vector<16x8xf32>
    %72 = vector.extract_strided_slice %9 {offsets = [0, 88], sizes = [16, 8], strides = [1, 1]} : vector<16x128xf32> to vector<16x8xf32>
    %73 = tpu.transpose %71, [1, 0] : vector<16x8xf32> -> vector<8x16xf32>
    %cst_28 = arith.constant dense<0.000000e+00> : vector<16x16xf32>
    %74 = tpu.matmul %70, %73, %cst_28 {dimension_numbers = #tpu.dot_dimension_numbers<[1], [0], [0], [1], [0, 0, 1, 1], [], []>} : vector<16x8xf32>, vector<8x16xf32>, vector<16x16xf32> -> vector<16x16xf32>
    %cst_29 = arith.constant 0.353553385 : f32
    %75 = vector.broadcast %cst_29 : f32 to vector<16x16xf32>
    %76 = arith.mulf %74, %75 : vector<16x16xf32>
    %77 = arith.addf %76, %1 : vector<16x16xf32>
    %cst_30 = arith.constant dense<0xFF800000> : vector<16xf32>
    %78 = vector.multi_reduction <maximumf>, %77, %cst_30 [1] : vector<16x16xf32> to vector<16xf32>
    %79 = vector.shape_cast %78 : vector<16xf32> to vector<16x1xf32>
    %80 = vector.broadcast %79 : vector<16x1xf32> to vector<16x16xf32>
    %81 = arith.subf %77, %80 : vector<16x16xf32>
    %82 = math.exp %81 : vector<16x16xf32>
    %cst_31 = arith.constant dense<0.000000e+00> : vector<16xf32>
    %83 = vector.multi_reduction <add>, %82, %cst_31 [1] : vector<16x16xf32> to vector<16xf32>
    %84 = vector.shape_cast %83 : vector<16xf32> to vector<16x1xf32>
    %85 = tpu.reciprocal %84 : vector<16x1xf32> -> vector<16x1xf32>
    %86 = vector.broadcast %85 : vector<16x1xf32> to vector<16x16xf32>
    %87 = arith.mulf %82, %86 : vector<16x16xf32>
    %cst_32 = arith.constant dense<0.000000e+00> : vector<16x8xf32>
    %88 = tpu.matmul %87, %72, %cst_32 {dimension_numbers = #tpu.dot_dimension_numbers<[1], [0], [0], [1], [0, 0, 1, 1], [], []>} : vector<16x16xf32>, vector<16x8xf32>, vector<16x8xf32> -> vector<16x8xf32>
    %c0_33 = arith.constant 0 : index
    %c24 = arith.constant 24 : index
    %89 = vector.load %arg17[%c0_33, %c24] : memref<16x32xf32, #tpu.memory_space<vmem>>, vector<16x8xf32>
    tpu.vector_store %arg17[%c0_33, %c24], %88 {strides = array<i32>} : memref<16x32xf32, #tpu.memory_space<vmem>>, vector<16x8xf32>,
    %c0_34 = arith.constant 0 : index
    %c0_35 = arith.constant 0 : index
    %90 = vector.load %arg17[%c0_34, %c0_35] : memref<16x32xf32, #tpu.memory_space<vmem>>, vector<16x32xf32>
    %91 = arith.truncf %90 : vector<16x32xf32> to vector<16x32xbf16>
    %c0_36 = arith.constant 0 : index
    %c0_37 = arith.constant 0 : index
    %c0_38 = arith.constant 0 : index
    %92 = vector.load %arg4[%c0_36, %c0_37, %c0_38] : memref<2x32x32xbf16, #tpu.memory_space<vmem>>, vector<1x32x32xbf16>
    %93 = vector.shape_cast %92 : vector<1x32x32xbf16> to vector<32x32xbf16>
    %cst_39 = arith.constant dense<0.000000e+00> : vector<16x32xf32>
    %94 = tpu.matmul %91, %93, %cst_39 {dimension_numbers = #tpu.dot_dimension_numbers<[1], [0], [0], [1], [0, 0, 1, 1], [], []>} : vector<16x32xbf16>, vector<32x32xbf16>, vector<16x32xf32> -> vector<16x32xf32>
    %c0_40 = arith.constant 0 : index
    %c0_41 = arith.constant 0 : index
    %c0_42 = arith.constant 0 : index
    %95 = vector.load %arg5[%c0_40, %c0_41, %c0_42] : memref<2x1x32xf32, #tpu.memory_space<vmem>>, vector<1x1x32xf32>
    %96 = vector.shape_cast %95 : vector<1x1x32xf32> to vector<1x32xf32>
    %97 = vector.broadcast %96 : vector<1x32xf32> to vector<16x32xf32>
    %98 = arith.addf %94, %97 : vector<16x32xf32>
    %99 = arith.addf %0, %98 : vector<16x32xf32>
    %cst_43 = arith.constant dense<0.000000e+00> : vector<16xf32>
    %100 = vector.multi_reduction <add>, %99, %cst_43 [1] : vector<16x32xf32> to vector<16xf32>
    %101 = vector.shape_cast %100 : vector<16xf32> to vector<16x1xf32>
    %cst_44 = arith.constant 3.200000e+01 : f32
    %102 = vector.broadcast %cst_44 : f32 to vector<16x1xf32>
    %103 = arith.divf %101, %102 : vector<16x1xf32>
    %104 = vector.broadcast %103 : vector<16x1xf32> to vector<16x32xf32>
    %105 = arith.subf %99, %104 : vector<16x32xf32>
    %106 = arith.mulf %105, %105 : vector<16x32xf32>
    %cst_45 = arith.constant dense<0.000000e+00> : vector<16xf32>
    %107 = vector.multi_reduction <add>, %106, %cst_45 [1] : vector<16x32xf32> to vector<16xf32>
    %108 = vector.shape_cast %107 : vector<16xf32> to vector<16x1xf32>
    %cst_46 = arith.constant 3.200000e+01 : f32
    %109 = vector.broadcast %cst_46 : f32 to vector<16x1xf32>
    %110 = arith.divf %108, %109 : vector<16x1xf32>
    %111 = vector.broadcast %103 : vector<16x1xf32> to vector<16x32xf32>
    %112 = arith.subf %99, %111 : vector<16x32xf32>
    %cst_47 = arith.constant 9.99999974E-6 : f32
    %113 = vector.broadcast %cst_47 : f32 to vector<16x1xf32>
    %114 = arith.addf %110, %113 : vector<16x1xf32>
    %115 = math.rsqrt %114 : vector<16x1xf32>
    %116 = vector.broadcast %115 : vector<16x1xf32> to vector<16x32xf32>
    %117 = arith.mulf %112, %116 : vector<16x32xf32>
    %c0_48 = arith.constant 0 : index
    %c0_49 = arith.constant 0 : index
    %c0_50 = arith.constant 0 : index
    %118 = vector.load %arg6[%c0_48, %c0_49, %c0_50] : memref<2x1x32xf32, #tpu.memory_space<vmem>>, vector<1x1x32xf32>
    %119 = vector.shape_cast %118 : vector<1x1x32xf32> to vector<1x32xf32>
    %120 = vector.broadcast %119 : vector<1x32xf32> to vector<16x32xf32>
    %121 = arith.mulf %117, %120 : vector<16x32xf32>
    %c0_51 = arith.constant 0 : index
    %c0_52 = arith.constant 0 : index
    %c0_53 = arith.constant 0 : index
    %122 = vector.load %arg7[%c0_51, %c0_52, %c0_53] : memref<2x1x32xf32, #tpu.memory_space<vmem>>, vector<1x1x32xf32>
    %123 = vector.shape_cast %122 : vector<1x1x32xf32> to vector<1x32xf32>
    %124 = vector.broadcast %123 : vector<1x32xf32> to vector<16x32xf32>
    %125 = arith.addf %121, %124 : vector<16x32xf32>
    %126 = arith.truncf %125 : vector<16x32xf32> to vector<16x32xbf16>
    %cst_54 = arith.constant 0.000000e+00 : f32
    %127 = vector.broadcast %cst_54 : f32 to vector<16x32xf32>
    %c0_55 = arith.constant 0 : index
    %c0_56 = arith.constant 0 : index
    %c0_57 = arith.constant 0 : index
    %128 = vector.load %arg8[%c0_55, %c0_56, %c0_57] : memref<2x32x2048xbf16, #tpu.memory_space<vmem>>, vector<1x32x256xbf16>
    %129 = vector.shape_cast %128 : vector<1x32x256xbf16> to vector<32x256xbf16>
    %cst_58 = arith.constant dense<0.000000e+00> : vector<16x256xf32>
    %130 = tpu.matmul %126, %129, %cst_58 {dimension_numbers = #tpu.dot_dimension_numbers<[1], [0], [0], [1], [0, 0, 1, 1], [], []>} : vector<16x32xbf16>, vector<32x256xbf16>, vector<16x256xf32> -> vector<16x256xf32>
    %c0_59 = arith.constant 0 : index
    %c0_60 = arith.constant 0 : index
    %c0_61 = arith.constant 0 : index
    %131 = vector.load %arg9[%c0_59, %c0_60, %c0_61] : memref<2x1x2048xf32, #tpu.memory_space<vmem>>, vector<1x1x256xf32>
    %132 = vector.shape_cast %131 : vector<1x1x256xf32> to vector<1x256xf32>
    %133 = vector.broadcast %132 : vector<1x256xf32> to vector<16x256xf32>
    %134 = arith.addf %130, %133 : vector<16x256xf32>
    %cst_62 = arith.constant 0.000000e+00 : f32
    %135 = vector.broadcast %cst_62 : f32 to vector<16x256xf32>
    %136 = arith.maximumf %134, %135 : vector<16x256xf32>
    %137 = arith.truncf %136 : vector<16x256xf32> to vector<16x256xbf16>
    %c0_63 = arith.constant 0 : index
    %c0_64 = arith.constant 0 : index
    %c0_65 = arith.constant 0 : index
    %138 = vector.load %arg10[%c0_63, %c0_64, %c0_65] : memref<2x2048x32xbf16, #tpu.memory_space<vmem>>, vector<1x256x32xbf16>
    %139 = vector.shape_cast %138 : vector<1x256x32xbf16> to vector<256x32xbf16>
    %cst_66 = arith.constant dense<0.000000e+00> : vector<16x32xf32>
    %140 = tpu.matmul %137, %139, %cst_66 {dimension_numbers = #tpu.dot_dimension_numbers<[1], [0], [0], [1], [0, 0, 1, 1], [], []>} : vector<16x256xbf16>, vector<256x32xbf16>, vector<16x32xf32> -> vector<16x32xf32>
    %141 = arith.addf %127, %140 : vector<16x32xf32>
    %c0_67 = arith.constant 0 : index
    %c0_68 = arith.constant 0 : index
    %c256 = arith.constant 256 : index
    %142 = vector.load %arg8[%c0_67, %c0_68, %c256] : memref<2x32x2048xbf16, #tpu.memory_space<vmem>>, vector<1x32x256xbf16>
    %143 = vector.shape_cast %142 : vector<1x32x256xbf16> to vector<32x256xbf16>
    %cst_69 = arith.constant dense<0.000000e+00> : vector<16x256xf32>
    %144 = tpu.matmul %126, %143, %cst_69 {dimension_numbers = #tpu.dot_dimension_numbers<[1], [0], [0], [1], [0, 0, 1, 1], [], []>} : vector<16x32xbf16>, vector<32x256xbf16>, vector<16x256xf32> -> vector<16x256xf32>
    %c0_70 = arith.constant 0 : index
    %c0_71 = arith.constant 0 : index
    %c256_72 = arith.constant 256 : index
    %145 = vector.load %arg9[%c0_70, %c0_71, %c256_72] : memref<2x1x2048xf32, #tpu.memory_space<vmem>>, vector<1x1x256xf32>
    %146 = vector.shape_cast %145 : vector<1x1x256xf32> to vector<1x256xf32>
    %147 = vector.broadcast %146 : vector<1x256xf32> to vector<16x256xf32>
    %148 = arith.addf %144, %147 : vector<16x256xf32>
    %cst_73 = arith.constant 0.000000e+00 : f32
    %149 = vector.broadcast %cst_73 : f32 to vector<16x256xf32>
    %150 = arith.maximumf %148, %149 : vector<16x256xf32>
    %151 = arith.truncf %150 : vector<16x256xf32> to vector<16x256xbf16>
    %c0_74 = arith.constant 0 : index
    %c256_75 = arith.constant 256 : index
    %c0_76 = arith.constant 0 : index
    %152 = vector.load %arg10[%c0_74, %c256_75, %c0_76] : memref<2x2048x32xbf16, #tpu.memory_space<vmem>>, vector<1x256x32xbf16>
    %153 = vector.shape_cast %152 : vector<1x256x32xbf16> to vector<256x32xbf16>
    %cst_77 = arith.constant dense<0.000000e+00> : vector<16x32xf32>
    %154 = tpu.matmul %151, %153, %cst_77 {dimension_numbers = #tpu.dot_dimension_numbers<[1], [0], [0], [1], [0, 0, 1, 1], [], []>} : vector<16x256xbf16>, vector<256x32xbf16>, vector<16x32xf32> -> vector<16x32xf32>
    %155 = arith.addf %141, %154 : vector<16x32xf32>
    %c0_78 = arith.constant 0 : index
    %c0_79 = arith.constant 0 : index
    %c512 = arith.constant 512 : index
    %156 = vector.load %arg8[%c0_78, %c0_79, %c512] : memref<2x32x2048xbf16, #tpu.memory_space<vmem>>, vector<1x32x256xbf16>
    %157 = vector.shape_cast %156 : vector<1x32x256xbf16> to vector<32x256xbf16>
    %cst_80 = arith.constant dense<0.000000e+00> : vector<16x256xf32>
    %158 = tpu.matmul %126, %157, %cst_80 {dimension_numbers = #tpu.dot_dimension_numbers<[1], [0], [0], [1], [0, 0, 1, 1], [], []>} : vector<16x32xbf16>, vector<32x256xbf16>, vector<16x256xf32> -> vector<16x256xf32>
    %c0_81 = arith.constant 0 : index
    %c0_82 = arith.constant 0 : index
    %c512_83 = arith.constant 512 : index
    %159 = vector.load %arg9[%c0_81, %c0_82, %c512_83] : memref<2x1x2048xf32, #tpu.memory_space<vmem>>, vector<1x1x256xf32>
    %160 = vector.shape_cast %159 : vector<1x1x256xf32> to vector<1x256xf32>
    %161 = vector.broadcast %160 : vector<1x256xf32> to vector<16x256xf32>
    %162 = arith.addf %158, %161 : vector<16x256xf32>
    %cst_84 = arith.constant 0.000000e+00 : f32
    %163 = vector.broadcast %cst_84 : f32 to vector<16x256xf32>
    %164 = arith.maximumf %162, %163 : vector<16x256xf32>
    %165 = arith.truncf %164 : vector<16x256xf32> to vector<16x256xbf16>
    %c0_85 = arith.constant 0 : index
    %c512_86 = arith.constant 512 : index
    %c0_87 = arith.constant 0 : index
    %166 = vector.load %arg10[%c0_85, %c512_86, %c0_87] : memref<2x2048x32xbf16, #tpu.memory_space<vmem>>, vector<1x256x32xbf16>
    %167 = vector.shape_cast %166 : vector<1x256x32xbf16> to vector<256x32xbf16>
    %cst_88 = arith.constant dense<0.000000e+00> : vector<16x32xf32>
    %168 = tpu.matmul %165, %167, %cst_88 {dimension_numbers = #tpu.dot_dimension_numbers<[1], [0], [0], [1], [0, 0, 1, 1], [], []>} : vector<16x256xbf16>, vector<256x32xbf16>, vector<16x32xf32> -> vector<16x32xf32>
    %169 = arith.addf %155, %168 : vector<16x32xf32>
    %c0_89 = arith.constant 0 : index
    %c0_90 = arith.constant 0 : index
    %c768 = arith.constant 768 : index
    %170 = vector.load %arg8[%c0_89, %c0_90, %c768] : memref<2x32x2048xbf16, #tpu.memory_space<vmem>>, vector<1x32x256xbf16>
    %171 = vector.shape_cast %170 : vector<1x32x256xbf16> to vector<32x256xbf16>
    %cst_91 = arith.constant dense<0.000000e+00> : vector<16x256xf32>
    %172 = tpu.matmul %126, %171, %cst_91 {dimension_numbers = #tpu.dot_dimension_numbers<[1], [0], [0], [1], [0, 0, 1, 1], [], []>} : vector<16x32xbf16>, vector<32x256xbf16>, vector<16x256xf32> -> vector<16x256xf32>
    %c0_92 = arith.constant 0 : index
    %c0_93 = arith.constant 0 : index
    %c768_94 = arith.constant 768 : index
    %173 = vector.load %arg9[%c0_92, %c0_93, %c768_94] : memref<2x1x2048xf32, #tpu.memory_space<vmem>>, vector<1x1x256xf32>
    %174 = vector.shape_cast %173 : vector<1x1x256xf32> to vector<1x256xf32>
    %175 = vector.broadcast %174 : vector<1x256xf32> to vector<16x256xf32>
    %176 = arith.addf %172, %175 : vector<16x256xf32>
    %cst_95 = arith.constant 0.000000e+00 : f32
    %177 = vector.broadcast %cst_95 : f32 to vector<16x256xf32>
    %178 = arith.maximumf %176, %177 : vector<16x256xf32>
    %179 = arith.truncf %178 : vector<16x256xf32> to vector<16x256xbf16>
    %c0_96 = arith.constant 0 : index
    %c768_97 = arith.constant 768 : index
    %c0_98 = arith.constant 0 : index
    %180 = vector.load %arg10[%c0_96, %c768_97, %c0_98] : memref<2x2048x32xbf16, #tpu.memory_space<vmem>>, vector<1x256x32xbf16>
    %181 = vector.shape_cast %180 : vector<1x256x32xbf16> to vector<256x32xbf16>
    %cst_99 = arith.constant dense<0.000000e+00> : vector<16x32xf32>
    %182 = tpu.matmul %179, %181, %cst_99 {dimension_numbers = #tpu.dot_dimension_numbers<[1], [0], [0], [1], [0, 0, 1, 1], [], []>} : vector<16x256xbf16>, vector<256x32xbf16>, vector<16x32xf32> -> vector<16x32xf32>
    %183 = arith.addf %169, %182 : vector<16x32xf32>
    %c0_100 = arith.constant 0 : index
    %c0_101 = arith.constant 0 : index
    %c1024 = arith.constant 1024 : index
    %184 = vector.load %arg8[%c0_100, %c0_101, %c1024] : memref<2x32x2048xbf16, #tpu.memory_space<vmem>>, vector<1x32x256xbf16>
    %185 = vector.shape_cast %184 : vector<1x32x256xbf16> to vector<32x256xbf16>
    %cst_102 = arith.constant dense<0.000000e+00> : vector<16x256xf32>
    %186 = tpu.matmul %126, %185, %cst_102 {dimension_numbers = #tpu.dot_dimension_numbers<[1], [0], [0], [1], [0, 0, 1, 1], [], []>} : vector<16x32xbf16>, vector<32x256xbf16>, vector<16x256xf32> -> vector<16x256xf32>
    %c0_103 = arith.constant 0 : index
    %c0_104 = arith.constant 0 : index
    %c1024_105 = arith.constant 1024 : index
    %187 = vector.load %arg9[%c0_103, %c0_104, %c1024_105] : memref<2x1x2048xf32, #tpu.memory_space<vmem>>, vector<1x1x256xf32>
    %188 = vector.shape_cast %187 : vector<1x1x256xf32> to vector<1x256xf32>
    %189 = vector.broadcast %188 : vector<1x256xf32> to vector<16x256xf32>
    %190 = arith.addf %186, %189 : vector<16x256xf32>
    %cst_106 = arith.constant 0.000000e+00 : f32
    %191 = vector.broadcast %cst_106 : f32 to vector<16x256xf32>
    %192 = arith.maximumf %190, %191 : vector<16x256xf32>
    %193 = arith.truncf %192 : vector<16x256xf32> to vector<16x256xbf16>
    %c0_107 = arith.constant 0 : index
    %c1024_108 = arith.constant 1024 : index
    %c0_109 = arith.constant 0 : index
    %194 = vector.load %arg10[%c0_107, %c1024_108, %c0_109] : memref<2x2048x32xbf16, #tpu.memory_space<vmem>>, vector<1x256x32xbf16>
    %195 = vector.shape_cast %194 : vector<1x256x32xbf16> to vector<256x32xbf16>
    %cst_110 = arith.constant dense<0.000000e+00> : vector<16x32xf32>
    %196 = tpu.matmul %193, %195, %cst_110 {dimension_numbers = #tpu.dot_dimension_numbers<[1], [0], [0], [1], [0, 0, 1, 1], [], []>} : vector<16x256xbf16>, vector<256x32xbf16>, vector<16x32xf32> -> vector<16x32xf32>
    %197 = arith.addf %183, %196 : vector<16x32xf32>
    %c0_111 = arith.constant 0 : index
    %c0_112 = arith.constant 0 : index
    %c1280 = arith.constant 1280 : index
    %198 = vector.load %arg8[%c0_111, %c0_112, %c1280] : memref<2x32x2048xbf16, #tpu.memory_space<vmem>>, vector<1x32x256xbf16>
    %199 = vector.shape_cast %198 : vector<1x32x256xbf16> to vector<32x256xbf16>
    %cst_113 = arith.constant dense<0.000000e+00> : vector<16x256xf32>
    %200 = tpu.matmul %126, %199, %cst_113 {dimension_numbers = #tpu.dot_dimension_numbers<[1], [0], [0], [1], [0, 0, 1, 1], [], []>} : vector<16x32xbf16>, vector<32x256xbf16>, vector<16x256xf32> -> vector<16x256xf32>
    %c0_114 = arith.constant 0 : index
    %c0_115 = arith.constant 0 : index
    %c1280_116 = arith.constant 1280 : index
    %201 = vector.load %arg9[%c0_114, %c0_115, %c1280_116] : memref<2x1x2048xf32, #tpu.memory_space<vmem>>, vector<1x1x256xf32>
    %202 = vector.shape_cast %201 : vector<1x1x256xf32> to vector<1x256xf32>
    %203 = vector.broadcast %202 : vector<1x256xf32> to vector<16x256xf32>
    %204 = arith.addf %200, %203 : vector<16x256xf32>
    %cst_117 = arith.constant 0.000000e+00 : f32
    %205 = vector.broadcast %cst_117 : f32 to vector<16x256xf32>
    %206 = arith.maximumf %204, %205 : vector<16x256xf32>
    %207 = arith.truncf %206 : vector<16x256xf32> to vector<16x256xbf16>
    %c0_118 = arith.constant 0 : index
    %c1280_119 = arith.constant 1280 : index
    %c0_120 = arith.constant 0 : index
    %208 = vector.load %arg10[%c0_118, %c1280_119, %c0_120] : memref<2x2048x32xbf16, #tpu.memory_space<vmem>>, vector<1x256x32xbf16>
    %209 = vector.shape_cast %208 : vector<1x256x32xbf16> to vector<256x32xbf16>
    %cst_121 = arith.constant dense<0.000000e+00> : vector<16x32xf32>
    %210 = tpu.matmul %207, %209, %cst_121 {dimension_numbers = #tpu.dot_dimension_numbers<[1], [0], [0], [1], [0, 0, 1, 1], [], []>} : vector<16x256xbf16>, vector<256x32xbf16>, vector<16x32xf32> -> vector<16x32xf32>
    %211 = arith.addf %197, %210 : vector<16x32xf32>
    %c0_122 = arith.constant 0 : index
    %c0_123 = arith.constant 0 : index
    %c1536 = arith.constant 1536 : index
    %212 = vector.load %arg8[%c0_122, %c0_123, %c1536] : memref<2x32x2048xbf16, #tpu.memory_space<vmem>>, vector<1x32x256xbf16>
    %213 = vector.shape_cast %212 : vector<1x32x256xbf16> to vector<32x256xbf16>
    %cst_124 = arith.constant dense<0.000000e+00> : vector<16x256xf32>
    %214 = tpu.matmul %126, %213, %cst_124 {dimension_numbers = #tpu.dot_dimension_numbers<[1], [0], [0], [1], [0, 0, 1, 1], [], []>} : vector<16x32xbf16>, vector<32x256xbf16>, vector<16x256xf32> -> vector<16x256xf32>
    %c0_125 = arith.constant 0 : index
    %c0_126 = arith.constant 0 : index
    %c1536_127 = arith.constant 1536 : index
    %215 = vector.load %arg9[%c0_125, %c0_126, %c1536_127] : memref<2x1x2048xf32, #tpu.memory_space<vmem>>, vector<1x1x256xf32>
    %216 = vector.shape_cast %215 : vector<1x1x256xf32> to vector<1x256xf32>
    %217 = vector.broadcast %216 : vector<1x256xf32> to vector<16x256xf32>
    %218 = arith.addf %214, %217 : vector<16x256xf32>
    %cst_128 = arith.constant 0.000000e+00 : f32
    %219 = vector.broadcast %cst_128 : f32 to vector<16x256xf32>
    %220 = arith.maximumf %218, %219 : vector<16x256xf32>
    %221 = arith.truncf %220 : vector<16x256xf32> to vector<16x256xbf16>
    %c0_129 = arith.constant 0 : index
    %c1536_130 = arith.constant 1536 : index
    %c0_131 = arith.constant 0 : index
    %222 = vector.load %arg10[%c0_129, %c1536_130, %c0_131] : memref<2x2048x32xbf16, #tpu.memory_space<vmem>>, vector<1x256x32xbf16>
    %223 = vector.shape_cast %222 : vector<1x256x32xbf16> to vector<256x32xbf16>
    %cst_132 = arith.constant dense<0.000000e+00> : vector<16x32xf32>
    %224 = tpu.matmul %221, %223, %cst_132 {dimension_numbers = #tpu.dot_dimension_numbers<[1], [0], [0], [1], [0, 0, 1, 1], [], []>} : vector<16x256xbf16>, vector<256x32xbf16>, vector<16x32xf32> -> vector<16x32xf32>
    %225 = arith.addf %211, %224 : vector<16x32xf32>
    %c0_133 = arith.constant 0 : index
    %c0_134 = arith.constant 0 : index
    %c1792 = arith.constant 1792 : index
    %226 = vector.load %arg8[%c0_133, %c0_134, %c1792] : memref<2x32x2048xbf16, #tpu.memory_space<vmem>>, vector<1x32x256xbf16>
    %227 = vector.shape_cast %226 : vector<1x32x256xbf16> to vector<32x256xbf16>
    %cst_135 = arith.constant dense<0.000000e+00> : vector<16x256xf32>
    %228 = tpu.matmul %126, %227, %cst_135 {dimension_numbers = #tpu.dot_dimension_numbers<[1], [0], [0], [1], [0, 0, 1, 1], [], []>} : vector<16x32xbf16>, vector<32x256xbf16>, vector<16x256xf32> -> vector<16x256xf32>
    %c0_136 = arith.constant 0 : index
    %c0_137 = arith.constant 0 : index
    %c1792_138 = arith.constant 1792 : index
    %229 = vector.load %arg9[%c0_136, %c0_137, %c1792_138] : memref<2x1x2048xf32, #tpu.memory_space<vmem>>, vector<1x1x256xf32>
    %230 = vector.shape_cast %229 : vector<1x1x256xf32> to vector<1x256xf32>
    %231 = vector.broadcast %230 : vector<1x256xf32> to vector<16x256xf32>
    %232 = arith.addf %228, %231 : vector<16x256xf32>
    %cst_139 = arith.constant 0.000000e+00 : f32
    %233 = vector.broadcast %cst_139 : f32 to vector<16x256xf32>
    %234 = arith.maximumf %232, %233 : vector<16x256xf32>
    %235 = arith.truncf %234 : vector<16x256xf32> to vector<16x256xbf16>
    %c0_140 = arith.constant 0 : index
    %c1792_141 = arith.constant 1792 : index
    %c0_142 = arith.constant 0 : index
    %236 = vector.load %arg10[%c0_140, %c1792_141, %c0_142] : memref<2x2048x32xbf16, #tpu.memory_space<vmem>>, vector<1x256x32xbf16>
    %237 = vector.shape_cast %236 : vector<1x256x32xbf16> to vector<256x32xbf16>
    %cst_143 = arith.constant dense<0.000000e+00> : vector<16x32xf32>
    %238 = tpu.matmul %235, %237, %cst_143 {dimension_numbers = #tpu.dot_dimension_numbers<[1], [0], [0], [1], [0, 0, 1, 1], [], []>} : vector<16x256xbf16>, vector<256x32xbf16>, vector<16x32xf32> -> vector<16x32xf32>
    %239 = arith.addf %225, %238 : vector<16x32xf32>
    %c0_144 = arith.constant 0 : index
    %c0_145 = arith.constant 0 : index
    %c0_146 = arith.constant 0 : index
    %240 = vector.load %arg11[%c0_144, %c0_145, %c0_146] : memref<2x1x32xf32, #tpu.memory_space<vmem>>, vector<1x1x32xf32>
    %241 = vector.shape_cast %240 : vector<1x1x32xf32> to vector<1x32xf32>
    %242 = vector.broadcast %241 : vector<1x32xf32> to vector<16x32xf32>
    %243 = arith.addf %239, %242 : vector<16x32xf32>
    %244 = arith.addf %125, %243 : vector<16x32xf32>
    %cst_147 = arith.constant dense<0.000000e+00> : vector<16xf32>
    %245 = vector.multi_reduction <add>, %244, %cst_147 [1] : vector<16x32xf32> to vector<16xf32>
    %246 = vector.shape_cast %245 : vector<16xf32> to vector<16x1xf32>
    %cst_148 = arith.constant 3.200000e+01 : f32
    %247 = vector.broadcast %cst_148 : f32 to vector<16x1xf32>
    %248 = arith.divf %246, %247 : vector<16x1xf32>
    %249 = vector.broadcast %248 : vector<16x1xf32> to vector<16x32xf32>
    %250 = arith.subf %244, %249 : vector<16x32xf32>
    %251 = arith.mulf %250, %250 : vector<16x32xf32>
    %cst_149 = arith.constant dense<0.000000e+00> : vector<16xf32>
    %252 = vector.multi_reduction <add>, %251, %cst_149 [1] : vector<16x32xf32> to vector<16xf32>
    %253 = vector.shape_cast %252 : vector<16xf32> to vector<16x1xf32>
    %cst_150 = arith.constant 3.200000e+01 : f32
    %254 = vector.broadcast %cst_150 : f32 to vector<16x1xf32>
    %255 = arith.divf %253, %254 : vector<16x1xf32>
    %256 = vector.broadcast %248 : vector<16x1xf32> to vector<16x32xf32>
    %257 = arith.subf %244, %256 : vector<16x32xf32>
    %cst_151 = arith.constant 9.99999974E-6 : f32
    %258 = vector.broadcast %cst_151 : f32 to vector<16x1xf32>
    %259 = arith.addf %255, %258 : vector<16x1xf32>
    %260 = math.rsqrt %259 : vector<16x1xf32>
    %261 = vector.broadcast %260 : vector<16x1xf32> to vector<16x32xf32>
    %262 = arith.mulf %257, %261 : vector<16x32xf32>
    %c0_152 = arith.constant 0 : index
    %c0_153 = arith.constant 0 : index
    %c0_154 = arith.constant 0 : index
    %263 = vector.load %arg12[%c0_152, %c0_153, %c0_154] : memref<2x1x32xf32, #tpu.memory_space<vmem>>, vector<1x1x32xf32>
    %264 = vector.shape_cast %263 : vector<1x1x32xf32> to vector<1x32xf32>
    %265 = vector.broadcast %264 : vector<1x32xf32> to vector<16x32xf32>
    %266 = arith.mulf %262, %265 : vector<16x32xf32>
    %c0_155 = arith.constant 0 : index
    %c0_156 = arith.constant 0 : index
    %c0_157 = arith.constant 0 : index
    %267 = vector.load %arg13[%c0_155, %c0_156, %c0_157] : memref<2x1x32xf32, #tpu.memory_space<vmem>>, vector<1x1x32xf32>
    %268 = vector.shape_cast %267 : vector<1x1x32xf32> to vector<1x32xf32>
    %269 = vector.broadcast %268 : vector<1x32xf32> to vector<16x32xf32>
    %270 = arith.addf %266, %269 : vector<16x32xf32>
    %271 = arith.truncf %270 : vector<16x32xf32> to vector<16x32xbf16>
    %c1 = arith.constant 1 : index
    %c0_158 = arith.constant 0 : index
    %c0_159 = arith.constant 0 : index
    %272 = vector.load %arg2[%c1, %c0_158, %c0_159] : memref<2x32x128xbf16, #tpu.memory_space<vmem>>, vector<1x32x128xbf16>
    %273 = vector.shape_cast %272 : vector<1x32x128xbf16> to vector<32x128xbf16>
    %cst_160 = arith.constant dense<0.000000e+00> : vector<16x128xf32>
    %274 = tpu.matmul %271, %273, %cst_160 {dimension_numbers = #tpu.dot_dimension_numbers<[1], [0], [0], [1], [0, 0, 1, 1], [], []>} : vector<16x32xbf16>, vector<32x128xbf16>, vector<16x128xf32> -> vector<16x128xf32>
    %c1_161 = arith.constant 1 : index
    %c0_162 = arith.constant 0 : index
    %c0_163 = arith.constant 0 : index
    %275 = vector.load %arg3[%c1_161, %c0_162, %c0_163] : memref<2x1x128xf32, #tpu.memory_space<vmem>>, vector<1x1x128xf32>
    %276 = vector.shape_cast %275 : vector<1x1x128xf32> to vector<1x128xf32>
    %277 = vector.broadcast %276 : vector<1x128xf32> to vector<16x128xf32>
    %278 = arith.addf %274, %277 : vector<16x128xf32>
    %279 = vector.extract_strided_slice %278 {offsets = [0, 0], sizes = [16, 8], strides = [1, 1]} : vector<16x128xf32> to vector<16x8xf32>
    %280 = vector.extract_strided_slice %278 {offsets = [0, 32], sizes = [16, 8], strides = [1, 1]} : vector<16x128xf32> to vector<16x8xf32>
    %281 = vector.extract_strided_slice %278 {offsets = [0, 64], sizes = [16, 8], strides = [1, 1]} : vector<16x128xf32> to vector<16x8xf32>
    %282 = tpu.transpose %280, [1, 0] : vector<16x8xf32> -> vector<8x16xf32>
    %cst_164 = arith.constant dense<0.000000e+00> : vector<16x16xf32>
    %283 = tpu.matmul %279, %282, %cst_164 {dimension_numbers = #tpu.dot_dimension_numbers<[1], [0], [0], [1], [0, 0, 1, 1], [], []>} : vector<16x8xf32>, vector<8x16xf32>, vector<16x16xf32> -> vector<16x16xf32>
    %cst_165 = arith.constant 0.353553385 : f32
    %284 = vector.broadcast %cst_165 : f32 to vector<16x16xf32>
    %285 = arith.mulf %283, %284 : vector<16x16xf32>
    %286 = arith.addf %285, %1 : vector<16x16xf32>
    %cst_166 = arith.constant dense<0xFF800000> : vector<16xf32>
    %287 = vector.multi_reduction <maximumf>, %286, %cst_166 [1] : vector<16x16xf32> to vector<16xf32>
    %288 = vector.shape_cast %287 : vector<16xf32> to vector<16x1xf32>
    %289 = vector.broadcast %288 : vector<16x1xf32> to vector<16x16xf32>
    %290 = arith.subf %286, %289 : vector<16x16xf32>
    %291 = math.exp %290 : vector<16x16xf32>
    %cst_167 = arith.constant dense<0.000000e+00> : vector<16xf32>
    %292 = vector.multi_reduction <add>, %291, %cst_167 [1] : vector<16x16xf32> to vector<16xf32>
    %293 = vector.shape_cast %292 : vector<16xf32> to vector<16x1xf32>
    %294 = tpu.reciprocal %293 : vector<16x1xf32> -> vector<16x1xf32>
    %295 = vector.broadcast %294 : vector<16x1xf32> to vector<16x16xf32>
    %296 = arith.mulf %291, %295 : vector<16x16xf32>
    %cst_168 = arith.constant dense<0.000000e+00> : vector<16x8xf32>
    %297 = tpu.matmul %296, %281, %cst_168 {dimension_numbers = #tpu.dot_dimension_numbers<[1], [0], [0], [1], [0, 0, 1, 1], [], []>} : vector<16x16xf32>, vector<16x8xf32>, vector<16x8xf32> -> vector<16x8xf32>
    %c0_169 = arith.constant 0 : index
    %c0_170 = arith.constant 0 : index
    %298 = vector.load %arg17[%c0_169, %c0_170] : memref<16x32xf32, #tpu.memory_space<vmem>>, vector<16x8xf32>
    tpu.vector_store %arg17[%c0_169, %c0_170], %297 {strides = array<i32>} : memref<16x32xf32, #tpu.memory_space<vmem>>, vector<16x8xf32>,
    %299 = vector.extract_strided_slice %278 {offsets = [0, 8], sizes = [16, 8], strides = [1, 1]} : vector<16x128xf32> to vector<16x8xf32>
    %300 = vector.extract_strided_slice %278 {offsets = [0, 40], sizes = [16, 8], strides = [1, 1]} : vector<16x128xf32> to vector<16x8xf32>
    %301 = vector.extract_strided_slice %278 {offsets = [0, 72], sizes = [16, 8], strides = [1, 1]} : vector<16x128xf32> to vector<16x8xf32>
    %302 = tpu.transpose %300, [1, 0] : vector<16x8xf32> -> vector<8x16xf32>
    %cst_171 = arith.constant dense<0.000000e+00> : vector<16x16xf32>
    %303 = tpu.matmul %299, %302, %cst_171 {dimension_numbers = #tpu.dot_dimension_numbers<[1], [0], [0], [1], [0, 0, 1, 1], [], []>} : vector<16x8xf32>, vector<8x16xf32>, vector<16x16xf32> -> vector<16x16xf32>
    %cst_172 = arith.constant 0.353553385 : f32
    %304 = vector.broadcast %cst_172 : f32 to vector<16x16xf32>
    %305 = arith.mulf %303, %304 : vector<16x16xf32>
    %306 = arith.addf %305, %1 : vector<16x16xf32>
    %cst_173 = arith.constant dense<0xFF800000> : vector<16xf32>
    %307 = vector.multi_reduction <maximumf>, %306, %cst_173 [1] : vector<16x16xf32> to vector<16xf32>
    %308 = vector.shape_cast %307 : vector<16xf32> to vector<16x1xf32>
    %309 = vector.broadcast %308 : vector<16x1xf32> to vector<16x16xf32>
    %310 = arith.subf %306, %309 : vector<16x16xf32>
    %311 = math.exp %310 : vector<16x16xf32>
    %cst_174 = arith.constant dense<0.000000e+00> : vector<16xf32>
    %312 = vector.multi_reduction <add>, %311, %cst_174 [1] : vector<16x16xf32> to vector<16xf32>
    %313 = vector.shape_cast %312 : vector<16xf32> to vector<16x1xf32>
    %314 = tpu.reciprocal %313 : vector<16x1xf32> -> vector<16x1xf32>
    %315 = vector.broadcast %314 : vector<16x1xf32> to vector<16x16xf32>
    %316 = arith.mulf %311, %315 : vector<16x16xf32>
    %cst_175 = arith.constant dense<0.000000e+00> : vector<16x8xf32>
    %317 = tpu.matmul %316, %301, %cst_175 {dimension_numbers = #tpu.dot_dimension_numbers<[1], [0], [0], [1], [0, 0, 1, 1], [], []>} : vector<16x16xf32>, vector<16x8xf32>, vector<16x8xf32> -> vector<16x8xf32>
    %c0_176 = arith.constant 0 : index
    %c8_177 = arith.constant 8 : index
    %318 = vector.load %arg17[%c0_176, %c8_177] : memref<16x32xf32, #tpu.memory_space<vmem>>, vector<16x8xf32>
    tpu.vector_store %arg17[%c0_176, %c8_177], %317 {strides = array<i32>} : memref<16x32xf32, #tpu.memory_space<vmem>>, vector<16x8xf32>,
    %319 = vector.extract_strided_slice %278 {offsets = [0, 16], sizes = [16, 8], strides = [1, 1]} : vector<16x128xf32> to vector<16x8xf32>
    %320 = vector.extract_strided_slice %278 {offsets = [0, 48], sizes = [16, 8], strides = [1, 1]} : vector<16x128xf32> to vector<16x8xf32>
    %321 = vector.extract_strided_slice %278 {offsets = [0, 80], sizes = [16, 8], strides = [1, 1]} : vector<16x128xf32> to vector<16x8xf32>
    %322 = tpu.transpose %320, [1, 0] : vector<16x8xf32> -> vector<8x16xf32>
    %cst_178 = arith.constant dense<0.000000e+00> : vector<16x16xf32>
    %323 = tpu.matmul %319, %322, %cst_178 {dimension_numbers = #tpu.dot_dimension_numbers<[1], [0], [0], [1], [0, 0, 1, 1], [], []>} : vector<16x8xf32>, vector<8x16xf32>, vector<16x16xf32> -> vector<16x16xf32>
    %cst_179 = arith.constant 0.353553385 : f32
    %324 = vector.broadcast %cst_179 : f32 to vector<16x16xf32>
    %325 = arith.mulf %323, %324 : vector<16x16xf32>
    %326 = arith.addf %325, %1 : vector<16x16xf32>
    %cst_180 = arith.constant dense<0xFF800000> : vector<16xf32>
    %327 = vector.multi_reduction <maximumf>, %326, %cst_180 [1] : vector<16x16xf32> to vector<16xf32>
    %328 = vector.shape_cast %327 : vector<16xf32> to vector<16x1xf32>
    %329 = vector.broadcast %328 : vector<16x1xf32> to vector<16x16xf32>
    %330 = arith.subf %326, %329 : vector<16x16xf32>
    %331 = math.exp %330 : vector<16x16xf32>
    %cst_181 = arith.constant dense<0.000000e+00> : vector<16xf32>
    %332 = vector.multi_reduction <add>, %331, %cst_181 [1] : vector<16x16xf32> to vector<16xf32>
    %333 = vector.shape_cast %332 : vector<16xf32> to vector<16x1xf32>
    %334 = tpu.reciprocal %333 : vector<16x1xf32> -> vector<16x1xf32>
    %335 = vector.broadcast %334 : vector<16x1xf32> to vector<16x16xf32>
    %336 = arith.mulf %331, %335 : vector<16x16xf32>
    %cst_182 = arith.constant dense<0.000000e+00> : vector<16x8xf32>
    %337 = tpu.matmul %336, %321, %cst_182 {dimension_numbers = #tpu.dot_dimension_numbers<[1], [0], [0], [1], [0, 0, 1, 1], [], []>} : vector<16x16xf32>, vector<16x8xf32>, vector<16x8xf32> -> vector<16x8xf32>
    %c0_183 = arith.constant 0 : index
    %c16_184 = arith.constant 16 : index
    %338 = vector.load %arg17[%c0_183, %c16_184] : memref<16x32xf32, #tpu.memory_space<vmem>>, vector<16x8xf32>
    tpu.vector_store %arg17[%c0_183, %c16_184], %337 {strides = array<i32>} : memref<16x32xf32, #tpu.memory_space<vmem>>, vector<16x8xf32>,
    %339 = vector.extract_strided_slice %278 {offsets = [0, 24], sizes = [16, 8], strides = [1, 1]} : vector<16x128xf32> to vector<16x8xf32>
    %340 = vector.extract_strided_slice %278 {offsets = [0, 56], sizes = [16, 8], strides = [1, 1]} : vector<16x128xf32> to vector<16x8xf32>
    %341 = vector.extract_strided_slice %278 {offsets = [0, 88], sizes = [16, 8], strides = [1, 1]} : vector<16x128xf32> to vector<16x8xf32>
    %342 = tpu.transpose %340, [1, 0] : vector<16x8xf32> -> vector<8x16xf32>
    %cst_185 = arith.constant dense<0.000000e+00> : vector<16x16xf32>
    %343 = tpu.matmul %339, %342, %cst_185 {dimension_numbers = #tpu.dot_dimension_numbers<[1], [0], [0], [1], [0, 0, 1, 1], [], []>} : vector<16x8xf32>, vector<8x16xf32>, vector<16x16xf32> -> vector<16x16xf32>
    %cst_186 = arith.constant 0.353553385 : f32
    %344 = vector.broadcast %cst_186 : f32 to vector<16x16xf32>
    %345 = arith.mulf %343, %344 : vector<16x16xf32>
    %346 = arith.addf %345, %1 : vector<16x16xf32>
    %cst_187 = arith.constant dense<0xFF800000> : vector<16xf32>
    %347 = vector.multi_reduction <maximumf>, %346, %cst_187 [1] : vector<16x16xf32> to vector<16xf32>
    %348 = vector.shape_cast %347 : vector<16xf32> to vector<16x1xf32>
    %349 = vector.broadcast %348 : vector<16x1xf32> to vector<16x16xf32>
    %350 = arith.subf %346, %349 : vector<16x16xf32>
    %351 = math.exp %350 : vector<16x16xf32>
    %cst_188 = arith.constant dense<0.000000e+00> : vector<16xf32>
    %352 = vector.multi_reduction <add>, %351, %cst_188 [1] : vector<16x16xf32> to vector<16xf32>
    %353 = vector.shape_cast %352 : vector<16xf32> to vector<16x1xf32>
    %354 = tpu.reciprocal %353 : vector<16x1xf32> -> vector<16x1xf32>
    %355 = vector.broadcast %354 : vector<16x1xf32> to vector<16x16xf32>
    %356 = arith.mulf %351, %355 : vector<16x16xf32>
    %cst_189 = arith.constant dense<0.000000e+00> : vector<16x8xf32>
    %357 = tpu.matmul %356, %341, %cst_189 {dimension_numbers = #tpu.dot_dimension_numbers<[1], [0], [0], [1], [0, 0, 1, 1], [], []>} : vector<16x16xf32>, vector<16x8xf32>, vector<16x8xf32> -> vector<16x8xf32>
    %c0_190 = arith.constant 0 : index
    %c24_191 = arith.constant 24 : index
    %358 = vector.load %arg17[%c0_190, %c24_191] : memref<16x32xf32, #tpu.memory_space<vmem>>, vector<16x8xf32>
    tpu.vector_store %arg17[%c0_190, %c24_191], %357 {strides = array<i32>} : memref<16x32xf32, #tpu.memory_space<vmem>>, vector<16x8xf32>,
    %c0_192 = arith.constant 0 : index
    %c0_193 = arith.constant 0 : index
    %359 = vector.load %arg17[%c0_192, %c0_193] : memref<16x32xf32, #tpu.memory_space<vmem>>, vector<16x32xf32>
    %360 = arith.truncf %359 : vector<16x32xf32> to vector<16x32xbf16>
    %c1_194 = arith.constant 1 : index
    %c0_195 = arith.constant 0 : index
    %c0_196 = arith.constant 0 : index
    %361 = vector.load %arg4[%c1_194, %c0_195, %c0_196] : memref<2x32x32xbf16, #tpu.memory_space<vmem>>, vector<1x32x32xbf16>
    %362 = vector.shape_cast %361 : vector<1x32x32xbf16> to vector<32x32xbf16>
    %cst_197 = arith.constant dense<0.000000e+00> : vector<16x32xf32>
    %363 = tpu.matmul %360, %362, %cst_197 {dimension_numbers = #tpu.dot_dimension_numbers<[1], [0], [0], [1], [0, 0, 1, 1], [], []>} : vector<16x32xbf16>, vector<32x32xbf16>, vector<16x32xf32> -> vector<16x32xf32>
    %c1_198 = arith.constant 1 : index
    %c0_199 = arith.constant 0 : index
    %c0_200 = arith.constant 0 : index
    %364 = vector.load %arg5[%c1_198, %c0_199, %c0_200] : memref<2x1x32xf32, #tpu.memory_space<vmem>>, vector<1x1x32xf32>
    %365 = vector.shape_cast %364 : vector<1x1x32xf32> to vector<1x32xf32>
    %366 = vector.broadcast %365 : vector<1x32xf32> to vector<16x32xf32>
    %367 = arith.addf %363, %366 : vector<16x32xf32>
    %368 = arith.addf %270, %367 : vector<16x32xf32>
    %cst_201 = arith.constant dense<0.000000e+00> : vector<16xf32>
    %369 = vector.multi_reduction <add>, %368, %cst_201 [1] : vector<16x32xf32> to vector<16xf32>
    %370 = vector.shape_cast %369 : vector<16xf32> to vector<16x1xf32>
    %cst_202 = arith.constant 3.200000e+01 : f32
    %371 = vector.broadcast %cst_202 : f32 to vector<16x1xf32>
    %372 = arith.divf %370, %371 : vector<16x1xf32>
    %373 = vector.broadcast %372 : vector<16x1xf32> to vector<16x32xf32>
    %374 = arith.subf %368, %373 : vector<16x32xf32>
    %375 = arith.mulf %374, %374 : vector<16x32xf32>
    %cst_203 = arith.constant dense<0.000000e+00> : vector<16xf32>
    %376 = vector.multi_reduction <add>, %375, %cst_203 [1] : vector<16x32xf32> to vector<16xf32>
    %377 = vector.shape_cast %376 : vector<16xf32> to vector<16x1xf32>
    %cst_204 = arith.constant 3.200000e+01 : f32
    %378 = vector.broadcast %cst_204 : f32 to vector<16x1xf32>
    %379 = arith.divf %377, %378 : vector<16x1xf32>
    %380 = vector.broadcast %372 : vector<16x1xf32> to vector<16x32xf32>
    %381 = arith.subf %368, %380 : vector<16x32xf32>
    %cst_205 = arith.constant 9.99999974E-6 : f32
    %382 = vector.broadcast %cst_205 : f32 to vector<16x1xf32>
    %383 = arith.addf %379, %382 : vector<16x1xf32>
    %384 = math.rsqrt %383 : vector<16x1xf32>
    %385 = vector.broadcast %384 : vector<16x1xf32> to vector<16x32xf32>
    %386 = arith.mulf %381, %385 : vector<16x32xf32>
    %c1_206 = arith.constant 1 : index
    %c0_207 = arith.constant 0 : index
    %c0_208 = arith.constant 0 : index
    %387 = vector.load %arg6[%c1_206, %c0_207, %c0_208] : memref<2x1x32xf32, #tpu.memory_space<vmem>>, vector<1x1x32xf32>
    %388 = vector.shape_cast %387 : vector<1x1x32xf32> to vector<1x32xf32>
    %389 = vector.broadcast %388 : vector<1x32xf32> to vector<16x32xf32>
    %390 = arith.mulf %386, %389 : vector<16x32xf32>
    %c1_209 = arith.constant 1 : index
    %c0_210 = arith.constant 0 : index
    %c0_211 = arith.constant 0 : index
    %391 = vector.load %arg7[%c1_209, %c0_210, %c0_211] : memref<2x1x32xf32, #tpu.memory_space<vmem>>, vector<1x1x32xf32>
    %392 = vector.shape_cast %391 : vector<1x1x32xf32> to vector<1x32xf32>
    %393 = vector.broadcast %392 : vector<1x32xf32> to vector<16x32xf32>
    %394 = arith.addf %390, %393 : vector<16x32xf32>
    %395 = arith.truncf %394 : vector<16x32xf32> to vector<16x32xbf16>
    %cst_212 = arith.constant 0.000000e+00 : f32
    %396 = vector.broadcast %cst_212 : f32 to vector<16x32xf32>
    %c1_213 = arith.constant 1 : index
    %c0_214 = arith.constant 0 : index
    %c0_215 = arith.constant 0 : index
    %397 = vector.load %arg8[%c1_213, %c0_214, %c0_215] : memref<2x32x2048xbf16, #tpu.memory_space<vmem>>, vector<1x32x256xbf16>
    %398 = vector.shape_cast %397 : vector<1x32x256xbf16> to vector<32x256xbf16>
    %cst_216 = arith.constant dense<0.000000e+00> : vector<16x256xf32>
    %399 = tpu.matmul %395, %398, %cst_216 {dimension_numbers = #tpu.dot_dimension_numbers<[1], [0], [0], [1], [0, 0, 1, 1], [], []>} : vector<16x32xbf16>, vector<32x256xbf16>, vector<16x256xf32> -> vector<16x256xf32>
    %c1_217 = arith.constant 1 : index
    %c0_218 = arith.constant 0 : index
    %c0_219 = arith.constant 0 : index
    %400 = vector.load %arg9[%c1_217, %c0_218, %c0_219] : memref<2x1x2048xf32, #tpu.memory_space<vmem>>, vector<1x1x256xf32>
    %401 = vector.shape_cast %400 : vector<1x1x256xf32> to vector<1x256xf32>
    %402 = vector.broadcast %401 : vector<1x256xf32> to vector<16x256xf32>
    %403 = arith.addf %399, %402 : vector<16x256xf32>
    %cst_220 = arith.constant 0.000000e+00 : f32
    %404 = vector.broadcast %cst_220 : f32 to vector<16x256xf32>
    %405 = arith.maximumf %403, %404 : vector<16x256xf32>
    %406 = arith.truncf %405 : vector<16x256xf32> to vector<16x256xbf16>
    %c1_221 = arith.constant 1 : index
    %c0_222 = arith.constant 0 : index
    %c0_223 = arith.constant 0 : index
    %407 = vector.load %arg10[%c1_221, %c0_222, %c0_223] : memref<2x2048x32xbf16, #tpu.memory_space<vmem>>, vector<1x256x32xbf16>
    %408 = vector.shape_cast %407 : vector<1x256x32xbf16> to vector<256x32xbf16>
    %cst_224 = arith.constant dense<0.000000e+00> : vector<16x32xf32>
    %409 = tpu.matmul %406, %408, %cst_224 {dimension_numbers = #tpu.dot_dimension_numbers<[1], [0], [0], [1], [0, 0, 1, 1], [], []>} : vector<16x256xbf16>, vector<256x32xbf16>, vector<16x32xf32> -> vector<16x32xf32>
    %410 = arith.addf %396, %409 : vector<16x32xf32>
    %c1_225 = arith.constant 1 : index
    %c0_226 = arith.constant 0 : index
    %c256_227 = arith.constant 256 : index
    %411 = vector.load %arg8[%c1_225, %c0_226, %c256_227] : memref<2x32x2048xbf16, #tpu.memory_space<vmem>>, vector<1x32x256xbf16>
    %412 = vector.shape_cast %411 : vector<1x32x256xbf16> to vector<32x256xbf16>
    %cst_228 = arith.constant dense<0.000000e+00> : vector<16x256xf32>
    %413 = tpu.matmul %395, %412, %cst_228 {dimension_numbers = #tpu.dot_dimension_numbers<[1], [0], [0], [1], [0, 0, 1, 1], [], []>} : vector<16x32xbf16>, vector<32x256xbf16>, vector<16x256xf32> -> vector<16x256xf32>
    %c1_229 = arith.constant 1 : index
    %c0_230 = arith.constant 0 : index
    %c256_231 = arith.constant 256 : index
    %414 = vector.load %arg9[%c1_229, %c0_230, %c256_231] : memref<2x1x2048xf32, #tpu.memory_space<vmem>>, vector<1x1x256xf32>
    %415 = vector.shape_cast %414 : vector<1x1x256xf32> to vector<1x256xf32>
    %416 = vector.broadcast %415 : vector<1x256xf32> to vector<16x256xf32>
    %417 = arith.addf %413, %416 : vector<16x256xf32>
    %cst_232 = arith.constant 0.000000e+00 : f32
    %418 = vector.broadcast %cst_232 : f32 to vector<16x256xf32>
    %419 = arith.maximumf %417, %418 : vector<16x256xf32>
    %420 = arith.truncf %419 : vector<16x256xf32> to vector<16x256xbf16>
    %c1_233 = arith.constant 1 : index
    %c256_234 = arith.constant 256 : index
    %c0_235 = arith.constant 0 : index
    %421 = vector.load %arg10[%c1_233, %c256_234, %c0_235] : memref<2x2048x32xbf16, #tpu.memory_space<vmem>>, vector<1x256x32xbf16>
    %422 = vector.shape_cast %421 : vector<1x256x32xbf16> to vector<256x32xbf16>
    %cst_236 = arith.constant dense<0.000000e+00> : vector<16x32xf32>
    %423 = tpu.matmul %420, %422, %cst_236 {dimension_numbers = #tpu.dot_dimension_numbers<[1], [0], [0], [1], [0, 0, 1, 1], [], []>} : vector<16x256xbf16>, vector<256x32xbf16>, vector<16x32xf32> -> vector<16x32xf32>
    %424 = arith.addf %410, %423 : vector<16x32xf32>
    %c1_237 = arith.constant 1 : index
    %c0_238 = arith.constant 0 : index
    %c512_239 = arith.constant 512 : index
    %425 = vector.load %arg8[%c1_237, %c0_238, %c512_239] : memref<2x32x2048xbf16, #tpu.memory_space<vmem>>, vector<1x32x256xbf16>
    %426 = vector.shape_cast %425 : vector<1x32x256xbf16> to vector<32x256xbf16>
    %cst_240 = arith.constant dense<0.000000e+00> : vector<16x256xf32>
    %427 = tpu.matmul %395, %426, %cst_240 {dimension_numbers = #tpu.dot_dimension_numbers<[1], [0], [0], [1], [0, 0, 1, 1], [], []>} : vector<16x32xbf16>, vector<32x256xbf16>, vector<16x256xf32> -> vector<16x256xf32>
    %c1_241 = arith.constant 1 : index
    %c0_242 = arith.constant 0 : index
    %c512_243 = arith.constant 512 : index
    %428 = vector.load %arg9[%c1_241, %c0_242, %c512_243] : memref<2x1x2048xf32, #tpu.memory_space<vmem>>, vector<1x1x256xf32>
    %429 = vector.shape_cast %428 : vector<1x1x256xf32> to vector<1x256xf32>
    %430 = vector.broadcast %429 : vector<1x256xf32> to vector<16x256xf32>
    %431 = arith.addf %427, %430 : vector<16x256xf32>
    %cst_244 = arith.constant 0.000000e+00 : f32
    %432 = vector.broadcast %cst_244 : f32 to vector<16x256xf32>
    %433 = arith.maximumf %431, %432 : vector<16x256xf32>
    %434 = arith.truncf %433 : vector<16x256xf32> to vector<16x256xbf16>
    %c1_245 = arith.constant 1 : index
    %c512_246 = arith.constant 512 : index
    %c0_247 = arith.constant 0 : index
    %435 = vector.load %arg10[%c1_245, %c512_246, %c0_247] : memref<2x2048x32xbf16, #tpu.memory_space<vmem>>, vector<1x256x32xbf16>
    %436 = vector.shape_cast %435 : vector<1x256x32xbf16> to vector<256x32xbf16>
    %cst_248 = arith.constant dense<0.000000e+00> : vector<16x32xf32>
    %437 = tpu.matmul %434, %436, %cst_248 {dimension_numbers = #tpu.dot_dimension_numbers<[1], [0], [0], [1], [0, 0, 1, 1], [], []>} : vector<16x256xbf16>, vector<256x32xbf16>, vector<16x32xf32> -> vector<16x32xf32>
    %438 = arith.addf %424, %437 : vector<16x32xf32>
    %c1_249 = arith.constant 1 : index
    %c0_250 = arith.constant 0 : index
    %c768_251 = arith.constant 768 : index
    %439 = vector.load %arg8[%c1_249, %c0_250, %c768_251] : memref<2x32x2048xbf16, #tpu.memory_space<vmem>>, vector<1x32x256xbf16>
    %440 = vector.shape_cast %439 : vector<1x32x256xbf16> to vector<32x256xbf16>
    %cst_252 = arith.constant dense<0.000000e+00> : vector<16x256xf32>
    %441 = tpu.matmul %395, %440, %cst_252 {dimension_numbers = #tpu.dot_dimension_numbers<[1], [0], [0], [1], [0, 0, 1, 1], [], []>} : vector<16x32xbf16>, vector<32x256xbf16>, vector<16x256xf32> -> vector<16x256xf32>
    %c1_253 = arith.constant 1 : index
    %c0_254 = arith.constant 0 : index
    %c768_255 = arith.constant 768 : index
    %442 = vector.load %arg9[%c1_253, %c0_254, %c768_255] : memref<2x1x2048xf32, #tpu.memory_space<vmem>>, vector<1x1x256xf32>
    %443 = vector.shape_cast %442 : vector<1x1x256xf32> to vector<1x256xf32>
    %444 = vector.broadcast %443 : vector<1x256xf32> to vector<16x256xf32>
    %445 = arith.addf %441, %444 : vector<16x256xf32>
    %cst_256 = arith.constant 0.000000e+00 : f32
    %446 = vector.broadcast %cst_256 : f32 to vector<16x256xf32>
    %447 = arith.maximumf %445, %446 : vector<16x256xf32>
    %448 = arith.truncf %447 : vector<16x256xf32> to vector<16x256xbf16>
    %c1_257 = arith.constant 1 : index
    %c768_258 = arith.constant 768 : index
    %c0_259 = arith.constant 0 : index
    %449 = vector.load %arg10[%c1_257, %c768_258, %c0_259] : memref<2x2048x32xbf16, #tpu.memory_space<vmem>>, vector<1x256x32xbf16>
    %450 = vector.shape_cast %449 : vector<1x256x32xbf16> to vector<256x32xbf16>
    %cst_260 = arith.constant dense<0.000000e+00> : vector<16x32xf32>
    %451 = tpu.matmul %448, %450, %cst_260 {dimension_numbers = #tpu.dot_dimension_numbers<[1], [0], [0], [1], [0, 0, 1, 1], [], []>} : vector<16x256xbf16>, vector<256x32xbf16>, vector<16x32xf32> -> vector<16x32xf32>
    %452 = arith.addf %438, %451 : vector<16x32xf32>
    %c1_261 = arith.constant 1 : index
    %c0_262 = arith.constant 0 : index
    %c1024_263 = arith.constant 1024 : index
    %453 = vector.load %arg8[%c1_261, %c0_262, %c1024_263] : memref<2x32x2048xbf16, #tpu.memory_space<vmem>>, vector<1x32x256xbf16>
    %454 = vector.shape_cast %453 : vector<1x32x256xbf16> to vector<32x256xbf16>
    %cst_264 = arith.constant dense<0.000000e+00> : vector<16x256xf32>
    %455 = tpu.matmul %395, %454, %cst_264 {dimension_numbers = #tpu.dot_dimension_numbers<[1], [0], [0], [1], [0, 0, 1, 1], [], []>} : vector<16x32xbf16>, vector<32x256xbf16>, vector<16x256xf32> -> vector<16x256xf32>
    %c1_265 = arith.constant 1 : index
    %c0_266 = arith.constant 0 : index
    %c1024_267 = arith.constant 1024 : index
    %456 = vector.load %arg9[%c1_265, %c0_266, %c1024_267] : memref<2x1x2048xf32, #tpu.memory_space<vmem>>, vector<1x1x256xf32>
    %457 = vector.shape_cast %456 : vector<1x1x256xf32> to vector<1x256xf32>
    %458 = vector.broadcast %457 : vector<1x256xf32> to vector<16x256xf32>
    %459 = arith.addf %455, %458 : vector<16x256xf32>
    %cst_268 = arith.constant 0.000000e+00 : f32
    %460 = vector.broadcast %cst_268 : f32 to vector<16x256xf32>
    %461 = arith.maximumf %459, %460 : vector<16x256xf32>
    %462 = arith.truncf %461 : vector<16x256xf32> to vector<16x256xbf16>
    %c1_269 = arith.constant 1 : index
    %c1024_270 = arith.constant 1024 : index
    %c0_271 = arith.constant 0 : index
    %463 = vector.load %arg10[%c1_269, %c1024_270, %c0_271] : memref<2x2048x32xbf16, #tpu.memory_space<vmem>>, vector<1x256x32xbf16>
    %464 = vector.shape_cast %463 : vector<1x256x32xbf16> to vector<256x32xbf16>
    %cst_272 = arith.constant dense<0.000000e+00> : vector<16x32xf32>
    %465 = tpu.matmul %462, %464, %cst_272 {dimension_numbers = #tpu.dot_dimension_numbers<[1], [0], [0], [1], [0, 0, 1, 1], [], []>} : vector<16x256xbf16>, vector<256x32xbf16>, vector<16x32xf32> -> vector<16x32xf32>
    %466 = arith.addf %452, %465 : vector<16x32xf32>
    %c1_273 = arith.constant 1 : index
    %c0_274 = arith.constant 0 : index
    %c1280_275 = arith.constant 1280 : index
    %467 = vector.load %arg8[%c1_273, %c0_274, %c1280_275] : memref<2x32x2048xbf16, #tpu.memory_space<vmem>>, vector<1x32x256xbf16>
    %468 = vector.shape_cast %467 : vector<1x32x256xbf16> to vector<32x256xbf16>
    %cst_276 = arith.constant dense<0.000000e+00> : vector<16x256xf32>
    %469 = tpu.matmul %395, %468, %cst_276 {dimension_numbers = #tpu.dot_dimension_numbers<[1], [0], [0], [1], [0, 0, 1, 1], [], []>} : vector<16x32xbf16>, vector<32x256xbf16>, vector<16x256xf32> -> vector<16x256xf32>
    %c1_277 = arith.constant 1 : index
    %c0_278 = arith.constant 0 : index
    %c1280_279 = arith.constant 1280 : index
    %470 = vector.load %arg9[%c1_277, %c0_278, %c1280_279] : memref<2x1x2048xf32, #tpu.memory_space<vmem>>, vector<1x1x256xf32>
    %471 = vector.shape_cast %470 : vector<1x1x256xf32> to vector<1x256xf32>
    %472 = vector.broadcast %471 : vector<1x256xf32> to vector<16x256xf32>
    %473 = arith.addf %469, %472 : vector<16x256xf32>
    %cst_280 = arith.constant 0.000000e+00 : f32
    %474 = vector.broadcast %cst_280 : f32 to vector<16x256xf32>
    %475 = arith.maximumf %473, %474 : vector<16x256xf32>
    %476 = arith.truncf %475 : vector<16x256xf32> to vector<16x256xbf16>
    %c1_281 = arith.constant 1 : index
    %c1280_282 = arith.constant 1280 : index
    %c0_283 = arith.constant 0 : index
    %477 = vector.load %arg10[%c1_281, %c1280_282, %c0_283] : memref<2x2048x32xbf16, #tpu.memory_space<vmem>>, vector<1x256x32xbf16>
    %478 = vector.shape_cast %477 : vector<1x256x32xbf16> to vector<256x32xbf16>
    %cst_284 = arith.constant dense<0.000000e+00> : vector<16x32xf32>
    %479 = tpu.matmul %476, %478, %cst_284 {dimension_numbers = #tpu.dot_dimension_numbers<[1], [0], [0], [1], [0, 0, 1, 1], [], []>} : vector<16x256xbf16>, vector<256x32xbf16>, vector<16x32xf32> -> vector<16x32xf32>
    %480 = arith.addf %466, %479 : vector<16x32xf32>
    %c1_285 = arith.constant 1 : index
    %c0_286 = arith.constant 0 : index
    %c1536_287 = arith.constant 1536 : index
    %481 = vector.load %arg8[%c1_285, %c0_286, %c1536_287] : memref<2x32x2048xbf16, #tpu.memory_space<vmem>>, vector<1x32x256xbf16>
    %482 = vector.shape_cast %481 : vector<1x32x256xbf16> to vector<32x256xbf16>
    %cst_288 = arith.constant dense<0.000000e+00> : vector<16x256xf32>
    %483 = tpu.matmul %395, %482, %cst_288 {dimension_numbers = #tpu.dot_dimension_numbers<[1], [0], [0], [1], [0, 0, 1, 1], [], []>} : vector<16x32xbf16>, vector<32x256xbf16>, vector<16x256xf32> -> vector<16x256xf32>
    %c1_289 = arith.constant 1 : index
    %c0_290 = arith.constant 0 : index
    %c1536_291 = arith.constant 1536 : index
    %484 = vector.load %arg9[%c1_289, %c0_290, %c1536_291] : memref<2x1x2048xf32, #tpu.memory_space<vmem>>, vector<1x1x256xf32>
    %485 = vector.shape_cast %484 : vector<1x1x256xf32> to vector<1x256xf32>
    %486 = vector.broadcast %485 : vector<1x256xf32> to vector<16x256xf32>
    %487 = arith.addf %483, %486 : vector<16x256xf32>
    %cst_292 = arith.constant 0.000000e+00 : f32
    %488 = vector.broadcast %cst_292 : f32 to vector<16x256xf32>
    %489 = arith.maximumf %487, %488 : vector<16x256xf32>
    %490 = arith.truncf %489 : vector<16x256xf32> to vector<16x256xbf16>
    %c1_293 = arith.constant 1 : index
    %c1536_294 = arith.constant 1536 : index
    %c0_295 = arith.constant 0 : index
    %491 = vector.load %arg10[%c1_293, %c1536_294, %c0_295] : memref<2x2048x32xbf16, #tpu.memory_space<vmem>>, vector<1x256x32xbf16>
    %492 = vector.shape_cast %491 : vector<1x256x32xbf16> to vector<256x32xbf16>
    %cst_296 = arith.constant dense<0.000000e+00> : vector<16x32xf32>
    %493 = tpu.matmul %490, %492, %cst_296 {dimension_numbers = #tpu.dot_dimension_numbers<[1], [0], [0], [1], [0, 0, 1, 1], [], []>} : vector<16x256xbf16>, vector<256x32xbf16>, vector<16x32xf32> -> vector<16x32xf32>
    %494 = arith.addf %480, %493 : vector<16x32xf32>
    %c1_297 = arith.constant 1 : index
    %c0_298 = arith.constant 0 : index
    %c1792_299 = arith.constant 1792 : index
    %495 = vector.load %arg8[%c1_297, %c0_298, %c1792_299] : memref<2x32x2048xbf16, #tpu.memory_space<vmem>>, vector<1x32x256xbf16>
    %496 = vector.shape_cast %495 : vector<1x32x256xbf16> to vector<32x256xbf16>
    %cst_300 = arith.constant dense<0.000000e+00> : vector<16x256xf32>
    %497 = tpu.matmul %395, %496, %cst_300 {dimension_numbers = #tpu.dot_dimension_numbers<[1], [0], [0], [1], [0, 0, 1, 1], [], []>} : vector<16x32xbf16>, vector<32x256xbf16>, vector<16x256xf32> -> vector<16x256xf32>
    %c1_301 = arith.constant 1 : index
    %c0_302 = arith.constant 0 : index
    %c1792_303 = arith.constant 1792 : index
    %498 = vector.load %arg9[%c1_301, %c0_302, %c1792_303] : memref<2x1x2048xf32, #tpu.memory_space<vmem>>, vector<1x1x256xf32>
    %499 = vector.shape_cast %498 : vector<1x1x256xf32> to vector<1x256xf32>
    %500 = vector.broadcast %499 : vector<1x256xf32> to vector<16x256xf32>
    %501 = arith.addf %497, %500 : vector<16x256xf32>
    %cst_304 = arith.constant 0.000000e+00 : f32
    %502 = vector.broadcast %cst_304 : f32 to vector<16x256xf32>
    %503 = arith.maximumf %501, %502 : vector<16x256xf32>
    %504 = arith.truncf %503 : vector<16x256xf32> to vector<16x256xbf16>
    %c1_305 = arith.constant 1 : index
    %c1792_306 = arith.constant 1792 : index
    %c0_307 = arith.constant 0 : index
    %505 = vector.load %arg10[%c1_305, %c1792_306, %c0_307] : memref<2x2048x32xbf16, #tpu.memory_space<vmem>>, vector<1x256x32xbf16>
    %506 = vector.shape_cast %505 : vector<1x256x32xbf16> to vector<256x32xbf16>
    %cst_308 = arith.constant dense<0.000000e+00> : vector<16x32xf32>
    %507 = tpu.matmul %504, %506, %cst_308 {dimension_numbers = #tpu.dot_dimension_numbers<[1], [0], [0], [1], [0, 0, 1, 1], [], []>} : vector<16x256xbf16>, vector<256x32xbf16>, vector<16x32xf32> -> vector<16x32xf32>
    %508 = arith.addf %494, %507 : vector<16x32xf32>
    %c1_309 = arith.constant 1 : index
    %c0_310 = arith.constant 0 : index
    %c0_311 = arith.constant 0 : index
    %509 = vector.load %arg11[%c1_309, %c0_310, %c0_311] : memref<2x1x32xf32, #tpu.memory_space<vmem>>, vector<1x1x32xf32>
    %510 = vector.shape_cast %509 : vector<1x1x32xf32> to vector<1x32xf32>
    %511 = vector.broadcast %510 : vector<1x32xf32> to vector<16x32xf32>
    %512 = arith.addf %508, %511 : vector<16x32xf32>
    %513 = arith.addf %394, %512 : vector<16x32xf32>
    %cst_312 = arith.constant dense<0.000000e+00> : vector<16xf32>
    %514 = vector.multi_reduction <add>, %513, %cst_312 [1] : vector<16x32xf32> to vector<16xf32>
    %515 = vector.shape_cast %514 : vector<16xf32> to vector<16x1xf32>
    %cst_313 = arith.constant 3.200000e+01 : f32
    %516 = vector.broadcast %cst_313 : f32 to vector<16x1xf32>
    %517 = arith.divf %515, %516 : vector<16x1xf32>
    %518 = vector.broadcast %517 : vector<16x1xf32> to vector<16x32xf32>
    %519 = arith.subf %513, %518 : vector<16x32xf32>
    %520 = arith.mulf %519, %519 : vector<16x32xf32>
    %cst_314 = arith.constant dense<0.000000e+00> : vector<16xf32>
    %521 = vector.multi_reduction <add>, %520, %cst_314 [1] : vector<16x32xf32> to vector<16xf32>
    %522 = vector.shape_cast %521 : vector<16xf32> to vector<16x1xf32>
    %cst_315 = arith.constant 3.200000e+01 : f32
    %523 = vector.broadcast %cst_315 : f32 to vector<16x1xf32>
    %524 = arith.divf %522, %523 : vector<16x1xf32>
    %525 = vector.broadcast %517 : vector<16x1xf32> to vector<16x32xf32>
    %526 = arith.subf %513, %525 : vector<16x32xf32>
    %cst_316 = arith.constant 9.99999974E-6 : f32
    %527 = vector.broadcast %cst_316 : f32 to vector<16x1xf32>
    %528 = arith.addf %524, %527 : vector<16x1xf32>
    %529 = math.rsqrt %528 : vector<16x1xf32>
    %530 = vector.broadcast %529 : vector<16x1xf32> to vector<16x32xf32>
    %531 = arith.mulf %526, %530 : vector<16x32xf32>
    %c1_317 = arith.constant 1 : index
    %c0_318 = arith.constant 0 : index
    %c0_319 = arith.constant 0 : index
    %532 = vector.load %arg12[%c1_317, %c0_318, %c0_319] : memref<2x1x32xf32, #tpu.memory_space<vmem>>, vector<1x1x32xf32>
    %533 = vector.shape_cast %532 : vector<1x1x32xf32> to vector<1x32xf32>
    %534 = vector.broadcast %533 : vector<1x32xf32> to vector<16x32xf32>
    %535 = arith.mulf %531, %534 : vector<16x32xf32>
    %c1_320 = arith.constant 1 : index
    %c0_321 = arith.constant 0 : index
    %c0_322 = arith.constant 0 : index
    %536 = vector.load %arg13[%c1_320, %c0_321, %c0_322] : memref<2x1x32xf32, #tpu.memory_space<vmem>>, vector<1x1x32xf32>
    %537 = vector.shape_cast %536 : vector<1x1x32xf32> to vector<1x32xf32>
    %538 = vector.broadcast %537 : vector<1x32xf32> to vector<16x32xf32>
    %539 = arith.addf %535, %538 : vector<16x32xf32>
    %540 = vector.extract_strided_slice %539 {offsets = [8, 0], sizes = [1, 32], strides = [1, 1]} : vector<16x32xf32> to vector<1x32xf32>
    %541 = arith.truncf %540 : vector<1x32xf32> to vector<1x32xbf16>
    %c0_323 = arith.constant 0 : index
    %c0_324 = arith.constant 0 : index
    %542 = vector.load %arg14[%c0_323, %c0_324] : memref<32x128xbf16, #tpu.memory_space<vmem>>, vector<32x128xbf16>
    %cst_325 = arith.constant dense<0.000000e+00> : vector<1x128xf32>
    %543 = tpu.matmul %541, %542, %cst_325 {dimension_numbers = #tpu.dot_dimension_numbers<[1], [0], [0], [1], [0, 0, 1, 1], [], []>} : vector<1x32xbf16>, vector<32x128xbf16>, vector<1x128xf32> -> vector<1x128xf32>
    %c0_326 = arith.constant 0 : index
    %c0_327 = arith.constant 0 : index
    %544 = vector.load %arg15[%c0_326, %c0_327] : memref<1x128xf32, #tpu.memory_space<vmem>>, vector<1x128xf32>
    %545 = arith.addf %543, %544 : vector<1x128xf32>
    %c0_328 = arith.constant 0 : index
    %c0_329 = arith.constant 0 : index
    %546 = vector.load %arg16[%c0_328, %c0_329] : memref<1x128xf32, #tpu.memory_space<vmem>>, vector<1x128xf32>
    tpu.vector_store %arg16[%c0_328, %c0_329], %545 {strides = array<i32>} : memref<1x128xf32, #tpu.memory_space<vmem>>, vector<1x128xf32>,
    return
  }
}

</mosaic_0001>

<bundles_post_ra>
// kernel: actor_critic_forward.1
= control target key start
LH: loop header
LB: loop body
LE: loop exit
PB: predicated region body
PF: predicated region fallthrough
CT: control target
= control target key end

     0   :  { %vm79_vm0 = vcmask 261120   ;;  %s7293_s17 = smov 88   ;;  %s7295_s18 = smov 120   ;;  %vm103_vm1 = vcmask 64512   ;;  %vm139_vm2 = vcmask 130048   ;;  %s9150_s2 = inlined_call_operand.vmem [shape: bf16[2,32,128], index: 2, kind: input, shape index: {}]   ;;  %s9151_s0 = inlined_call_operand.vmem [shape: f32[16,32], index: 0, kind: input, shape index: {}]   ;;  %s9152_s3 = inlined_call_operand.vmem [shape: f32[2,1,128], index: 3, kind: input, shape index: {}]   ;;  %s9153_s1 = inlined_call_operand.vmem [shape: f32[16,16], index: 1, kind: input, shape index: {}]   ;;  %s9154_s5 = inlined_call_operand.vmem [shape: f32[2,1,32], index: 5, kind: input, shape index: {}]   ;;  %s9155_s4 = inlined_call_operand.vmem [shape: bf16[2,32,32], index: 4, kind: input, shape index: {}]   ;;  %s9156_s6 = inlined_call_operand.vmem [shape: f32[2,1,32], index: 6, kind: input, shape index: {}]   ;;  %s9157_s7 = inlined_call_operand.vmem [shape: f32[2,1,32], index: 7, kind: input, shape index: {}]   ;;  %s9158_s8 = inlined_call_operand.vmem [shape: bf16[2,32,2048], index: 8, kind: input, shape index: {}]   ;;  %s9159_s10 = inlined_call_operand.vmem [shape: bf16[2,2048,32], index: 10, kind: input, shape index: {}]   ;;  %s9160_s9 = inlined_call_operand.vmem [shape: f32[2,1,2048], index: 9, kind: input, shape index: {}]   ;;  %s9161_s11 = inlined_call_operand.vmem [shape: f32[2,1,32], index: 11, kind: input, shape index: {}]   ;;  %s9162_s12 = inlined_call_operand.vmem [shape: f32[2,1,32], index: 12, kind: input, shape index: {}]   ;;  %s9163_s13 = inlined_call_operand.vmem [shape: f32[2,1,32], index: 13, kind: input, shape index: {}]   ;;  %s9164_s14 = inlined_call_operand.vmem [shape: bf16[32,128], index: 14, kind: input, shape index: {}]   ;;  %s9165_s15 = inlined_call_operand.vmem [shape: f32[1,128], index: 15, kind: input, shape index: {}]   ;;  %s9166_s16 = inlined_call_operand.vmem [shape: f32[1,128], index: 16, kind: output, shape index: {}]  }
   0x1   :  { %9184 = sst [smem:[#allocation3_spill]] %s9150_s2  ;;  %v7402_v2 = vld [vmem:[%s9151_s0] sm:$0xff]  ;;  %v7407_v3 = vld [vmem:[%s9151_s0 + $0x8] sm:$0xff]  ;;  %s7294_s0 = smov 96  }
   0x2   :  { %s9185_s23 = sld [smem:[#allocation3_spill]]  ;;  %v58_v4 = vpack.c.bf16 %v7407_v3, %v7402_v2  ;;  %v7197_v5 = vld [vmem:[%s9152_s3] ss:$0 sm:$0xff]  ;;  %s9180_s19 = smov 72   ;;  %v7450_v26 = vld [vmem:[%s9153_s1 + $0x8] sm:$0xff] }
   0x3   :  { %s9177_s20 = smov 64   ;;  %s7298_s21 = smov 80   ;;  %v7443_v21 = vld [vmem:[%s9153_s1] sm:$0xff] }
   0x4   :  { %s9182_s22 = smov 112   ;;  %s9178_s28 = smov 104  }
   0x5   :  { %s9171_s29 = smov 56   ;;  %s9170_s30 = smov 40  }
   0x6   :  { %s9176_s2 = smov 48   ;;  %s9168_s24 = smov 8  }
   0x7   :  { %s9174_s25 = smov 16   ;;  %s9172_s26 = smov 24  }
   0x8   :  { %v6811_v0 = vld [vmem:[%s9185_s23 + $0x8] sm:$0xff]  ;;  %v6810_v1 = vld [vmem:[%s9185_s23] sm:$0xff]  ;;  %s9194_s27 = smov 40  }
   0x9   :  { %89 = vmatpush.bf16.msra.mxu3 %v6811_v0 }
   0xd   :  { %90 = vmatpush.bf16.msra.mxu3 %v6810_v1 }
  0x10   :  { %5102 = vmatmul.msk.bf16.vlgmr.msra.gmra.mxu3 %vm79_vm0, %v58_v4 }
  0x93   :  { %v92_v6 = vpop.f32.mrf.mxu3 }
  0x94   :  { %v93_v7 = vadd.f32 %v7197_v5, %v92_v6 }
  0x96   :  { %229 = vrot.lane.b32.xlu2 %v93_v7, %s7293_s17 }
  0x9b   :  { %v94_v8 = vpop.f32.mrf.mxu3 }
  0x9c   :  { %v7416_v9 = vadd.f32 %v7197_v5, %v94_v8 }
  0x9e   :  { %101 = vrot.lane.b32.xlu0 %v7416_v9, %s7294_s0  ;;  %v7427_v10 = vpack.i.bf16 %v93_v7, %v7416_v9 }
  0xa6   :  { %99 = vrot.lane.b32.xlu0 %v93_v7, %s7294_s0 }
  0xae   :  { %225 = vrot.lane.b32.xlu0 %v93_v7, %s7295_s18 }
  0xb6   :  { %227 = vrot.lane.b32.xlu0 %v7416_v9, %s7295_s18 }
  0xbe   :  { %505 = vrot.lane.b32.xlu0 %v7416_v9, %s9180_s19 }
  0xc6   :  { %7158 = vrot.lane.b32.xlu0 %v7427_v10, %s9177_s20 }
  0xce   :  { %368 = vrot.lane.b32.xlu0 %v7416_v9, %s7298_s21 }
  0xd6   :  { %362 = vrot.lane.b32.xlu0 %v93_v7, %s9182_s22 }
  0xf0   :  { %v230_v36 = vpop.permute.xlu2 %229 }
 0x110   :  { %v102_v11 = vpop.permute.xlu0 %101 }
 0x111   :  { %5103 = vmatpush.xpose.msk.msra.mxu1 %vm103_vm1, %v102_v11 }
 0x118   :  { %v100_v12 = vpop.permute.xlu0 %99 }
 0x119   :  { %5104 = vmatpush.xpose.msk.msra.mxu1 %vm103_vm1, %v100_v12 }
 0x11c   :  { %5105 = vmatmul.msk.f32.vlgmr.msra.gmra.mxu1 %vm103_vm1, %v93_v7 }
 0x120   :  { %v226_v13 = vpop.permute.xlu0 %225 }
 0x124   :  { %5106 = vmatmul.msk.f32.gmra.mxu1 %vm103_vm1, %v7416_v9 }
 0x128   :  { %v228_v14 = vpop.permute.xlu0 %227 }
 0x130   :  { %v506_v15 = vpop.permute.xlu0 %505 }
 0x138   :  { %v7159_v16 = vpop.permute.xlu0 %7158 }
 0x139   :  { %v7160_v17 = vunpack.i.l.bf16 %v7159_v16  ;;  %v7161_v18 = vunpack.i.h.bf16 %v7159_v16 }
 0x13b   :  { %214 = vmatpush.msra.mxu0 %v7160_v17  ;;  %7140 = vmatpush.msra.mxu2 %v7160_v17 }
 0x13d   :  { %215 = vmatpush.msra.mxu0 %v7161_v18  ;;  %7141 = vmatpush.msra.mxu2 %v7161_v18 }
 0x140   :  { %v369_v19 = vpop.permute.xlu0 %368 }
 0x141   :  { %5115 = vmatpush.xpose.msk.msrb.mxu0 %vm103_vm1, %v369_v19 }
 0x148   :  { %v363_v53 = vpop.permute.xlu0 %362 }
 0x199   :  { %v129_v20 = vpop.f32.mrf.mxu1 }
 0x19a   :  { %v135_v22 = vmul.f32 0.35355338, %v129_v20 }
 0x19c   :  { %v137_v23 = vadd.f32 %v135_v22, %v7443_v21 }
 0x19e   :  { %v140_v24 = vsel %vm139_vm2, %v137_v23, -inf }
 0x19f   :  { %141 = vmax.xlane.f32.xlu1 %v140_v24 }
 0x1a1   :  { %v132_v25 = vpop.f32.mrf.mxu1 }
 0x1a2   :  { %v136_v27 = vmul.f32 0.35355338, %v132_v25 }
 0x1a4   :  { %v7453_v28 = vadd.f32 %v136_v27, %v7450_v26 }
 0x1a6   :  { %v143_v29 = vsel %vm139_vm2, %v7453_v28, -inf }
 0x1a7   :  { %144 = vmax.xlane.f32.xlu0 %v143_v29 }
 0x1b8   :  { %231 = vrot.lane.b32.xlu1 %v7416_v9, %s7293_s17 }
 0x1c0   :  { %503 = vrot.lane.b32.xlu1 %v93_v7, %s9180_s19 }
 0x1c8   :  { %499 = vrot.lane.b32.xlu1 %v93_v7, %s9178_s28 }
 0x1d0   :  { %366 = vrot.lane.b32.xlu1 %v93_v7, %s7298_s21 }
 0x1d8   :  { %364 = vrot.lane.b32.xlu1 %v7416_v9, %s9182_s22 }
 0x212   :  { %v142_v30 = vpop.xlane.xlu1 %141 }
 0x213   :  { %v146_v31 = vsub.f32 %v137_v23, %v142_v30 }
 0x215   :  { %v148_v32 = vmul.f32 1.442695, %v146_v31 }
 0x217   :  { %7211 = vpow2.f32 %v148_v32 }
 0x21a   :  { %v145_v11 = vpop.xlane.xlu0 %144 }
 0x21b   :  { %v147_v12 = vsub.f32 %v7453_v28, %v145_v11 }
 0x21d   :  { %v7212_v33 = vpop.eup %7211 }
 0x21e   :  { %v152_v34 = vsel %vm139_vm2, %v7212_v33, 0.0 }
 0x21f   :  { %153 = vadd.xlane.f32.xlu2 %v152_v34 }
 0x22a   :  { %v232_v35 = vpop.permute.xlu1 %231 }
 0x22b   :  { %5109 = vmatpush.xpose.msk.msrb.mxu3 %vm103_vm1, %v232_v35 }
 0x22f   :  { %5110 = vmatpush.xpose.msk.msrb.mxu3 %vm103_vm1, %v230_v36 }
 0x232   :  { %v504_v37 = vpop.permute.xlu1 %503  ;;  %5111 = vmatmul.msk.f32.vlgmr.msrb.gmra.mxu3 %vm103_vm1, %v226_v13  ;;  %v150_v13 = vmul.f32 1.442695, %v147_v12 }
 0x233   :  { %5121 = vmatpush.xpose.msk.msra.mxu3 %vm103_vm1, %v506_v15 }
 0x237   :  { %5122 = vmatpush.xpose.msk.msra.mxu3 %vm103_vm1, %v504_v37  ;;  %501 = vrot.lane.b32.xlu2 %v7416_v9, %s9178_s28  ;;  %s9189_s28 = smov 72  }
 0x23a   :  { %v500_v38 = vpop.permute.xlu1 %499  ;;  %5112 = vmatmul.msk.f32.gmra.mxu3 %vm103_vm1, %v228_v14 }
 0x242   :  { %v367_v39 = vpop.permute.xlu1 %366  ;;  %5123 = vmatmul.msk.f32.vlgmr.msra.gmra.mxu3 %vm103_vm1, %v500_v38 }
 0x243   :  { %5116 = vmatpush.xpose.msk.msrb.mxu0 %vm103_vm1, %v367_v39 }
 0x24a   :  { %v365_v54 = vpop.permute.xlu1 %364 }
 0x292   :  { %v154_v40 = vpop.xlane.xlu2 %153 }
 0x293   :  { %7213 = vrcp.f32 %v154_v40  ;;  %v169_v45 = vand.u32 2147483648, %v154_v40  ;;  %v167_v47 = vand.u32 2147483647, %v154_v40  ;;  %vm163_vm4 = vweird.f32 %v154_v40 }
 0x294   :  { %7215 = vpow2.f32 %v150_v13 }
 0x295   :  { %v170_v49 = vor.u32 1.1754944e-38, %v169_v45  ;;  %vm168_vm6 = vcmp.eq.f32.partialorder %v167_v47, 8.507059e+37 }
 0x299   :  { %v7214_v41 = vpop.eup %7213 }
 0x29a   :  { %v159_v42 = vmul.f32 %v7214_v41, %v154_v40  ;;  %v502_v43 = vpop.permute.xlu2 %501  ;;  %vm164_vm3 = vweird.f32 %v7214_v41  ;;  %v7491_v24 = vpop.eup %7215 }
 0x29b   :  { %5124 = vmatmul.msk.f32.gmra.mxu3 %vm103_vm1, %v502_v43  ;;  %vm165_vm5 = vmor %vm163_vm4, %vm164_vm3  ;;  %v155_v29 = vsel %vm139_vm2, %v7491_v24, 0.0 }
 0x29c   :  { %v160_v44 = vsub.f32 1.0, %v159_v42 }
 0x29e   :  { %v161_v46 = vmul.f32 %v7214_v41, %v160_v44 }
 0x2a0   :  { %v162_v48 = vadd.f32 %v7214_v41, %v161_v46 }
 0x2a2   :  { %v166_v50 = vsel %vm165_vm5, %v7214_v41, %v162_v48 }
 0x2a3   :  { %v171_v51 = vsel %vm168_vm6, %v170_v49, %v166_v50 }
 0x2a4   :  { %v186_v52 = vmul.f32 %v7212_v33, %v171_v51 }
 0x2a6   :  { %5107 = vmatmul.msk.f32.vlgmr.msra.gmra.mxu0 %vm139_vm2, %v186_v52 }
 0x2ae   :  { %5117 = vmatmul.msk.f32.vlgmr.msrb.gmra.mxu0 %vm103_vm1, %v363_v53 }
 0x2b5   :  { %v258_v55 = vpop.f32.mrf.mxu3 }
 0x2b6   :  { %v264_v56 = vmul.f32 0.35355338, %v258_v55  ;;  %5118 = vmatmul.msk.f32.gmra.mxu0 %vm103_vm1, %v365_v54 }
 0x2b8   :  { %v266_v57 = vadd.f32 %v264_v56, %v7443_v21 }
 0x2ba   :  { %v268_v58 = vsel %vm139_vm2, %v266_v57, -inf }
 0x2bb   :  { %269 = vmax.xlane.f32.xlu1 %v268_v58 }
 0x2bd   :  { %v261_v59 = vpop.f32.mrf.mxu3 }
 0x2be   :  { %v265_v60 = vmul.f32 0.35355338, %v261_v59 }
 0x2c0   :  { %v267_v61 = vadd.f32 %v265_v60, %v7450_v26 }
 0x2c2   :  { %v271_v62 = vsel %vm139_vm2, %v267_v61, -inf }
 0x2c3   :  { %272 = vmax.xlane.f32.xlu2 %v271_v62 }
 0x2c5   :  { %v532_v63 = vpop.f32.mrf.mxu3 }
 0x2c6   :  { %v538_v0 = vmul.f32 0.35355338, %v532_v63 }
 0x2c8   :  { %v540_v1 = vadd.f32 %v538_v0, %v7443_v21 }
 0x2ca   :  { %v542_v4 = vsel %vm139_vm2, %v540_v1, -inf }
 0x2cb   :  { %543 = vmax.xlane.f32.xlu0 %v542_v4 }
 0x31e   :  { %v535_v5 = vpop.f32.mrf.mxu3 }
 0x31f   :  { %v539_v6 = vmul.f32 0.35355338, %v535_v5 }
 0x321   :  { %v541_v7 = vadd.f32 %v539_v6, %v7450_v26 }
 0x323   :  { %v217_v8 = vpop.f32.mrf.mxu0  ;;  %v545_v9 = vsel %vm139_vm2, %v541_v7, -inf }
 0x324   :  { %223 = vst.msk [vmem:[#allocation2] sm:$0xff] %vm103_vm1, %v217_v8  ;;  %546 = vmax.xlane.f32.xlu0 %v545_v9 }
 0x32b   :  { %v395_v14 = vpop.f32.mrf.mxu0 }
 0x32c   :  { %v401_v15 = vmul.f32 0.35355338, %v395_v14 }
 0x32e   :  { %v270_v16 = vpop.xlane.xlu1 %269  ;;  %v403_v17 = vadd.f32 %v401_v15, %v7443_v21 }
 0x32f   :  { %v274_v18 = vsub.f32 %v266_v57, %v270_v16 }
 0x330   :  { %v405_v19 = vsel %vm139_vm2, %v403_v17, -inf }
 0x331   :  { %v276_v20 = vmul.f32 1.442695, %v274_v18  ;;  %406 = vmax.xlane.f32.xlu1 %v405_v19 }
 0x333   :  { %7217 = vpow2.f32 %v276_v20  ;;  %v398_v22 = vpop.f32.mrf.mxu0 }
 0x334   :  { %v402_v23 = vmul.f32 0.35355338, %v398_v22 }
 0x336   :  { %v273_v25 = vpop.xlane.xlu2 %272  ;;  %v404_v27 = vadd.f32 %v402_v23, %v7450_v26 }
 0x337   :  { %v275_v28 = vsub.f32 %v267_v61, %v273_v25 }
 0x338   :  { %v408_v21 = vsel %vm139_vm2, %v404_v27, -inf }
 0x339   :  { %v7497_v30 = vpop.eup %7217  ;;  %v278_v31 = vmul.f32 1.442695, %v275_v28  ;;  %156 = vadd.xlane.f32.xlu1 %v155_v29  ;;  %409 = vmax.xlane.f32.xlu2 %v408_v21 }
 0x33a   :  { %v280_v32 = vsel %vm139_vm2, %v7497_v30, 0.0 }
 0x33b   :  { %7219 = vpow2.f32 %v278_v31  ;;  %281 = vadd.xlane.f32.xlu0 %v280_v32 }
 0x33e   :  { %v544_v33 = vpop.xlane.xlu0 %543 }
 0x33f   :  { %v548_v34 = vsub.f32 %v540_v1, %v544_v33 }
 0x341   :  { %v7501_v35 = vpop.eup %7219  ;;  %v550_v26 = vmul.f32 1.442695, %v548_v34 }
 0x342   :  { %v283_v36 = vsel %vm139_vm2, %v7501_v35, 0.0 }
 0x343   :  { %7221 = vpow2.f32 %v550_v26  ;;  %284 = vadd.xlane.f32.xlu2 %v283_v36 }
 0x349   :  { %v7505_v37 = vpop.eup %7221 }
 0x34a   :  { %v554_v38 = vsel %vm139_vm2, %v7505_v37, 0.0 }
 0x34b   :  { %555 = vadd.xlane.f32.xlu1 %v554_v38 }
 0x34f   :  { %7163 = vrot.lane.b32.xlu0 %v7427_v10, %s9171_s29  ;;  %s9195_s29 = smov 8  }
 0x397   :  { %v547_v39 = vpop.xlane.xlu0 %546 }
 0x398   :  { %v549_v40 = vsub.f32 %v541_v7, %v547_v39 }
 0x39a   :  { %v552_v41 = vmul.f32 1.442695, %v549_v40 }
 0x39c   :  { %7223 = vpow2.f32 %v552_v41 }
 0x3a2   :  { %v7511_v42 = vpop.eup %7223 }
 0x3a3   :  { %v557_v43 = vsel %vm139_vm2, %v7511_v42, 0.0 }
 0x3a4   :  { %558 = vadd.xlane.f32.xlu1 %v557_v43  ;;  %v407_v44 = vpop.xlane.xlu1 %406 }
 0x3a5   :  { %v411_v45 = vsub.f32 %v403_v17, %v407_v44 }
 0x3a7   :  { %v413_v46 = vmul.f32 1.442695, %v411_v45 }
 0x3a9   :  { %7225 = vpow2.f32 %v413_v46 }
 0x3ac   :  { %v157_v47 = vpop.xlane.xlu1 %156  ;;  %v410_v48 = vpop.xlane.xlu2 %409 }
 0x3ad   :  { %7227 = vrcp.f32 %v157_v47  ;;  %v412_v49 = vsub.f32 %v404_v27, %v410_v48  ;;  %v183_v61 = vand.u32 2147483648, %v157_v47  ;;  %v181_v62 = vand.u32 2147483647, %v157_v47 }
 0x3ae   :  { %v282_v50 = vpop.xlane.xlu0 %281  ;;  %vm177_vm8 = vweird.f32 %v157_v47 }
 0x3af   :  { %v7515_v51 = vpop.eup %7225  ;;  %v415_v52 = vmul.f32 1.442695, %v412_v49  ;;  %7229 = vrcp.f32 %v282_v50  ;;  %v184_v6 = vor.u32 1.1754944e-38, %v183_v61  ;;  %vm182_vm11 = vcmp.eq.f32.partialorder %v181_v62, 8.507059e+37 }
 0x3b0   :  { %v417_v53 = vsel %vm139_vm2, %v7515_v51, 0.0  ;;  %v297_v11 = vand.u32 2147483648, %v282_v50  ;;  %vm291_vm12 = vweird.f32 %v282_v50  ;;  %v295_v13 = vand.u32 2147483647, %v282_v50 }
 0x3b1   :  { %7231 = vpow2.f32 %v415_v52  ;;  %418 = vadd.xlane.f32.xlu2 %v417_v53 }
 0x3b2   :  { %v298_v18 = vor.u32 1.1754944e-38, %v297_v11  ;;  %vm296_vm14 = vcmp.eq.f32.partialorder %v295_v13, 8.507059e+37 }
 0x3b3   :  { %v7228_v54 = vpop.eup %7227 }
 0x3b4   :  { %v173_v55 = vmul.f32 %v7228_v54, %v157_v47  ;;  %vm178_vm7 = vweird.f32 %v7228_v54 }
 0x3b5   :  { %v7230_v56 = vpop.eup %7229  ;;  %vm179_vm9 = vmor %vm177_vm8, %vm178_vm7 }
 0x3b6   :  { %v174_v57 = vsub.f32 1.0, %v173_v55  ;;  %v287_v58 = vmul.f32 %v7230_v56, %v282_v50  ;;  %v285_v59 = vpop.xlane.xlu2 %284  ;;  %vm292_vm10 = vweird.f32 %v7230_v56 }
 0x3b7   :  { %v7519_v60 = vpop.eup %7231  ;;  %7233 = vrcp.f32 %v285_v59  ;;  %vm293_vm13 = vmor %vm291_vm12, %vm292_vm10  ;;  %v311_v28 = vand.u32 2147483648, %v285_v59  ;;  %vm305_vm3 = vweird.f32 %v285_v59  ;;  %v309_v29 = vand.u32 2147483647, %v285_v59 }
 0x3b8   :  { %v175_v63 = vmul.f32 %v7228_v54, %v174_v57  ;;  %v288_v0 = vsub.f32 1.0, %v287_v58  ;;  %v420_v1 = vsel %vm139_vm2, %v7519_v60, 0.0 }
 0x3b9   :  { %421 = vadd.xlane.f32.xlu2 %v420_v1  ;;  %v312_v31 = vor.u32 1.1754944e-38, %v311_v28  ;;  %vm310_vm5 = vcmp.eq.f32.partialorder %v309_v29, 8.507059e+37 }
 0x3ba   :  { %v289_v4 = vmul.f32 %v7230_v56, %v288_v0  ;;  %v176_v5 = vadd.f32 %v7228_v54, %v175_v63 }
 0x3bc   :  { %v290_v7 = vadd.f32 %v7230_v56, %v289_v4  ;;  %v180_v8 = vsel %vm179_vm9, %v7228_v54, %v176_v5 }
 0x3bd   :  { %v7234_v9 = vpop.eup %7233  ;;  %7168 = vrot.lane.b32.xlu1 %v7427_v10, %s9170_s30  ;;  %v185_v12 = vsel %vm182_vm11, %v184_v6, %v180_v8  ;;  %s9192_s30 = smov 48  }
 0x3be   :  { %v301_v14 = vmul.f32 %v7234_v9, %v285_v59  ;;  %v187_v15 = vmul.f32 %v7491_v24, %v185_v12  ;;  %v294_v17 = vsel %vm293_vm13, %v7230_v56, %v290_v7  ;;  %vm306_vm15 = vweird.f32 %v7234_v9  ;;  %v556_v34 = vpop.xlane.xlu1 %555 }
 0x3bf   :  { %v299_v23 = vsel %vm296_vm14, %v298_v18, %v294_v17  ;;  %vm307_vm4 = vmor %vm305_vm3, %vm306_vm15  ;;  %7235 = vrcp.f32 %v556_v34  ;;  %v571_v45 = vand.u32 2147483648, %v556_v34  ;;  %vm565_vm7 = vweird.f32 %v556_v34 }
 0x3c0   :  { %v302_v16 = vsub.f32 1.0, %v301_v14  ;;  %5108 = vmatmul.msk.f32.vlgmr.msra.gmra.mxu2 %vm139_vm2, %v187_v15  ;;  %v314_v24 = vmul.f32 %v7497_v30, %v299_v23  ;;  %v569_v46 = vand.u32 2147483647, %v556_v34 }
 0x3c1   :  { %v7164_v19 = vpop.permute.xlu0 %7163  ;;  %v572_v52 = vor.u32 1.1754944e-38, %v571_v45  ;;  %v7198_v45 = vld [vmem:[%s9154_s5] ss:$0 sm:$0xff] }
 0x3c2   :  { %v303_v20 = vmul.f32 %v7234_v9, %v302_v16  ;;  %v7165_v22 = vunpack.i.l.bf16 %v7164_v19  ;;  %v7166_v25 = vunpack.i.h.bf16 %v7164_v19  ;;  %vm570_vm9 = vcmp.eq.f32.partialorder %v569_v46, 8.507059e+37 }
 0x3c4   :  { %342 = vmatpush.msrb.mxu2 %v7165_v22  ;;  %v304_v27 = vadd.f32 %v7234_v9, %v303_v20 }
 0x3c5   :  { %v7236_v30 = vpop.eup %7235 }
 0x3c6   :  { %343 = vmatpush.msrb.mxu2 %v7166_v25  ;;  %v308_v21 = vsel %vm307_vm4, %v7234_v9, %v304_v27  ;;  %v561_v36 = vmul.f32 %v7236_v30, %v556_v34  ;;  %vm566_vm6 = vweird.f32 %v7236_v30 }
 0x3c7   :  { %v313_v32 = vsel %vm310_vm5, %v312_v31, %v308_v21  ;;  %vm567_vm8 = vmor %vm565_vm7, %vm566_vm6 }
 0x3c8   :  { %5113 = vmatmul.msk.f32.vlgmr.msrb.gmra.mxu2 %vm139_vm2, %v314_v24  ;;  %v315_v33 = vmul.f32 %v7501_v35, %v313_v32  ;;  %v562_v38 = vsub.f32 1.0, %v561_v36  ;;  %v6812_v36 = vld [vmem:[%s9155_s4] sm:$0xff] }
 0x3ca   :  { %v563_v40 = vmul.f32 %v7236_v30, %v562_v38 }
 0x3cc   :  { %v564_v44 = vadd.f32 %v7236_v30, %v563_v40 }
 0x3d0   :  { %5114 = vmatmul.msk.f32.gmra.mxu2 %vm139_vm2, %v315_v33 }
 0x3d1   :  { %7173 = vrot.lane.b32.xlu2 %v7427_v10, %s9176_s2  ;;  %v568_v10 = vsel %vm567_vm8, %v7236_v30, %v564_v44  ;;  %v6813_v30 = vld [vmem:[%s9155_s4 + $0x8] sm:$0xff] }
 0x3d2   :  { %v573_v54 = vsel %vm570_vm9, %v572_v52, %v568_v10  ;;  %vm359_vm9 = vcmask 130112   ;;  %668 = vmatpush.bf16.msra.mxu0 %v6813_v30  ;;  %v6825_v30 = vld [vmem:[%s9159_s10 + $0x38] sm:$0xff] }
 0x3d3   :  { %v588_v7 = vmul.f32 %v7505_v37, %v573_v54  ;;  %v7307_v54 = vmov 32.0  }
 0x3d6   :  { %669 = vmatpush.bf16.msra.mxu0 %v6812_v36 }
 0x417   :  { %v559_v26 = vpop.xlane.xlu1 %558 }
 0x418   :  { %7237 = vrcp.f32 %v559_v26  ;;  %vm579_vm12 = vweird.f32 %v559_v26  ;;  %v585_v62 = vand.u32 2147483648, %v559_v26  ;;  %v583_v4 = vand.u32 2147483647, %v559_v26 }
 0x41a   :  { %v586_v13 = vor.u32 1.1754944e-38, %v585_v62  ;;  %vm584_vm4 = vcmp.eq.f32.partialorder %v583_v4, 8.507059e+37 }
 0x41e   :  { %v7238_v39 = vpop.eup %7237 }
 0x41f   :  { %v575_v41 = vmul.f32 %v7238_v39, %v559_v26  ;;  %vm580_vm10 = vweird.f32 %v7238_v39 }
 0x420   :  { %vm7533_vm14 = vmor %vm579_vm12, %vm580_vm10  ;;  %vm496_vm10 = vcmask 195712  }
 0x421   :  { %v576_v35 = vsub.f32 1.0, %v575_v41 }
 0x423   :  { %v577_v48 = vmul.f32 %v7238_v39, %v576_v35 }
 0x424   :  { %v419_v43 = vpop.xlane.xlu2 %418 }
 0x425   :  { %7239 = vrcp.f32 %v419_v43  ;;  %v432_v55 = vand.u32 2147483647, %v419_v43  ;;  %v434_v56 = vand.u32 2147483648, %v419_v43  ;;  %v578_v61 = vadd.f32 %v7238_v39, %v577_v48 }
 0x426   :  { %vm428_vm13 = vweird.f32 %v419_v43 }
 0x427   :  { %v435_v6 = vor.u32 1.1754944e-38, %v434_v56  ;;  %vm433_vm3 = vcmp.eq.f32.partialorder %v432_v55, 8.507059e+37  ;;  %v582_v12 = vsel %vm7533_vm14, %v7238_v39, %v578_v61 }
 0x428   :  { %v587_v19 = vsel %vm584_vm4, %v586_v13, %v582_v12  ;;  %v5148_v13 = vld [vmem:[%s9158_s8 + $0xc0] sm:$0xf0] }
 0x429   :  { %v589_v27 = vmul.f32 %v7511_v42, %v587_v19  ;;  %v6836_v19 = vld [vmem:[%s9158_s8 + $0x8c] sm:$0xf] }
 0x42b   :  { %v7240_v47 = vpop.eup %7239 }
 0x42c   :  { %v424_v49 = vmul.f32 %v7240_v47, %v419_v43  ;;  %v422_v50 = vpop.xlane.xlu2 %421  ;;  %vm429_vm11 = vweird.f32 %v7240_v47 }
 0x42d   :  { %7241 = vrcp.f32 %v422_v50  ;;  %vm430_vm15 = vmor %vm428_vm13, %vm429_vm11  ;;  %v448_v17 = vand.u32 2147483648, %v422_v50  ;;  %v446_v22 = vand.u32 2147483647, %v422_v50  ;;  %vm442_vm6 = vweird.f32 %v422_v50 }
 0x42e   :  { %v425_v53 = vsub.f32 1.0, %v424_v49  ;;  %vm633_vm11 = vcmask 261312   ;;  %7243 = vrcp.f32 %v7307_v54  ;;  %v6850_v54 = vld [vmem:[%s9159_s10 + $0xe0] sm:$0xff] }
 0x42f   :  { %v7169_v57 = vpop.permute.xlu1 %7168  ;;  %v449_v25 = vor.u32 1.1754944e-38, %v448_v17  ;;  %vm447_vm8 = vcmp.eq.f32.partialorder %v446_v22, 8.507059e+37 }
 0x430   :  { %v426_v58 = vmul.f32 %v7240_v47, %v425_v53  ;;  %v7170_v59 = vunpack.i.l.bf16 %v7169_v57  ;;  %v7171_v0 = vunpack.i.h.bf16 %v7169_v57 }
 0x432   :  { %v427_v63 = vadd.f32 %v7240_v47, %v426_v58  ;;  %616 = vmatpush.msra.mxu2 %v7170_v59 }
 0x433   :  { %v7242_v5 = vpop.eup %7241 }
 0x434   :  { %v438_v8 = vmul.f32 %v7242_v5, %v422_v50  ;;  %617 = vmatpush.msra.mxu2 %v7171_v0  ;;  %v7174_v9 = vpop.permute.xlu2 %7173  ;;  %v431_v11 = vsel %vm430_vm15, %v7240_v47, %v427_v63  ;;  %vm443_vm5 = vweird.f32 %v7242_v5  ;;  %v7244_v55 = vpop.eup %7243 }
 0x435   :  { %5125 = vmatmul.msk.f32.vlgmr.msra.gmra.mxu2 %vm139_vm2, %v588_v7  ;;  %v7175_v14 = vunpack.i.l.bf16 %v7174_v9  ;;  %v436_v15 = vsel %vm433_vm3, %v435_v6, %v431_v11  ;;  %v7176_v18 = vunpack.i.h.bf16 %v7174_v9  ;;  %vm444_vm7 = vmor %vm442_vm6, %vm443_vm5  ;;  %v685_v56 = vmul.f32 32.0, %v7244_v55  ;;  %v6817_v9 = vld [vmem:[%s9158_s8 + $0xbc] sm:$0xf0]  ;;  %v6816_v11 = vld [vmem:[%s9158_s8 + $0x84] sm:$0xf] }
 0x436   :  { %v439_v16 = vsub.f32 1.0, %v438_v8  ;;  %v451_v20 = vmul.f32 %v7515_v51, %v436_v15  ;;  %vm689_vm12 = vweird.f32 %v7244_v55  ;;  %v5146_v8 = vld [vmem:[%s9158_s8 + $0x80] sm:$0xf]  ;;  %v6837_v15 = vld [vmem:[%s9158_s8 + $0xc4] sm:$0xf0]  ;;  %v5151_v17 = vor.u32 %v6816_v11, %v5148_v13 }
 0x437   :  { %479 = vmatpush.msrb.mxu1 %v7175_v14  ;;  %v686_v57 = vsub.f32 1.0, %v685_v56  ;;  %v5147_v12 = vor.u32 %v6817_v9, %v5146_v8  ;;  %v5164_v14 = vld [vmem:[%s9158_s8 + $0x88] sm:$0xf] }
 0x438   :  { %v440_v37 = vmul.f32 %v7242_v5, %v439_v16  ;;  %795 = vmatpush.bf16.msrb.mxu3 %v5151_v17  ;;  %v6848_v17 = vld [vmem:[%s9159_s10 + $0xd0] sm:$0xff] }
 0x439   :  { %480 = vmatpush.msrb.mxu1 %v7176_v18  ;;  %v687_v58 = vmul.f32 %v7244_v55, %v686_v57  ;;  %v5165_v18 = vor.u32 %v6837_v15, %v5164_v14  ;;  %v6842_v15 = vld [vmem:[%s9159_s10 + $0xa0] sm:$0xff] }
 0x43a   :  { %5119 = vmatmul.msk.f32.vlgmr.msrb.gmra.mxu1 %vm139_vm2, %v451_v20  ;;  %v441_v23 = vadd.f32 %v7242_v5, %v440_v37  ;;  %v5166_v37 = vld [vmem:[%s9158_s8 + $0xc8] sm:$0xf0] }
 0x43b   :  { %v688_v59 = vadd.f32 %v7244_v55, %v687_v58  ;;  %781 = vmatpush.bf16.msra.mxu1 %v5147_v12  ;;  %v5169_v22 = vor.u32 %v6836_v19, %v5166_v37  ;;  %877 = vmatpush.bf16.msrb.mxu2 %v5165_v18  ;;  %v6820_v18 = vld [vmem:[%s9159_s10 + $0x10] sm:$0xff]  ;;  %v6841_v19 = vld [vmem:[%s9159_s10 + $0x98] sm:$0xff] }
 0x43c   :  { %v445_v28 = vsel %vm444_vm7, %v7242_v5, %v441_v23  ;;  %v5138_v23 = vld [vmem:[%s9158_s8] sm:$0xf]  ;;  %v6829_v37 = vld [vmem:[%s9159_s10 + $0x58] sm:$0xff] }
 0x43d   :  { %5126 = vmatmul.msk.f32.gmra.mxu2 %vm139_vm2, %v589_v27  ;;  %v450_v24 = vsel %vm447_vm8, %v449_v25, %v445_v28  ;;  %v7574_v61 = vsel %vm689_vm12, %v7244_v55, %v688_v59  ;;  %v6815_v25 = vld [vmem:[%s9158_s8 + $0x3c] sm:$0xf0]  ;;  %v6814_v27 = vld [vmem:[%s9158_s8 + $0x4] sm:$0xf]  ;;  %891 = vmatpush.bf16.msrb.mxu0 %v5169_v22  ;;  %v6819_v22 = vld [vmem:[%s9159_s10 + $0x8] sm:$0xff] }
 0x43e   :  { %v452_v29 = vmul.f32 %v7519_v60, %v450_v24  ;;  %v5139_v24 = vor.u32 %v6815_v25, %v5138_v23  ;;  %v6822_v55 = vld [vmem:[%s9159_s10 + $0x20] sm:$0xff]  ;;  %v6840_v23 = vld [vmem:[%s9159_s10 + $0x90] sm:$0xff] }
 0x43f   :  { %v6828_v25 = vld [vmem:[%s9159_s10 + $0x50] sm:$0xff] }
 0x440   :  { %782 = vmatpush.bf16.msra.mxu1 %v5139_v24  ;;  %v6839_v24 = vld [vmem:[%s9159_s10 + $0x88] sm:$0xff] }
 0x442   :  { %5120 = vmatmul.msk.f32.gmra.mxu1 %vm139_vm2, %v452_v29  ;;  %v5140_v29 = vld [vmem:[%s9158_s8 + $0x40] sm:$0xf0] }
 0x443   :  { %v220_v51 = vpop.f32.mrf.mxu2 }
 0x444   :  { %224 = vst.msk [vmem:[#allocation2 + $0x8] sm:$0xff] %vm103_vm1, %v220_v51  ;;  %v5156_v51 = vld [vmem:[%s9158_s8 + $0x8] sm:$0xf] }
 0x44b   :  { %v345_v21 = vpop.f32.mrf.mxu2 }
 0x44c   :  { %353 = vrot.lane.b32.xlu0 %v345_v21, %s9168_s24  ;;  %v5143_v21 = vor.u32 %v6814_v27, %v5140_v29  ;;  %v6846_v27 = vld [vmem:[%s9159_s10 + $0xc0] sm:$0xff]  ;;  %v6827_v29 = vld [vmem:[%s9159_s10 + $0x48] sm:$0xff] }
 0x44e   :  { %796 = vmatpush.bf16.msrb.mxu3 %v5143_v21  ;;  %v6826_v21 = vld [vmem:[%s9159_s10 + $0x40] sm:$0xff] }
 0x453   :  { %v348_v31 = vpop.f32.mrf.mxu2 }
 0x454   :  { %355 = vrot.lane.b32.xlu0 %v348_v31, %s9168_s24  ;;  %v6835_v31 = vld [vmem:[%s9158_s8 + $0x44] sm:$0xf0]  ;;  %s9193_s24 = smov 56  }
 0x4b7   :  { %v482_v42 = vpop.f32.mrf.mxu1 }
 0x4b8   :  { %v619_v32 = vpop.f32.mrf.mxu2  ;;  %490 = vrot.lane.b32.xlu1 %v482_v42, %s9174_s25  ;;  %v6834_v42 = vld [vmem:[%s9158_s8 + $0xc] sm:$0xf] }
 0x4b9   :  { %627 = vrot.lane.b32.xlu2 %v619_v32, %s9172_s26  ;;  %v5158_v32 = vld [vmem:[%s9158_s8 + $0x48] sm:$0xf0] }
 0x4be   :  { %v354_v60 = vpop.permute.xlu0 %353 }
 0x4bf   :  { %360 = vst.msk [vmem:[#allocation2] sm:$0xff] %vm359_vm9, %v354_v60  ;;  %v485_v33 = vpop.f32.mrf.mxu1  ;;  %v5157_v60 = vor.u32 %v6835_v31, %v5156_v51  ;;  %v6838_v51 = vld [vmem:[%s9159_s10 + $0x80] sm:$0xff]  ;;  %v6856_v31 = vld [vmem:[%s9158_s8 + $0x94] sm:$0xf] }
 0x4c0   :  { %v622_v34 = vpop.f32.mrf.mxu2  ;;  %492 = vrot.lane.b32.xlu0 %v485_v33, %s9174_s25  ;;  %v5161_v33 = vor.u32 %v6834_v42, %v5158_v32  ;;  %v5312_v42 = vld [vmem:[%s9158_s8 + $0xd0] sm:$0xf0]  ;;  %s9197_s25 = smov 24  }
 0x4c1   :  { %629 = vrot.lane.b32.xlu1 %v622_v34, %s9172_s26  ;;  %878 = vmatpush.bf16.msrb.mxu2 %v5157_v60  ;;  %v6854_v32 = vld [vmem:[%s9158_s8 + $0x14] sm:$0xf]  ;;  %v5315_v60 = vor.u32 %v6856_v31, %v5312_v42 }
 0x4c2   :  { %892 = vmatpush.bf16.msrb.mxu0 %v5161_v33  ;;  %v5304_v33 = vld [vmem:[%s9158_s8 + $0x50] sm:$0xf0] }
 0x4c3   :  { %v6864_v31 = vld [vmem:[%s9159_s10 + $0x130] sm:$0xff] }
 0x4c4   :  { %v6872_v42 = vld [vmem:[%s9159_s10 + $0x170] sm:$0xff] }
 0x4c5   :  { %1157 = vmatpush.bf16.msra.mxu2 %v6825_v30 }
 0x4c6   :  { %v356_v26 = vpop.permute.xlu0 %355 }
 0x4c7   :  { %361 = vst.msk [vmem:[#allocation2 + $0x8] sm:$0xff] %vm359_vm9, %v356_v26  ;;  %v6853_v26 = vld [vmem:[%s9159_s10 + $0xf8] sm:$0xff] }
 0x4c8   :  { %1047 = vmatpush.bf16.msra.mxu3 %v6853_v26  ;;  %v6857_v26 = vld [vmem:[%s9158_s8 + $0xcc] sm:$0xf0] }
 0x513   :  { %v628_v39 = vpop.permute.xlu2 %627 }
 0x52a   :  { %v491_v38 = vpop.permute.xlu1 %490 }
 0x52b   :  { %497 = vst.msk [vmem:[#allocation2] sm:$0xff] %vm496_vm10, %v491_v38  ;;  %v6845_v38 = vld [vmem:[%s9159_s10 + $0xb8] sm:$0xff] }
 0x52c   :  { %634 = vst.msk [vmem:[#allocation2] sm:$0xff] %vm633_vm11, %v628_v39  ;;  %v6833_v39 = vld [vmem:[%s9159_s10 + $0x78] sm:$0xff]  ;;  %1033 = vmatpush.bf16.msrb.mxu1 %v6845_v38  ;;  %v746_v38 = vld [vmem:[%s9160_s9] sm:$0x3] }
 0x532   :  { %v493_v40 = vpop.permute.xlu0 %492 }
 0x533   :  { %498 = vst.msk [vmem:[#allocation2 + $0x8] sm:$0xff] %vm496_vm10, %v493_v40  ;;  %v630_v41 = vpop.permute.xlu1 %629  ;;  %v636_v43 = vld [vmem:[#allocation2] sm:$0xff]  ;;  %v6852_v40 = vld [vmem:[%s9159_s10 + $0xf0] sm:$0xff] }
 0x534   :  { %635 = vst.msk [vmem:[#allocation2 + $0x8] sm:$0xff] %vm633_vm11, %v630_v41  ;;  %v6824_v41 = vld [vmem:[%s9159_s10 + $0x30] sm:$0xff]  ;;  %1048 = vmatpush.bf16.msra.mxu3 %v6852_v40 }
 0x535   :  { %1158 = vmatpush.bf16.msra.mxu2 %v6824_v41  ;;  %v5302_v40 = vld [vmem:[%s9158_s8 + $0x10] sm:$0xf] }
 0x536   :  { %v6855_v41 = vld [vmem:[%s9158_s8 + $0x4c] sm:$0xf0] }
 0x53b   :  { %v637_v44 = vld [vmem:[#allocation2 + $0x8] sm:$0xff] }
 0x53c   :  { %v638_v35 = vpack.c.bf16 %v637_v44, %v636_v43 }
 0x53e   :  { %5135 = vmatmul.msk.bf16.vlgmr.msra.gmra.mxu0 %vm79_vm0, %v638_v35  ;;  %v6844_v35 = vld [vmem:[%s9159_s10 + $0xb0] sm:$0xff] }
 0x53f   :  { %1171 = vmatpush.bf16.msra.mxu0 %v6833_v39  ;;  %1034 = vmatpush.bf16.msrb.mxu1 %v6844_v35  ;;  %v5303_v35 = vor.u32 %v6855_v41, %v5302_v40  ;;  %v6868_v40 = vld [vmem:[%s9159_s10 + $0x150] sm:$0xff] }
 0x540   :  { %v6884_v41 = vld [vmem:[%s9159_s10 + $0x1b0] sm:$0xff] }
 0x5bb   :  { %v671_v46 = vpop.f32.mrf.mxu0 }
 0x5bc   :  { %v672_v47 = vadd.f32 %v7198_v45, %v671_v46 }
 0x5be   :  { %v676_v10 = vadd.f32 %v672_v47, %v7402_v2 }
 0x5c0   :  { %v678_v48 = vsel %vm79_vm0, %v676_v10, 0.0 }
 0x5c1   :  { %679 = vadd.xlane.f32.xlu0 %v678_v48  ;;  %v6823_v48 = vld [vmem:[%s9159_s10 + $0x28] sm:$0xff] }
 0x5c2   :  { %1159 = vmatpush.bf16.msra.mxu2 %v6823_v48 }
 0x5c3   :  { %v673_v49 = vpop.f32.mrf.mxu0 }
 0x5c4   :  { %v674_v50 = vadd.f32 %v7198_v45, %v673_v49  ;;  %v6832_v45 = vld [vmem:[%s9159_s10 + $0x70] sm:$0xff]  ;;  %v6843_v49 = vld [vmem:[%s9159_s10 + $0xa8] sm:$0xff] }
 0x5c5   :  { %1172 = vmatpush.bf16.msra.mxu0 %v6832_v45  ;;  %1035 = vmatpush.bf16.msrb.mxu1 %v6843_v49  ;;  %v748_v45 = vperm.slane %v746_v38, 0 }
 0x5c6   :  { %v677_v52 = vadd.f32 %v674_v50, %v7407_v3  ;;  %v6831_v50 = vld [vmem:[%s9159_s10 + $0x68] sm:$0xff]  ;;  %1160 = vmatpush.bf16.msra.mxu2 %v6822_v55 }
 0x5c8   :  { %v681_v53 = vsel %vm79_vm0, %v677_v52, 0.0 }
 0x5c9   :  { %682 = vadd.xlane.f32.xlu2 %v681_v53  ;;  %1173 = vmatpush.bf16.msra.mxu0 %v6831_v50 }
 0x5ca   :  { %1036 = vmatpush.bf16.msrb.mxu1 %v6842_v15 }
 0x5ce   :  { %1037 = vmatpush.bf16.msrb.mxu1 %v6841_v19 }
 0x5d2   :  { %1038 = vmatpush.bf16.msrb.mxu1 %v6840_v23 }
 0x5d6   :  { %1039 = vmatpush.bf16.msrb.mxu1 %v6839_v24  ;;  %v6875_v24 = vld [vmem:[%s9158_s8 + $0x54] sm:$0xf0] }
 0x5da   :  { %1040 = vmatpush.bf16.msrb.mxu1 %v6838_v51  ;;  %v6865_v51 = vld [vmem:[%s9159_s10 + $0x138] sm:$0xff] }
 0x634   :  { %v680_v2 = vpop.xlane.xlu0 %679 }
 0x635   :  { %v691_v62 = vmul.f32 %v7574_v61, %v680_v2 }
 0x637   :  { %v7577_v63 = vsub.f32 %v676_v10, %v691_v62  ;;  %v6851_v10 = vld [vmem:[%s9159_s10 + $0xe8] sm:$0xff] }
 0x638   :  { %1049 = vmatpush.bf16.msra.mxu3 %v6851_v10 }
 0x639   :  { %v695_v3 = vmul.f32 %v7577_v63, %v7577_v63 }
 0x63b   :  { %v697_v0 = vsel %vm79_vm0, %v695_v3, 0.0 }
 0x63c   :  { %v683_v1 = vpop.xlane.xlu2 %682  ;;  %698 = vadd.xlane.f32.xlu1 %v697_v0  ;;  %1050 = vmatpush.bf16.msra.mxu3 %v6850_v54  ;;  %v7199_v0 = vld [vmem:[%s9156_s6] ss:$0 sm:$0xff] }
 0x63d   :  { %v692_v4 = vmul.f32 %v7574_v61, %v683_v1 }
 0x63f   :  { %v7583_v5 = vsub.f32 %v677_v52, %v692_v4 }
 0x641   :  { %v696_v6 = vmul.f32 %v7583_v5, %v7583_v5 }
 0x643   :  { %v700_v7 = vsel %vm79_vm0, %v696_v6, 0.0 }
 0x644   :  { %701 = vadd.xlane.f32.xlu0 %v700_v7  ;;  %v7200_v7 = vld [vmem:[%s9157_s7] ss:$0 sm:$0xff] }
 0x6af   :  { %v699_v16 = vpop.xlane.xlu1 %698 }
 0x6b0   :  { %v703_v20 = vmul.f32 %v699_v16, %v7574_v61  ;;  %v6830_v16 = vld [vmem:[%s9159_s10 + $0x60] sm:$0xff] }
 0x6b1   :  { %1174 = vmatpush.bf16.msra.mxu0 %v6830_v16  ;;  %v5392_v16 = vld [vmem:[%s9158_s8 + $0x98] sm:$0xf] }
 0x6b2   :  { %v705_v28 = vadd.f32 1e-05, %v703_v20  ;;  %v6847_v20 = vld [vmem:[%s9159_s10 + $0xc8] sm:$0xff] }
 0x6b4   :  { %7245 = vrsqrt.f32 %v705_v28  ;;  %vm713_vm14 = vweird.f32 %v705_v28 }
 0x6b5   :  { %1175 = vmatpush.bf16.msra.mxu0 %v6829_v37 }
 0x6b7   :  { %v702_v34 = vpop.xlane.xlu0 %701 }
 0x6b8   :  { %v704_v36 = vmul.f32 %v702_v34, %v7574_v61  ;;  %v5310_v34 = vld [vmem:[%s9158_s8 + $0x90] sm:$0xf] }
 0x6b9   :  { %1176 = vmatpush.bf16.msra.mxu0 %v6828_v25  ;;  %v5311_v30 = vor.u32 %v6857_v26, %v5310_v34  ;;  %v6870_v34 = vld [vmem:[%s9159_s10 + $0x160] sm:$0xff]  ;;  %v6861_v26 = vld [vmem:[%s9159_s10 + $0x118] sm:$0xff] }
 0x6ba   :  { %v7246_v43 = vpop.eup %7245  ;;  %v706_v44 = vadd.f32 1e-05, %v704_v36  ;;  %v5307_v36 = vor.u32 %v6854_v32, %v5304_v33  ;;  %v6863_v32 = vld [vmem:[%s9159_s10 + $0x128] sm:$0xff]  ;;  %v6862_v33 = vld [vmem:[%s9159_s10 + $0x120] sm:$0xff] }
 0x6bb   :  { %v708_v46 = vmul.f32 %v7246_v43, %v705_v28  ;;  %vm714_vm13 = vweird.f32 %v7246_v43  ;;  %v6818_v28 = vld [vmem:[%s9159_s10] sm:$0xff] }
 0x6bc   :  { %7247 = vrsqrt.f32 %v706_v44  ;;  %vm715_vm15 = vmor %vm713_vm14, %vm714_vm13  ;;  %vm723_vm4 = vweird.f32 %v706_v44 }
 0x6bd   :  { %v709_v47 = vmul.f32 %v7246_v43, %v708_v46  ;;  %1177 = vmatpush.bf16.msra.mxu0 %v6827_v29 }
 0x6bf   :  { %v710_v52 = vmul.f32 0.5, %v709_v47 }
 0x6c1   :  { %v711_v53 = vsub.f32 1.5, %v710_v52  ;;  %1178 = vmatpush.bf16.msra.mxu0 %v6826_v21  ;;  %v749_v52 = vperm.slane %v746_v38, 1  ;;  %v6873_v21 = vld [vmem:[%s9159_s10 + $0x178] sm:$0xff] }
 0x6c2   :  { %v7248_v56 = vpop.eup %7247  ;;  %v6893_v38 = vld [vmem:[%s9159_s10 + $0x1f8] sm:$0xff] }
 0x6c3   :  { %v712_v57 = vmul.f32 %v7246_v43, %v711_v53  ;;  %v718_v58 = vmul.f32 %v7248_v56, %v706_v44  ;;  %vm724_vm3 = vweird.f32 %v7248_v56 }
 0x6c4   :  { %vm725_vm5 = vmor %vm723_vm4, %vm724_vm3 }
 0x6c5   :  { %v719_v59 = vmul.f32 %v7248_v56, %v718_v58  ;;  %v716_v2 = vsel %vm715_vm15, %v7246_v43, %v712_v57  ;;  %v845_v43 = vld [vmem:[%s9160_s9 + $0x2] sm:$0x3]  ;;  %v6876_v57 = vld [vmem:[%s9158_s8 + $0x9c] sm:$0xf] }
 0x6c6   :  { %v727_v1 = vmul.f32 %v716_v2, %v7577_v63  ;;  %v6849_v63 = vld [vmem:[%s9159_s10 + $0xd8] sm:$0xff]  ;;  %v848_v46 = vperm.slane %v845_v43, 1  ;;  %v847_v55 = vperm.slane %v845_v43, 0  ;;  %v6892_v43 = vld [vmem:[%s9159_s10 + $0x1f0] sm:$0xff] }
 0x6c7   :  { %v720_v62 = vmul.f32 0.5, %v719_v59  ;;  %1051 = vmatpush.bf16.msra.mxu3 %v6849_v63  ;;  %v5394_v58 = vld [vmem:[%s9158_s8 + $0xd8] sm:$0xf0] }
 0x6c8   :  { %v733_v8 = vmul.f32 %v7199_v0, %v727_v1 }
 0x6c9   :  { %v721_v3 = vsub.f32 1.5, %v720_v62 }
 0x6ca   :  { %v7688_v12 = vadd.f32 %v7200_v7, %v733_v8 }
 0x6cb   :  { %v722_v4 = vmul.f32 %v7248_v56, %v721_v3  ;;  %1052 = vmatpush.bf16.msra.mxu3 %v6848_v17  ;;  %v6877_v17 = vld [vmem:[%s9158_s8 + $0xd4] sm:$0xf0] }
 0x6cc   :  { %v5393_v25 = vor.u32 %v6877_v17, %v5392_v16  ;;  %v6894_v16 = vld [vmem:[%s9158_s8 + $0x24] sm:$0xf] }
 0x6cd   :  { %v726_v6 = vsel %vm725_vm5, %v7248_v56, %v722_v4  ;;  %v5397_v4 = vor.u32 %v6876_v57, %v5394_v58  ;;  %v6880_v57 = vld [vmem:[%s9159_s10 + $0x190] sm:$0xff]  ;;  %v6878_v17 = vld [vmem:[%s9159_s10 + $0x180] sm:$0xff] }
 0x6ce   :  { %v728_v9 = vmul.f32 %v726_v6, %v7583_v5  ;;  %v6821_v5 = vld [vmem:[%s9159_s10 + $0x18] sm:$0xff]  ;;  %v6888_v58 = vld [vmem:[%s9159_s10 + $0x1d0] sm:$0xff] }
 0x6cf   :  { %1161 = vmatpush.bf16.msra.mxu2 %v6821_v5  ;;  %1053 = vmatpush.bf16.msra.mxu3 %v6847_v20 }
 0x6d0   :  { %v734_v11 = vmul.f32 %v7199_v0, %v728_v9  ;;  %v6874_v9 = vld [vmem:[%s9158_s8 + $0x1c] sm:$0xf] }
 0x6d2   :  { %v7690_v13 = vadd.f32 %v7200_v7, %v734_v11  ;;  %v5386_v11 = vld [vmem:[%s9158_s8 + $0x58] sm:$0xf0] }
 0x6d3   :  { %1162 = vmatpush.bf16.msra.mxu2 %v6820_v18  ;;  %1054 = vmatpush.bf16.msra.mxu3 %v6846_v27  ;;  %v5389_v37 = vor.u32 %v6874_v9, %v5386_v11 }
 0x6d4   :  { %v7694_v14 = vpack.c.bf16 %v7690_v13, %v7688_v12 }
 0x6d6   :  { %5152 = vmatmul.msk.bf16.vlgmr.msra.gmra.mxu1 %vm79_vm0, %v7694_v14  ;;  %5153 = vmatmul.msk.bf16.vlgmr.msrb.gmra.mxu3 %vm79_vm0, %v7694_v14 }
 0x6d7   :  { %5170 = vmatmul.msk.bf16.vlgmr.msrb.gmra.mxu2 %vm79_vm0, %v7694_v14  ;;  %5171 = vmatmul.msk.bf16.vlgmr.msrb.gmra.mxu0 %vm79_vm0, %v7694_v14 }
 0x6d8   :  { %1163 = vmatpush.bf16.msra.mxu2 %v6819_v22  ;;  %1235 = vmatpush.bf16.msrb.mxu3 %v5315_v60  ;;  %v6871_v60 = vld [vmem:[%s9159_s10 + $0x168] sm:$0xff] }
 0x6d9   :  { %1221 = vmatpush.bf16.msra.mxu1 %v5311_v30  ;;  %1391 = vmatpush.bf16.msrb.mxu0 %v6873_v21  ;;  %v6869_v30 = vld [vmem:[%s9159_s10 + $0x158] sm:$0xff]  ;;  %v5548_v21 = vld [vmem:[%s9158_s8 + $0x28] sm:$0xf] }
 0x6dc   :  { %1164 = vmatpush.bf16.msra.mxu2 %v6818_v28  ;;  %1236 = vmatpush.bf16.msrb.mxu3 %v5307_v36  ;;  %v5384_v28 = vld [vmem:[%s9158_s8 + $0x18] sm:$0xf] }
 0x6dd   :  { %1222 = vmatpush.bf16.msra.mxu1 %v5303_v35  ;;  %v5385_v29 = vor.u32 %v6875_v24, %v5384_v28  ;;  %1392 = vmatpush.bf16.msrb.mxu0 %v6872_v42  ;;  %v6885_v36 = vld [vmem:[%s9159_s10 + $0x1b8] sm:$0xff]  ;;  %v6867_v35 = vld [vmem:[%s9159_s10 + $0x148] sm:$0xff] }
 0x6de   :  { %v6917_v28 = vld [vmem:[%s9158_s8 + $0xe4] sm:$0xf0]  ;;  %v6916_v24 = vld [vmem:[%s9158_s8 + $0xac] sm:$0xf] }
 0x6e0   :  { %1377 = vmatpush.bf16.msrb.mxu2 %v6865_v51  ;;  %v5558_v51 = vld [vmem:[%s9158_s8 + $0xe8] sm:$0xf0] }
 0x6e1   :  { %1393 = vmatpush.bf16.msrb.mxu0 %v6871_v60  ;;  %v5561_v42 = vor.u32 %v6916_v24, %v5558_v51  ;;  %v5550_v60 = vld [vmem:[%s9158_s8 + $0x68] sm:$0xf0]  ;;  %v6932_v51 = vld [vmem:[%s9159_s10 + $0x2f0] sm:$0xff] }
 0x6e4   :  { %1378 = vmatpush.bf16.msrb.mxu2 %v6864_v31  ;;  %v6915_v31 = vld [vmem:[%s9158_s8 + $0x64] sm:$0xf0] }
 0x6e5   :  { %1394 = vmatpush.bf16.msrb.mxu0 %v6870_v34 }
 0x6e8   :  { %1379 = vmatpush.bf16.msrb.mxu2 %v6863_v32  ;;  %v6914_v32 = vld [vmem:[%s9158_s8 + $0x2c] sm:$0xf] }
 0x6e9   :  { %1395 = vmatpush.bf16.msrb.mxu0 %v6869_v30  ;;  %v5553_v30 = vor.u32 %v6914_v32, %v5550_v60  ;;  %v6931_v32 = vld [vmem:[%s9159_s10 + $0x2e8] sm:$0xff] }
 0x6ec   :  { %1380 = vmatpush.bf16.msrb.mxu2 %v6862_v33 }
 0x6ed   :  { %1396 = vmatpush.bf16.msrb.mxu0 %v6868_v40 }
 0x6f0   :  { %1381 = vmatpush.bf16.msrb.mxu2 %v6861_v26  ;;  %v5549_v26 = vor.u32 %v6915_v31, %v5548_v21  ;;  %v6906_v21 = vld [vmem:[%s9159_s10 + $0x240] sm:$0xff] }
 0x6f1   :  { %1397 = vmatpush.bf16.msrb.mxu0 %v6867_v35  ;;  %v6922_v31 = vld [vmem:[%s9159_s10 + $0x2a0] sm:$0xff] }
 0x753   :  { %v784_v39 = vpop.f32.mrf.mxu1 }
 0x754   :  { %v894_v44 = vpop.f32.mrf.mxu0  ;;  %v785_v10 = vadd.f32 %v784_v39, %v748_v45  ;;  %v6860_v39 = vld [vmem:[%s9159_s10 + $0x110] sm:$0xff] }
 0x755   :  { %v895_v49 = vadd.f32 %v894_v44, %v848_v46  ;;  %1382 = vmatpush.bf16.msrb.mxu2 %v6860_v39  ;;  %v6859_v44 = vld [vmem:[%s9159_s10 + $0x108] sm:$0xff] }
 0x756   :  { %v803_v59 = vmax.f32 %v785_v10, 0.0  ;;  %v6866_v10 = vld [vmem:[%s9159_s10 + $0x140] sm:$0xff] }
 0x757   :  { %v900_v62 = vmax.f32 %v895_v49, 0.0  ;;  %v6890_v49 = vld [vmem:[%s9159_s10 + $0x1e0] sm:$0xff]  ;;  %1398 = vmatpush.bf16.msrb.mxu0 %v6866_v10 }
 0x759   :  { %v798_v47 = vpop.f32.mrf.mxu3  ;;  %1383 = vmatpush.bf16.msrb.mxu2 %v6859_v44 }
 0x75a   :  { %v880_v48 = vpop.f32.mrf.mxu2  ;;  %v799_v0 = vadd.f32 %v798_v47, %v749_v52  ;;  %v6858_v47 = vld [vmem:[%s9159_s10 + $0x100] sm:$0xff] }
 0x75b   :  { %v786_v50 = vpop.f32.mrf.mxu1  ;;  %v881_v6 = vadd.f32 %v880_v48, %v847_v55  ;;  %v6882_v48 = vld [vmem:[%s9159_s10 + $0x1a0] sm:$0xff] }
 0x75c   :  { %v787_v53 = vadd.f32 %v786_v50, %v748_v45  ;;  %v896_v54 = vpop.f32.mrf.mxu0  ;;  %v804_v18 = vmax.f32 %v799_v0, 0.0  ;;  %v6883_v45 = vld [vmem:[%s9159_s10 + $0x1a8] sm:$0xff]  ;;  %v6881_v50 = vld [vmem:[%s9159_s10 + $0x198] sm:$0xff]  ;;  %v6897_v0 = vld [vmem:[%s9158_s8 + $0xdc] sm:$0xf0] }
 0x75d   :  { %v897_v56 = vadd.f32 %v896_v54, %v848_v46  ;;  %v899_v20 = vmax.f32 %v881_v6, 0.0  ;;  %v6891_v46 = vld [vmem:[%s9159_s10 + $0x1e8] sm:$0xff]  ;;  %1384 = vmatpush.bf16.msrb.mxu2 %v6858_v47 }
 0x75e   :  { %v805_v2 = vmax.f32 %v787_v53, 0.0  ;;  %v6887_v6 = vld [vmem:[%s9159_s10 + $0x1c8] sm:$0xff] }
 0x75f   :  { %v902_v3 = vmax.f32 %v897_v56, 0.0 }
 0x760   :  { %v807_v1 = vpack.c.bf16 %v805_v2, %v803_v59 }
 0x761   :  { %v904_v7 = vpack.c.bf16 %v902_v3, %v900_v62  ;;  %v800_v8 = vpop.f32.mrf.mxu3  ;;  %v5474_v3 = vld [vmem:[%s9158_s8 + $0xa0] sm:$0xf] }
 0x762   :  { %v801_v63 = vadd.f32 %v800_v8, %v749_v52  ;;  %v882_v5 = vpop.f32.mrf.mxu2  ;;  %1165 = vmatmul.bf16.vlgmr.msra.gmra.mxu2 %v807_v1  ;;  %v6889_v52 = vld [vmem:[%s9159_s10 + $0x1d8] sm:$0xff]  ;;  %v6896_v1 = vld [vmem:[%s9158_s8 + $0xa4] sm:$0xf] }
 0x763   :  { %v883_v15 = vadd.f32 %v882_v5, %v847_v55  ;;  %1055 = vmatmul.bf16.vlgmr.msra.gmra.mxu3 %v904_v7  ;;  %v5475_v7 = vor.u32 %v6897_v0, %v5474_v3  ;;  %v5476_v8 = vld [vmem:[%s9158_s8 + $0xe0] sm:$0xf0]  ;;  %v5466_v5 = vld [vmem:[%s9158_s8 + $0x20] sm:$0xf] }
 0x764   :  { %v806_v19 = vmax.f32 %v801_v63, 0.0  ;;  %1457 = vmatpush.bf16.msra.mxu3 %v5397_v4  ;;  %v6879_v4 = vld [vmem:[%s9159_s10 + $0x188] sm:$0xff]  ;;  %v5479_v9 = vor.u32 %v6896_v1, %v5476_v8  ;;  %v6912_v8 = vld [vmem:[%s9159_s10 + $0x270] sm:$0xff] }
 0x765   :  { %v901_v22 = vmax.f32 %v883_v15, 0.0  ;;  %1665 = vmatpush.bf16.msra.mxu2 %v5475_v7  ;;  %v6895_v15 = vld [vmem:[%s9158_s8 + $0x5c] sm:$0xf0]  ;;  %v6913_v7 = vld [vmem:[%s9159_s10 + $0x278] sm:$0xff] }
 0x766   :  { %v808_v23 = vpack.c.bf16 %v806_v19, %v804_v18  ;;  %v6886_v18 = vld [vmem:[%s9159_s10 + $0x1c0] sm:$0xff]  ;;  %v5467_v19 = vor.u32 %v6895_v15, %v5466_v5  ;;  %v6911_v5 = vld [vmem:[%s9159_s10 + $0x268] sm:$0xff]  ;;  %v6904_v15 = vld [vmem:[%s9159_s10 + $0x230] sm:$0xff] }
 0x767   :  { %v903_v27 = vpack.c.bf16 %v901_v22, %v899_v20  ;;  %v1189_v22 = vld [vmem:[%s9160_s9 + $0x4] sm:$0x3] }
 0x768   :  { %1179 = vmatmul.bf16.vlgmr.msra.gmra.mxu0 %v808_v23  ;;  %1458 = vmatpush.bf16.msra.mxu3 %v5389_v37  ;;  %v5468_v37 = vld [vmem:[%s9158_s8 + $0x60] sm:$0xf0]  ;;  %v1191_v33 = vperm.slane %v1189_v22, 0  ;;  %v1192_v34 = vperm.slane %v1189_v22, 1  ;;  %v6924_v22 = vld [vmem:[%s9159_s10 + $0x2b0] sm:$0xff] }
 0x769   :  { %1041 = vmatmul.bf16.vlgmr.msrb.gmra.mxu1 %v903_v27  ;;  %1679 = vmatpush.bf16.msra.mxu0 %v5479_v9  ;;  %v5471_v20 = vor.u32 %v6894_v16, %v5468_v37  ;;  %v5556_v27 = vld [vmem:[%s9158_s8 + $0xa8] sm:$0xf]  ;;  %v6905_v9 = vld [vmem:[%s9159_s10 + $0x238] sm:$0xff]  ;;  %v6910_v16 = vld [vmem:[%s9159_s10 + $0x260] sm:$0xff] }
 0x76a   :  { %1443 = vmatpush.bf16.msrb.mxu1 %v5393_v25  ;;  %1666 = vmatpush.bf16.msra.mxu2 %v5467_v19  ;;  %v6925_v19 = vld [vmem:[%s9159_s10 + $0x2b8] sm:$0xff]  ;;  %v6902_v37 = vld [vmem:[%s9159_s10 + $0x220] sm:$0xff] }
 0x76d   :  { %1680 = vmatpush.bf16.msra.mxu0 %v5471_v20  ;;  %v6908_v20 = vld [vmem:[%s9159_s10 + $0x250] sm:$0xff] }
 0x76e   :  { %1444 = vmatpush.bf16.msrb.mxu1 %v5385_v29  ;;  %v5557_v29 = vor.u32 %v6917_v28, %v5556_v27  ;;  %v6907_v27 = vld [vmem:[%s9159_s10 + $0x248] sm:$0xff] }
 0x76f   :  { %v6923_v28 = vld [vmem:[%s9159_s10 + $0x2a8] sm:$0xff] }
 0x773   :  { %5317 = vmatmul.msk.bf16.vlgmr.msrb.gmra.mxu3 %vm79_vm0, %v7694_v14 }
 0x774   :  { %1613 = vmatpush.bf16.msrb.mxu3 %v6893_v38 }
 0x778   :  { %1614 = vmatpush.bf16.msrb.mxu3 %v6892_v43 }
 0x779   :  { %5316 = vmatmul.msk.bf16.vlgmr.msra.gmra.mxu1 %vm79_vm0, %v7694_v14 }
 0x77a   :  { %1599 = vmatpush.bf16.msra.mxu1 %v6885_v36 }
 0x77c   :  { %1615 = vmatpush.bf16.msrb.mxu3 %v6891_v46 }
 0x77e   :  { %1600 = vmatpush.bf16.msra.mxu1 %v6884_v41 }
 0x780   :  { %1616 = vmatpush.bf16.msrb.mxu3 %v6890_v49 }
 0x782   :  { %1601 = vmatpush.bf16.msra.mxu1 %v6883_v45 }
 0x783   :  { %5399 = vmatmul.msk.bf16.vlgmr.msra.gmra.mxu3 %vm79_vm0, %v7694_v14 }
 0x784   :  { %1617 = vmatpush.bf16.msrb.mxu3 %v6889_v52 }
 0x786   :  { %1602 = vmatpush.bf16.msra.mxu1 %v6882_v48  ;;  %v1411_v48 = vld [vmem:[%s9160_s9 + $0x6] sm:$0x3] }
 0x787   :  { %v1413_v52 = vperm.slane %v1411_v48, 0 }
 0x788   :  { %1618 = vmatpush.bf16.msrb.mxu3 %v6888_v58 }
 0x789   :  { %5398 = vmatmul.msk.bf16.vlgmr.msrb.gmra.mxu1 %vm79_vm0, %v7694_v14 }
 0x78a   :  { %1603 = vmatpush.bf16.msra.mxu1 %v6881_v50 }
 0x78c   :  { %1619 = vmatpush.bf16.msrb.mxu3 %v6887_v6 }
 0x78e   :  { %1604 = vmatpush.bf16.msra.mxu1 %v6880_v57 }
 0x790   :  { %1620 = vmatpush.bf16.msrb.mxu3 %v6886_v18  ;;  %v6909_v18 = vld [vmem:[%s9159_s10 + $0x258] sm:$0xff] }
 0x792   :  { %1605 = vmatpush.bf16.msra.mxu1 %v6879_v4 }
 0x794   :  { %1901 = vmatpush.bf16.msra.mxu3 %v5561_v42  ;;  %v6899_v42 = vld [vmem:[%s9159_s10 + $0x208] sm:$0xff] }
 0x796   :  { %1606 = vmatpush.bf16.msra.mxu1 %v6878_v17  ;;  %v6903_v17 = vld [vmem:[%s9159_s10 + $0x228] sm:$0xff] }
 0x798   :  { %1902 = vmatpush.bf16.msra.mxu3 %v5553_v30  ;;  %v6930_v30 = vld [vmem:[%s9159_s10 + $0x2e0] sm:$0xff] }
 0x79a   :  { %1887 = vmatpush.bf16.msrb.mxu1 %v5557_v29  ;;  %v6900_v29 = vld [vmem:[%s9159_s10 + $0x210] sm:$0xff] }
 0x79e   :  { %1888 = vmatpush.bf16.msrb.mxu1 %v5549_v26  ;;  %v6898_v26 = vld [vmem:[%s9159_s10 + $0x200] sm:$0xff] }
 0x7e5   :  { %v1166_v56 = vpop.f32.mrf.mxu2  ;;  %v1180_v2 = vpop.f32.mrf.mxu0 }
 0x7e6   :  { %v1042_v53 = vpop.f32.mrf.mxu1  ;;  %v1056_v54 = vpop.f32.mrf.mxu3 }
 0x7e7   :  { %v1057_v55 = vadd.f32 %v1056_v54, %v1042_v53  ;;  %v1414_v53 = vperm.slane %v1411_v48, 1  ;;  %v5632_v48 = vld [vmem:[%s9158_s8 + $0x70] sm:$0xf0] }
 0x7e9   :  { %v1167_v59 = vadd.f32 %v1166_v56, %v1057_v55 }
 0x7eb   :  { %v7904_v62 = vadd.f32 %v1180_v2, %v1167_v59 }
 0x7ed   :  { %v8032_v24 = vpop.f32.mrf.mxu0  ;;  %v8052_v60 = vpop.f32.mrf.mxu2 }
 0x7ee   :  { %v7924_v11 = vpop.f32.mrf.mxu1  ;;  %v7926_v63 = vpop.f32.mrf.mxu3 }
 0x7f6   :  { %v1224_v23 = vpop.f32.mrf.mxu1  ;;  %v1238_v25 = vpop.f32.mrf.mxu3 }
 0x7f7   :  { %v1225_v36 = vadd.f32 %v1224_v23, %v1191_v33  ;;  %v1239_v38 = vadd.f32 %v1238_v25, %v1192_v34  ;;  %v6901_v23 = vld [vmem:[%s9159_s10 + $0x218] sm:$0xff] }
 0x7f8   :  { %v6933_v25 = vld [vmem:[%s9159_s10 + $0x2f8] sm:$0xff] }
 0x7f9   :  { %v1243_v44 = vmax.f32 %v1225_v36, 0.0  ;;  %v1244_v35 = vmax.f32 %v1239_v38, 0.0  ;;  %v6920_v36 = vld [vmem:[%s9159_s10 + $0x290] sm:$0xff]  ;;  %v6929_v38 = vld [vmem:[%s9159_s10 + $0x2d8] sm:$0xff] }
 0x7fe   :  { %v1226_v39 = vpop.f32.mrf.mxu1  ;;  %v1240_v40 = vpop.f32.mrf.mxu3 }
 0x7ff   :  { %v1227_v41 = vadd.f32 %v1226_v39, %v1191_v33  ;;  %v1241_v43 = vadd.f32 %v1240_v40, %v1192_v34  ;;  %v6921_v33 = vld [vmem:[%s9159_s10 + $0x298] sm:$0xff]  ;;  %v6936_v40 = vld [vmem:[%s9158_s8 + $0xb4] sm:$0xf] }
 0x801   :  { %v1245_v45 = vmax.f32 %v1227_v41, 0.0  ;;  %v1246_v46 = vmax.f32 %v1241_v43, 0.0  ;;  %v5640_v41 = vld [vmem:[%s9158_s8 + $0xf0] sm:$0xf0] }
 0x803   :  { %v1247_v47 = vpack.c.bf16 %v1245_v45, %v1243_v44  ;;  %v1248_v10 = vpack.c.bf16 %v1246_v46, %v1244_v35  ;;  %v6919_v44 = vld [vmem:[%s9159_s10 + $0x288] sm:$0xff]  ;;  %v5643_v35 = vor.u32 %v6936_v40, %v5640_v41 }
 0x805   :  { %1385 = vmatmul.bf16.vlgmr.msrb.gmra.mxu2 %v1247_v47  ;;  %1399 = vmatmul.bf16.vlgmr.msrb.gmra.mxu0 %v1248_v10  ;;  %v6928_v47 = vld [vmem:[%s9159_s10 + $0x2d0] sm:$0xff] }
 0x806   :  { %v1446_v49 = vpop.f32.mrf.mxu1  ;;  %v1460_v50 = vpop.f32.mrf.mxu3  ;;  %1835 = vmatpush.bf16.msrb.mxu0 %v6913_v7  ;;  %1821 = vmatpush.bf16.msrb.mxu2 %v6905_v9  ;;  %v6934_v10 = vld [vmem:[%s9158_s8 + $0x34] sm:$0xf]  ;;  %v6957_v7 = vld [vmem:[%s9158_s8 + $0xf4] sm:$0xf0] }
 0x807   :  { %v1447_v54 = vadd.f32 %v1446_v49, %v1413_v52  ;;  %v1461_v55 = vadd.f32 %v1460_v50, %v1414_v53  ;;  %v6918_v49 = vld [vmem:[%s9159_s10 + $0x280] sm:$0xff]  ;;  %v5638_v50 = vld [vmem:[%s9158_s8 + $0xb0] sm:$0xf] }
 0x809   :  { %v1465_v2 = vmax.f32 %v1447_v54, 0.0  ;;  %v1466_v3 = vmax.f32 %v1461_v55, 0.0 }
 0x80a   :  { %1836 = vmatpush.bf16.msrb.mxu0 %v6912_v8  ;;  %1822 = vmatpush.bf16.msrb.mxu2 %v6904_v15  ;;  %v5712_v8 = vld [vmem:[%s9158_s8 + $0x38] sm:$0xf] }
 0x80e   :  { %v1448_v56 = vpop.f32.mrf.mxu1  ;;  %v1462_v57 = vpop.f32.mrf.mxu3  ;;  %1837 = vmatpush.bf16.msrb.mxu0 %v6911_v5  ;;  %1823 = vmatpush.bf16.msrb.mxu2 %v6903_v17  ;;  %v6956_v17 = vld [vmem:[%s9158_s8 + $0xbc] sm:$0xf] }
 0x80f   :  { %v1449_v58 = vadd.f32 %v1448_v56, %v1413_v52  ;;  %v1463_v59 = vadd.f32 %v1462_v57, %v1414_v53  ;;  %v6937_v52 = vld [vmem:[%s9158_s8 + $0xec] sm:$0xf0]  ;;  %v6927_v53 = vld [vmem:[%s9159_s10 + $0x2c8] sm:$0xff] }
 0x810   :  { %v5639_v54 = vor.u32 %v6937_v52, %v5638_v50  ;;  %v5630_v57 = vld [vmem:[%s9158_s8 + $0x30] sm:$0xf] }
 0x811   :  { %v1467_v0 = vmax.f32 %v1449_v58, 0.0  ;;  %v1468_v1 = vmax.f32 %v1463_v59, 0.0  ;;  %v6935_v58 = vld [vmem:[%s9158_s8 + $0x6c] sm:$0xf0]  ;;  %v1633_v59 = vld [vmem:[%s9160_s9 + $0x8] sm:$0x3] }
 0x812   :  { %1838 = vmatpush.bf16.msrb.mxu0 %v6910_v16  ;;  %1824 = vmatpush.bf16.msrb.mxu2 %v6902_v37  ;;  %v6955_v16 = vld [vmem:[%s9158_s8 + $0x74] sm:$0xf0] }
 0x813   :  { %v1469_v4 = vpack.c.bf16 %v1467_v0, %v1465_v2  ;;  %v1470_v6 = vpack.c.bf16 %v1468_v1, %v1466_v3  ;;  %v6926_v3 = vld [vmem:[%s9159_s10 + $0x2c0] sm:$0xff]  ;;  %v5631_v0 = vor.u32 %v6935_v58, %v5630_v57  ;;  %v1636_v1 = vperm.slane %v1633_v59, 1  ;;  %v6953_v58 = vld [vmem:[%s9159_s10 + $0x378] sm:$0xff] }
 0x815   :  { %1607 = vmatmul.bf16.vlgmr.msra.gmra.mxu1 %v1469_v4  ;;  %1621 = vmatmul.bf16.vlgmr.msrb.gmra.mxu3 %v1470_v6  ;;  %v5720_v6 = vld [vmem:[%s9158_s8 + $0xb8] sm:$0xf] }
 0x816   :  { %5480 = vmatmul.msk.bf16.vlgmr.msra.gmra.mxu2 %vm79_vm0, %v7694_v14  ;;  %5481 = vmatmul.msk.bf16.vlgmr.msra.gmra.mxu0 %vm79_vm0, %v7694_v14  ;;  %v5721_v15 = vor.u32 %v6957_v7, %v5720_v6  ;;  %v6943_v6 = vld [vmem:[%s9159_s10 + $0x328] sm:$0xff]  ;;  %v6948_v7 = vld [vmem:[%s9159_s10 + $0x350] sm:$0xff] }
 0x817   :  { %1839 = vmatpush.bf16.msrb.mxu0 %v6909_v18  ;;  %2043 = vmatpush.bf16.msra.mxu1 %v6925_v19  ;;  %v5722_v18 = vld [vmem:[%s9158_s8 + $0xf8] sm:$0xf0] }
 0x818   :  { %1825 = vmatpush.bf16.msrb.mxu2 %v6901_v23  ;;  %2057 = vmatpush.bf16.msrb.mxu3 %v6933_v25  ;;  %v5713_v25 = vor.u32 %v6955_v16, %v5712_v8  ;;  %v6964_v8 = vld [vmem:[%s9159_s10 + $0x3b0] sm:$0xff]  ;;  %v6941_v16 = vld [vmem:[%s9159_s10 + $0x318] sm:$0xff] }
 0x81b   :  { %1840 = vmatpush.bf16.msrb.mxu0 %v6908_v20  ;;  %2044 = vmatpush.bf16.msra.mxu1 %v6924_v22  ;;  %v5725_v20 = vor.u32 %v6956_v17, %v5722_v18  ;;  %v6946_v17 = vld [vmem:[%s9159_s10 + $0x340] sm:$0xff] }
 0x81c   :  { %1826 = vmatpush.bf16.msrb.mxu2 %v6900_v29  ;;  %2058 = vmatpush.bf16.msrb.mxu3 %v6932_v51  ;;  %v6962_v18 = vld [vmem:[%s9159_s10 + $0x3a0] sm:$0xff] }
 0x81f   :  { %1841 = vmatpush.bf16.msrb.mxu0 %v6907_v27  ;;  %2045 = vmatpush.bf16.msra.mxu1 %v6923_v28  ;;  %v1635_v27 = vperm.slane %v1633_v59, 0  ;;  %v6952_v59 = vld [vmem:[%s9159_s10 + $0x370] sm:$0xff] }
 0x820   :  { %1827 = vmatpush.bf16.msrb.mxu2 %v6899_v42  ;;  %2059 = vmatpush.bf16.msrb.mxu3 %v6931_v32 }
 0x823   :  { %1842 = vmatpush.bf16.msrb.mxu0 %v6906_v21  ;;  %2046 = vmatpush.bf16.msra.mxu1 %v6922_v31 }
 0x824   :  { %1828 = vmatpush.bf16.msrb.mxu2 %v6898_v26  ;;  %2060 = vmatpush.bf16.msrb.mxu3 %v6930_v30  ;;  %v1855_v30 = vld [vmem:[%s9160_s9 + $0xa] sm:$0x3] }
 0x825   :  { %5562 = vmatmul.msk.bf16.vlgmr.msrb.gmra.mxu1 %vm79_vm0, %v7694_v14  ;;  %5563 = vmatmul.msk.bf16.vlgmr.msra.gmra.mxu3 %vm79_vm0, %v7694_v14  ;;  %v1857_v41 = vperm.slane %v1855_v30, 0 }
 0x827   :  { %2047 = vmatpush.bf16.msra.mxu1 %v6921_v33  ;;  %2123 = vmatpush.bf16.msra.mxu0 %v5643_v35  ;;  %v6954_v33 = vld [vmem:[%s9158_s8 + $0x3c] sm:$0xf] }
 0x828   :  { %2061 = vmatpush.bf16.msrb.mxu3 %v6929_v38  ;;  %2109 = vmatpush.bf16.msra.mxu2 %v5639_v54 }
 0x82b   :  { %2048 = vmatpush.bf16.msra.mxu1 %v6920_v36 }
 0x82c   :  { %2062 = vmatpush.bf16.msrb.mxu3 %v6928_v47  ;;  %2110 = vmatpush.bf16.msra.mxu2 %v5631_v0  ;;  %v1858_v47 = vperm.slane %v1855_v30, 1  ;;  %v6944_v0 = vld [vmem:[%s9159_s10 + $0x330] sm:$0xff] }
 0x82f   :  { %2049 = vmatpush.bf16.msra.mxu1 %v6919_v44 }
 0x830   :  { %2063 = vmatpush.bf16.msrb.mxu3 %v6927_v53 }
 0x833   :  { %2050 = vmatpush.bf16.msra.mxu1 %v6918_v49 }
 0x834   :  { %2064 = vmatpush.bf16.msrb.mxu3 %v6926_v3  ;;  %v6945_v3 = vld [vmem:[%s9159_s10 + $0x338] sm:$0xff] }
 0x837   :  { %2331 = vmatpush.bf16.msrb.mxu1 %v5721_v15  ;;  %v6963_v15 = vld [vmem:[%s9159_s10 + $0x3a8] sm:$0xff] }
 0x838   :  { %2345 = vmatpush.bf16.msra.mxu3 %v5725_v20  ;;  %v6940_v20 = vld [vmem:[%s9159_s10 + $0x310] sm:$0xff] }
 0x83b   :  { %2332 = vmatpush.bf16.msrb.mxu1 %v5713_v25  ;;  %v6972_v25 = vld [vmem:[%s9159_s10 + $0x3f0] sm:$0xff] }
 0x882   :  { %v1400_v34 = vpop.f32.mrf.mxu0 }
 0x888   :  { %v1386_v39 = vpop.f32.mrf.mxu2 }
 0x889   :  { %v1401_v43 = vadd.f32 %v1400_v34, %v1386_v39  ;;  %v5714_v34 = vld [vmem:[%s9158_s8 + $0x78] sm:$0xf0] }
 0x88a   :  { %v8078_v45 = vpop.f32.mrf.mxu0  ;;  %v5717_v38 = vor.u32 %v6954_v33, %v5714_v34  ;;  %v6958_v34 = vld [vmem:[%s9159_s10 + $0x380] sm:$0xff] }
 0x88b   :  { %v1405_v46 = vadd.f32 %v1401_v43, %v7904_v62  ;;  %v5635_v62 = vor.u32 %v6934_v10, %v5632_v48 }
 0x88c   :  { %2346 = vmatpush.bf16.msra.mxu3 %v5717_v38  ;;  %v6968_v38 = vld [vmem:[%s9159_s10 + $0x3d0] sm:$0xff] }
 0x88d   :  { %2124 = vmatpush.bf16.msra.mxu0 %v5635_v62 }
 0x890   :  { %v8102_v55 = vpop.f32.mrf.mxu2 }
 0x892   :  { %v1608_v56 = vpop.f32.mrf.mxu1 }
 0x893   :  { %v1682_v2 = vpop.f32.mrf.mxu0 }
 0x894   :  { %v1683_v19 = vadd.f32 %v1682_v2, %v1636_v1  ;;  %v6951_v2 = vld [vmem:[%s9159_s10 + $0x368] sm:$0xff] }
 0x896   :  { %v1688_v29 = vmax.f32 %v1683_v19, 0.0  ;;  %v6973_v19 = vld [vmem:[%s9159_s10 + $0x3f8] sm:$0xff] }
 0x898   :  { %v1622_v4 = vpop.f32.mrf.mxu3 }
 0x899   :  { %v1623_v9 = vadd.f32 %v1622_v4, %v1608_v56  ;;  %v1668_v5 = vpop.f32.mrf.mxu2  ;;  %v6965_v4 = vld [vmem:[%s9159_s10 + $0x3b8] sm:$0xff] }
 0x89a   :  { %v8134_v37 = vpop.f32.mrf.mxu1  ;;  %v1669_v21 = vadd.f32 %v1668_v5, %v1635_v27  ;;  %v6947_v5 = vld [vmem:[%s9159_s10 + $0x348] sm:$0xff] }
 0x89b   :  { %v8136_v22 = vadd.f32 %v1623_v9, %v1405_v46  ;;  %v1684_v23 = vpop.f32.mrf.mxu0  ;;  %v6942_v9 = vld [vmem:[%s9159_s10 + $0x320] sm:$0xff] }
 0x89c   :  { %v1685_v28 = vadd.f32 %v1684_v23, %v1636_v1  ;;  %v1687_v39 = vmax.f32 %v1669_v21, 0.0  ;;  %v6949_v1 = vld [vmem:[%s9159_s10 + $0x358] sm:$0xff]  ;;  %v6938_v21 = vld [vmem:[%s9159_s10 + $0x300] sm:$0xff] }
 0x89d   :  { %v6961_v23 = vld [vmem:[%s9159_s10 + $0x398] sm:$0xff] }
 0x89e   :  { %v1690_v51 = vmax.f32 %v1685_v28, 0.0  ;;  %v6939_v28 = vld [vmem:[%s9159_s10 + $0x308] sm:$0xff] }
 0x8a0   :  { %v1692_v31 = vpack.c.bf16 %v1690_v51, %v1688_v29  ;;  %v8138_v42 = vpop.f32.mrf.mxu3  ;;  %v6960_v29 = vld [vmem:[%s9159_s10 + $0x390] sm:$0xff]  ;;  %v6971_v51 = vld [vmem:[%s9159_s10 + $0x3e8] sm:$0xff] }
 0x8a1   :  { %v1670_v32 = vpop.f32.mrf.mxu2 }
 0x8a2   :  { %v1671_v26 = vadd.f32 %v1670_v32, %v1635_v27  ;;  %1843 = vmatmul.bf16.vlgmr.msrb.gmra.mxu0 %v1692_v31  ;;  %v1890_v36 = vpop.f32.mrf.mxu1  ;;  %v6959_v31 = vld [vmem:[%s9159_s10 + $0x388] sm:$0xff]  ;;  %v6970_v32 = vld [vmem:[%s9159_s10 + $0x3e0] sm:$0xff] }
 0x8a3   :  { %v1891_v35 = vadd.f32 %v1890_v36, %v1857_v41  ;;  %2279 = vmatpush.bf16.msrb.mxu0 %v6953_v58 }
 0x8a4   :  { %v1689_v40 = vmax.f32 %v1671_v26, 0.0  ;;  %v6969_v26 = vld [vmem:[%s9159_s10 + $0x3d8] sm:$0xff] }
 0x8a5   :  { %v1909_v48 = vmax.f32 %v1891_v35, 0.0 }
 0x8a6   :  { %v1691_v43 = vpack.c.bf16 %v1689_v40, %v1687_v39 }
 0x8a7   :  { %2280 = vmatpush.bf16.msrb.mxu0 %v6952_v59  ;;  %v2299_v59 = vld [vmem:[%s9160_s9 + $0xe] sm:$0x3] }
 0x8a8   :  { %1829 = vmatmul.bf16.vlgmr.msrb.gmra.mxu2 %v1691_v43  ;;  %v1904_v44 = vpop.f32.mrf.mxu3 }
 0x8a9   :  { %v1905_v62 = vadd.f32 %v1904_v44, %v1858_v47  ;;  %2265 = vmatpush.bf16.msrb.mxu2 %v6945_v3  ;;  %v6967_v44 = vld [vmem:[%s9159_s10 + $0x3c8] sm:$0xff]  ;;  %v2301_v3 = vperm.slane %v2299_v59, 0 }
 0x8aa   :  { %v1892_v46 = vpop.f32.mrf.mxu1 }
 0x8ab   :  { %v1893_v10 = vadd.f32 %v1892_v46, %v1857_v41  ;;  %v1910_v54 = vmax.f32 %v1905_v62, 0.0  ;;  %2281 = vmatpush.bf16.msrb.mxu0 %v6951_v2  ;;  %v2077_v41 = vld [vmem:[%s9160_s9 + $0xc] sm:$0x3] }
 0x8ac   :  { %v2080_v35 = vperm.slane %v2077_v41, 1  ;;  %v2079_v58 = vperm.slane %v2077_v41, 0 }
 0x8ad   :  { %v1911_v49 = vmax.f32 %v1893_v10, 0.0  ;;  %2266 = vmatpush.bf16.msrb.mxu2 %v6944_v0 }
 0x8af   :  { %v1913_v50 = vpack.c.bf16 %v1911_v49, %v1909_v48 }
 0x8b0   :  { %v1906_v52 = vpop.f32.mrf.mxu3 }
 0x8b1   :  { %v1907_v53 = vadd.f32 %v1906_v52, %v1858_v47  ;;  %2051 = vmatmul.bf16.vlgmr.msra.gmra.mxu1 %v1913_v50  ;;  %2267 = vmatpush.bf16.msrb.mxu2 %v6943_v6  ;;  %v6966_v47 = vld [vmem:[%s9159_s10 + $0x3c0] sm:$0xff] }
 0x8b2   :  { %5645 = vmatmul.msk.bf16.vlgmr.msra.gmra.mxu0 %vm79_vm0, %v7694_v14  ;;  %2487 = vmatpush.bf16.msra.mxu1 %v6965_v4 }
 0x8b3   :  { %v1912_v56 = vmax.f32 %v1907_v53, 0.0 }
 0x8b5   :  { %v1914_v57 = vpack.c.bf16 %v1912_v56, %v1910_v54  ;;  %2268 = vmatpush.bf16.msrb.mxu2 %v6942_v9 }
 0x8b6   :  { %2488 = vmatpush.bf16.msra.mxu1 %v6964_v8 }
 0x8b7   :  { %2065 = vmatmul.bf16.vlgmr.msrb.gmra.mxu3 %v1914_v57 }
 0x8b8   :  { %5644 = vmatmul.msk.bf16.vlgmr.msra.gmra.mxu2 %vm79_vm0, %v7694_v14  ;;  %2501 = vmatpush.bf16.msrb.mxu3 %v6973_v19 }
 0x8b9   :  { %2269 = vmatpush.bf16.msrb.mxu2 %v6941_v16 }
 0x8ba   :  { %2489 = vmatpush.bf16.msra.mxu1 %v6963_v15 }
 0x8bc   :  { %2502 = vmatpush.bf16.msrb.mxu3 %v6972_v25 }
 0x8bd   :  { %2270 = vmatpush.bf16.msrb.mxu2 %v6940_v20  ;;  %v2302_v20 = vperm.slane %v2299_v59, 1 }
 0x8be   :  { %2490 = vmatpush.bf16.msra.mxu1 %v6962_v18 }
 0x8c0   :  { %2503 = vmatpush.bf16.msrb.mxu3 %v6971_v51 }
 0x8c1   :  { %5726 = vmatmul.msk.bf16.vlgmr.msrb.gmra.mxu1 %vm79_vm0, %v7694_v14  ;;  %2271 = vmatpush.bf16.msrb.mxu2 %v6939_v28 }
 0x8c2   :  { %2491 = vmatpush.bf16.msra.mxu1 %v6961_v23 }
 0x8c4   :  { %2504 = vmatpush.bf16.msrb.mxu3 %v6970_v32 }
 0x8c5   :  { %2272 = vmatpush.bf16.msrb.mxu2 %v6938_v21  ;;  %v1059_v21 = vadd.f32 %v7926_v63, %v7924_v11  ;;  %v7201_v63 = vld [vmem:[%s9161_s11] ss:$0 sm:$0xff] }
 0x8c6   :  { %2492 = vmatpush.bf16.msra.mxu1 %v6960_v29 }
 0x8c7   :  { %5727 = vmatmul.msk.bf16.vlgmr.msra.gmra.mxu3 %vm79_vm0, %v7694_v14  ;;  %v6950_v14 = vld [vmem:[%s9159_s10 + $0x360] sm:$0xff] }
 0x8c8   :  { %2282 = vmatpush.bf16.msrb.mxu0 %v6950_v14  ;;  %2505 = vmatpush.bf16.msrb.mxu3 %v6969_v26  ;;  %v1403_v26 = vadd.f32 %v8078_v45, %v8102_v55 }
 0x8ca   :  { %2493 = vmatpush.bf16.msra.mxu1 %v6959_v31 }
 0x8cc   :  { %2283 = vmatpush.bf16.msrb.mxu0 %v6949_v1  ;;  %2506 = vmatpush.bf16.msrb.mxu3 %v6968_v38 }
 0x8ce   :  { %2494 = vmatpush.bf16.msra.mxu1 %v6958_v34  ;;  %v1169_v34 = vadd.f32 %v8052_v60, %v1059_v21 }
 0x8d0   :  { %2284 = vmatpush.bf16.msrb.mxu0 %v6948_v7  ;;  %2507 = vmatpush.bf16.msrb.mxu3 %v6967_v44  ;;  %v1183_v38 = vadd.f32 %v8032_v24, %v1169_v34 }
 0x8d2   :  { %v1406_v41 = vadd.f32 %v1403_v26, %v1183_v38 }
 0x8d4   :  { %2285 = vmatpush.bf16.msrb.mxu0 %v6947_v5  ;;  %2508 = vmatpush.bf16.msrb.mxu3 %v6966_v47 }
 0x8d8   :  { %2286 = vmatpush.bf16.msrb.mxu0 %v6946_v17 }
 0x91f   :  { %v1844_v27 = vpop.f32.mrf.mxu0 }
 0x927   :  { %v8238_v33 = vpop.f32.mrf.mxu0 }
 0x92b   :  { %v1830_v30 = vpop.f32.mrf.mxu2 }
 0x92c   :  { %v1845_v36 = vadd.f32 %v1844_v27, %v1830_v30 }
 0x92e   :  { %v1849_v39 = vadd.f32 %v1845_v36, %v8136_v22  ;;  %v2052_v40 = vpop.f32.mrf.mxu1 }
 0x92f   :  { %v2126_v43 = vpop.f32.mrf.mxu0 }
 0x930   :  { %v2127_v10 = vadd.f32 %v2126_v43, %v2080_v35 }
 0x932   :  { %v2132_v62 = vmax.f32 %v2127_v10, 0.0 }
 0x933   :  { %v1832_v46 = vpop.f32.mrf.mxu2 }
 0x934   :  { %v1847_v43 = vadd.f32 %v8238_v33, %v1832_v46 }
 0x936   :  { %v2054_v22 = vpop.f32.mrf.mxu1 }
 0x937   :  { %v2128_v48 = vpop.f32.mrf.mxu0 }
 0x938   :  { %v2129_v49 = vadd.f32 %v2128_v48, %v2080_v35 }
 0x93a   :  { %v2134_v50 = vmax.f32 %v2129_v49, 0.0  ;;  %v2066_v52 = vpop.f32.mrf.mxu3 }
 0x93b   :  { %v2067_v53 = vadd.f32 %v2066_v52, %v2052_v40  ;;  %v2112_v54 = vpop.f32.mrf.mxu2 }
 0x93c   :  { %v2136_v56 = vpack.c.bf16 %v2134_v50, %v2132_v62  ;;  %v2113_v14 = vadd.f32 %v2112_v54, %v2079_v58 }
 0x93d   :  { %v2071_v57 = vadd.f32 %v2067_v53, %v1849_v39  ;;  %v1625_v39 = vadd.f32 %v8138_v42, %v8134_v37 }
 0x93e   :  { %2287 = vmatmul.bf16.vlgmr.msrb.gmra.mxu0 %v2136_v56  ;;  %v2334_v2 = vpop.f32.mrf.mxu1  ;;  %v2131_v7 = vmax.f32 %v2113_v14, 0.0 }
 0x93f   :  { %v2335_v6 = vadd.f32 %v2334_v2, %v2301_v3  ;;  %v1628_v35 = vadd.f32 %v1625_v39, %v1406_v41 }
 0x941   :  { %v2353_v16 = vmax.f32 %v2335_v6, 0.0  ;;  %v1850_v10 = vadd.f32 %v1847_v43, %v1628_v35 }
 0x942   :  { %v2068_v0 = vpop.f32.mrf.mxu3 }
 0x943   :  { %v2114_v1 = vpop.f32.mrf.mxu2  ;;  %v2069_v45 = vadd.f32 %v2068_v0, %v2054_v22 }
 0x944   :  { %v2115_v4 = vadd.f32 %v2114_v1, %v2079_v58 }
 0x945   :  { %v2072_v49 = vadd.f32 %v2069_v45, %v1850_v10 }
 0x946   :  { %v2133_v8 = vmax.f32 %v2115_v4, 0.0  ;;  %v2336_v9 = vpop.f32.mrf.mxu1 }
 0x947   :  { %v2337_v5 = vadd.f32 %v2336_v9, %v2301_v3 }
 0x948   :  { %v2135_v15 = vpack.c.bf16 %v2133_v8, %v2131_v7  ;;  %v6974_v8 = vld [vmem:[%s9185_s23 + $0x10] sm:$0xff] }
 0x949   :  { %v2355_v17 = vmax.f32 %v2337_v5, 0.0 }
 0x94a   :  { %2273 = vmatmul.bf16.vlgmr.msrb.gmra.mxu2 %v2135_v15  ;;  %v2348_v18 = vpop.f32.mrf.mxu3 }
 0x94b   :  { %v2357_v19 = vpack.c.bf16 %v2355_v17, %v2353_v16  ;;  %v2349_v23 = vadd.f32 %v2348_v18, %v2302_v20 }
 0x94d   :  { %2495 = vmatmul.bf16.vlgmr.msra.gmra.mxu1 %v2357_v19  ;;  %v2354_v28 = vmax.f32 %v2349_v23, 0.0 }
 0x952   :  { %v2350_v25 = vpop.f32.mrf.mxu3 }
 0x953   :  { %v2351_v27 = vadd.f32 %v2350_v25, %v2302_v20 }
 0x955   :  { %v2356_v29 = vmax.f32 %v2351_v27, 0.0 }
 0x957   :  { %v2358_v51 = vpack.c.bf16 %v2356_v29, %v2354_v28 }
 0x959   :  { %2509 = vmatmul.bf16.vlgmr.msrb.gmra.mxu3 %v2358_v51 }
 0x9bb   :  { %v2288_v32 = vpop.f32.mrf.mxu0 }
 0x9c3   :  { %v2290_v47 = vpop.f32.mrf.mxu0 }
 0x9ca   :  { %v2496_v36 = vpop.f32.mrf.mxu1 }
 0x9cd   :  { %v2274_v31 = vpop.f32.mrf.mxu2 }
 0x9ce   :  { %v2289_v30 = vadd.f32 %v2288_v32, %v2274_v31  ;;  %v7202_v31 = vld [vmem:[%s9162_s12] ss:$0 sm:$0xff] }
 0x9d0   :  { %v2293_v44 = vadd.f32 %v2289_v30, %v2071_v57  ;;  %v7203_v30 = vld [vmem:[%s9163_s13] ss:$0 sm:$0xff] }
 0x9d2   :  { %v2498_v42 = vpop.f32.mrf.mxu1 }
 0x9d5   :  { %v2276_v60 = vpop.f32.mrf.mxu2 }
 0x9d6   :  { %v2291_v24 = vadd.f32 %v2290_v47, %v2276_v60 }
 0x9d8   :  { %v2294_v33 = vadd.f32 %v2291_v24, %v2072_v49 }
 0x9dc   :  { %v2510_v40 = vpop.f32.mrf.mxu3 }
 0x9dd   :  { %v2511_v11 = vadd.f32 %v2510_v40, %v2496_v36 }
 0x9df   :  { %v2515_v55 = vadd.f32 %v2511_v11, %v2293_v44  ;;  %v7204_v44 = vld [vmem:[%s9152_s3 + $0x1] ss:$0 sm:$0xff]  ;;  %s9188_s3 = smov 112  }
 0x9e1   :  { %v2521_v48 = vadd.f32 %v7201_v63, %v2515_v55 }
 0x9e3   :  { %v2523_v37 = vadd.f32 %v2521_v48, %v7688_v12 }
 0x9e4   :  { %v2512_v62 = vpop.f32.mrf.mxu3 }
 0x9e5   :  { %v2513_v46 = vadd.f32 %v2512_v62, %v2498_v42  ;;  %v2525_v50 = vsel %vm79_vm0, %v2523_v37, 0.0 }
 0x9e6   :  { %2526 = vadd.xlane.f32.xlu2 %v2525_v50 }
 0x9e7   :  { %v2516_v52 = vadd.f32 %v2513_v46, %v2294_v33 }
 0x9e9   :  { %v2522_v53 = vadd.f32 %v7201_v63, %v2516_v52 }
 0x9eb   :  { %v2524_v54 = vadd.f32 %v2522_v53, %v7690_v13  ;;  %v6975_v13 = vld [vmem:[%s9185_s23 + $0x18] sm:$0xff]  ;;  %s9196_s23 = smov 16  }
 0x9ec   :  { %2613 = vmatpush.bf16.msra.mxu2 %v6975_v13 }
 0x9ed   :  { %v2528_v22 = vsel %vm79_vm0, %v2524_v54, 0.0 }
 0x9ee   :  { %2529 = vadd.xlane.f32.xlu1 %v2528_v22  ;;  %v7291_v22 = vld [vmem:[%s9153_s1] sm:$0xff] }
 0x9f0   :  { %2614 = vmatpush.bf16.msra.mxu2 %v6974_v8 }
 0xa59   :  { %v2527_v56 = vpop.xlane.xlu2 %2526 }
 0xa5a   :  { %v2531_v57 = vmul.f32 %v2527_v56, %v7574_v61 }
 0xa5c   :  { %v2533_v58 = vsub.f32 %v2523_v37, %v2531_v57 }
 0xa5e   :  { %v2535_v59 = vmul.f32 %v2533_v58, %v2533_v58 }
 0xa60   :  { %v2537_v12 = vsel %vm79_vm0, %v2535_v59, 0.0 }
 0xa61   :  { %v2530_v2 = vpop.xlane.xlu1 %2529  ;;  %2538 = vadd.xlane.f32.xlu0 %v2537_v12  ;;  %v7292_v12 = vld [vmem:[%s9153_s1 + $0x8] sm:$0xff]  ;;  %s9191_s1 = smov 64  }
 0xa62   :  { %v2532_v3 = vmul.f32 %v2530_v2, %v7574_v61 }
 0xa64   :  { %v2534_v14 = vsub.f32 %v2524_v54, %v2532_v3 }
 0xa66   :  { %v2536_v0 = vmul.f32 %v2534_v14, %v2534_v14 }
 0xa68   :  { %v2540_v1 = vsel %vm79_vm0, %v2536_v0, 0.0 }
 0xa69   :  { %2541 = vadd.xlane.f32.xlu2 %v2540_v1 }
 0xad4   :  { %v2539_v4 = vpop.xlane.xlu0 %2538 }
 0xad5   :  { %v2543_v6 = vmul.f32 %v2539_v4, %v7574_v61 }
 0xad7   :  { %v2545_v7 = vadd.f32 1e-05, %v2543_v6 }
 0xad9   :  { %7249 = vrsqrt.f32 %v2545_v7  ;;  %vm2553_vm7 = vweird.f32 %v2545_v7 }
 0xadc   :  { %v2542_v9 = vpop.xlane.xlu2 %2541 }
 0xadd   :  { %v2544_v5 = vmul.f32 %v2542_v9, %v7574_v61 }
 0xadf   :  { %v7250_v15 = vpop.eup %7249  ;;  %v2546_v16 = vadd.f32 1e-05, %v2544_v5 }
 0xae0   :  { %v2548_v17 = vmul.f32 %v7250_v15, %v2545_v7  ;;  %vm2554_vm6 = vweird.f32 %v7250_v15 }
 0xae1   :  { %7251 = vrsqrt.f32 %v2546_v16  ;;  %vm2555_vm8 = vmor %vm2553_vm7, %vm2554_vm6  ;;  %vm2563_vm13 = vweird.f32 %v2546_v16 }
 0xae2   :  { %v2549_v18 = vmul.f32 %v7250_v15, %v2548_v17 }
 0xae4   :  { %v2550_v19 = vmul.f32 0.5, %v2549_v18 }
 0xae6   :  { %v2551_v20 = vsub.f32 1.5, %v2550_v19 }
 0xae7   :  { %v7252_v23 = vpop.eup %7251 }
 0xae8   :  { %v2552_v25 = vmul.f32 %v7250_v15, %v2551_v20  ;;  %v2558_v27 = vmul.f32 %v7252_v23, %v2546_v16  ;;  %vm2564_vm12 = vweird.f32 %v7252_v23 }
 0xae9   :  { %vm2565_vm14 = vmor %vm2563_vm13, %vm2564_vm12 }
 0xaea   :  { %v2559_v28 = vmul.f32 %v7252_v23, %v2558_v27  ;;  %v2556_v29 = vsel %vm2555_vm8, %v7250_v15, %v2552_v25 }
 0xaeb   :  { %v2567_v32 = vmul.f32 %v2556_v29, %v2533_v58 }
 0xaec   :  { %v2560_v51 = vmul.f32 0.5, %v2559_v28 }
 0xaed   :  { %v2573_v36 = vmul.f32 %v7202_v31, %v2567_v32 }
 0xaee   :  { %v2561_v21 = vsub.f32 1.5, %v2560_v51 }
 0xaef   :  { %v8296_v40 = vadd.f32 %v7203_v30, %v2573_v36 }
 0xaf0   :  { %v2562_v34 = vmul.f32 %v7252_v23, %v2561_v21 }
 0xaf2   :  { %v2566_v26 = vsel %vm2565_vm14, %v7252_v23, %v2562_v34 }
 0xaf3   :  { %v2568_v38 = vmul.f32 %v2566_v26, %v2534_v14 }
 0xaf5   :  { %v2574_v39 = vmul.f32 %v7202_v31, %v2568_v38 }
 0xaf7   :  { %v8298_v41 = vadd.f32 %v7203_v30, %v2574_v39 }
 0xaf9   :  { %v2581_v43 = vpack.c.bf16 %v8298_v41, %v8296_v40 }
 0xafb   :  { %5805 = vmatmul.msk.bf16.vlgmr.msra.gmra.mxu2 %vm79_vm0, %v2581_v43 }
 0xb7e   :  { %v2616_v11 = vpop.f32.mrf.mxu2 }
 0xb7f   :  { %v8306_v63 = vadd.f32 %v7204_v44, %v2616_v11 }
 0xb81   :  { %2623 = vrot.lane.b32.xlu0 %v8306_v63, %s7294_s0 }
 0xb86   :  { %v2618_v60 = vpop.f32.mrf.mxu2 }
 0xb87   :  { %v8310_v35 = vadd.f32 %v7204_v44, %v2618_v60 }
 0xb89   :  { %2753 = vrot.lane.b32.xlu2 %v8310_v35, %s7293_s17  ;;  %2625 = vrot.lane.b32.xlu1 %v8310_v35, %s7294_s0  ;;  %s9190_s0 = smov 104   ;;  %v8372_v32 = vpack.i.bf16 %v8306_v63, %v8310_v35 }
 0xb8a   :  { %2889 = vrot.lane.b32.xlu0 %v8310_v35, %s7298_s21 }
 0xb91   :  { %2747 = vrot.lane.b32.xlu2 %v8306_v63, %s7295_s18  ;;  %2751 = vrot.lane.b32.xlu1 %v8306_v63, %s7293_s17 }
 0xb92   :  { %2887 = vrot.lane.b32.xlu0 %v8306_v63, %s7298_s21 }
 0xb99   :  { %2749 = vrot.lane.b32.xlu2 %v8310_v35, %s7295_s18  ;;  %2883 = vrot.lane.b32.xlu1 %v8306_v63, %s9188_s3 }
 0xb9a   :  { %3025 = vrot.lane.b32.xlu0 %v8310_v35, %s9189_s28 }
 0xba1   :  { %3023 = vrot.lane.b32.xlu2 %v8306_v63, %s9189_s28  ;;  %2885 = vrot.lane.b32.xlu1 %v8310_v35, %s9188_s3 }
 0xba2   :  { %3019 = vrot.lane.b32.xlu0 %v8306_v63, %s9190_s0 }
 0xba9   :  { %3021 = vrot.lane.b32.xlu1 %v8310_v35, %s9190_s0 }
 0xbe3   :  { %v2754_v45 = vpop.permute.xlu2 %2753 }
 0xbeb   :  { %v2748_v10 = vpop.permute.xlu2 %2747 }
 0xbf3   :  { %v2624_v55 = vpop.permute.xlu0 %2623  ;;  %v2750_v37 = vpop.permute.xlu2 %2749 }
 0xbfb   :  { %v2626_v47 = vpop.permute.xlu1 %2625  ;;  %v3024_v33 = vpop.permute.xlu2 %3023 }
 0xbfc   :  { %v2890_v24 = vpop.permute.xlu0 %2889  ;;  %5806 = vmatpush.xpose.msk.msra.mxu0 %vm103_vm1, %v2626_v47 }
 0xbfd   :  { %5818 = vmatpush.xpose.msk.msra.mxu3 %vm103_vm1, %v2890_v24 }
 0xc00   :  { %5807 = vmatpush.xpose.msk.msra.mxu0 %vm103_vm1, %v2624_v55 }
 0xc03   :  { %v2752_v48 = vpop.permute.xlu1 %2751  ;;  %5808 = vmatmul.msk.f32.vlgmr.msra.gmra.mxu0 %vm103_vm1, %v8306_v63 }
 0xc04   :  { %5812 = vmatpush.xpose.msk.msrb.mxu0 %vm103_vm1, %v2754_v45  ;;  %v2888_v49 = vpop.permute.xlu0 %2887 }
 0xc05   :  { %5819 = vmatpush.xpose.msk.msra.mxu3 %vm103_vm1, %v2888_v49 }
 0xc08   :  { %5813 = vmatpush.xpose.msk.msrb.mxu0 %vm103_vm1, %v2752_v48 }
 0xc0b   :  { %v2884_v42 = vpop.permute.xlu1 %2883  ;;  %5809 = vmatmul.msk.f32.gmra.mxu0 %vm103_vm1, %v8310_v35 }
 0xc0c   :  { %v3026_v62 = vpop.permute.xlu0 %3025  ;;  %5820 = vmatmul.msk.f32.vlgmr.msra.gmra.mxu3 %vm103_vm1, %v2884_v42 }
 0xc0d   :  { %5824 = vmatpush.xpose.msk.msra.mxu0 %vm103_vm1, %v3026_v62 }
 0xc11   :  { %5825 = vmatpush.xpose.msk.msra.mxu0 %vm103_vm1, %v3024_v33 }
 0xc13   :  { %v2886_v46 = vpop.permute.xlu1 %2885  ;;  %5814 = vmatmul.msk.f32.vlgmr.msrb.gmra.mxu0 %vm103_vm1, %v2748_v10 }
 0xc14   :  { %5821 = vmatmul.msk.f32.gmra.mxu3 %vm103_vm1, %v2886_v46  ;;  %v3020_v50 = vpop.permute.xlu0 %3019 }
 0xc1b   :  { %5815 = vmatmul.msk.f32.gmra.mxu0 %vm103_vm1, %v2750_v37  ;;  %v3022_v52 = vpop.permute.xlu1 %3021 }
 0xc23   :  { %5826 = vmatmul.msk.f32.vlgmr.msra.gmra.mxu0 %vm103_vm1, %v3020_v50 }
 0xc2b   :  { %5827 = vmatmul.msk.f32.gmra.mxu0 %vm103_vm1, %v3022_v52 }
 0xc80   :  { %v2652_v53 = vpop.f32.mrf.mxu0 }
 0xc81   :  { %v2658_v54 = vmul.f32 0.35355338, %v2652_v53 }
 0xc83   :  { %v2660_v56 = vadd.f32 %v7291_v22, %v2658_v54 }
 0xc85   :  { %v2662_v57 = vsel %vm139_vm2, %v2660_v56, -inf }
 0xc86   :  { %2663 = vmax.xlane.f32.xlu2 %v2662_v57 }
 0xc88   :  { %v2655_v58 = vpop.f32.mrf.mxu0 }
 0xc89   :  { %v2659_v59 = vmul.f32 0.35355338, %v2655_v58 }
 0xc8b   :  { %v2661_v2 = vadd.f32 %v7292_v12, %v2659_v59 }
 0xc8d   :  { %v2665_v3 = vsel %vm139_vm2, %v2661_v2, -inf }
 0xc8e   :  { %2666 = vmax.xlane.f32.xlu1 %v2665_v3 }
 0xc8f   :  { %v2916_v14 = vpop.f32.mrf.mxu3 }
 0xc90   :  { %v2922_v0 = vmul.f32 0.35355338, %v2916_v14  ;;  %v2780_v1 = vpop.f32.mrf.mxu0 }
 0xc91   :  { %v2786_v4 = vmul.f32 0.35355338, %v2780_v1 }
 0xc92   :  { %v2924_v13 = vadd.f32 %v7291_v22, %v2922_v0 }
 0xc93   :  { %v2788_v8 = vadd.f32 %v7291_v22, %v2786_v4 }
 0xc94   :  { %v2926_v6 = vsel %vm139_vm2, %v2924_v13, -inf }
 0xc95   :  { %2927 = vmax.xlane.f32.xlu0 %v2926_v6  ;;  %v2790_v16 = vsel %vm139_vm2, %v2788_v8, -inf }
 0xc97   :  { %v2919_v5 = vpop.f32.mrf.mxu3 }
 0xc98   :  { %v2783_v7 = vpop.f32.mrf.mxu0  ;;  %v2923_v17 = vmul.f32 0.35355338, %v2919_v5 }
 0xc99   :  { %v2787_v9 = vmul.f32 0.35355338, %v2783_v7 }
 0xc9a   :  { %v2925_v23 = vadd.f32 %v7292_v12, %v2923_v17 }
 0xc9b   :  { %v2789_v15 = vadd.f32 %v7292_v12, %v2787_v9 }
 0xc9c   :  { %v2929_v27 = vsel %vm139_vm2, %v2925_v23, -inf }
 0xc9d   :  { %2791 = vmax.xlane.f32.xlu0 %v2790_v16  ;;  %v2793_v18 = vsel %vm139_vm2, %v2789_v15, -inf }
 0xc9e   :  { %2794 = vmax.xlane.f32.xlu2 %v2793_v18 }
 0xca0   :  { %v3052_v19 = vpop.f32.mrf.mxu0 }
 0xca1   :  { %v3058_v20 = vmul.f32 0.35355338, %v3052_v19 }
 0xca3   :  { %v3060_v25 = vadd.f32 %v7291_v22, %v3058_v20 }
 0xca5   :  { %v3062_v28 = vsel %vm139_vm2, %v3060_v25, -inf }
 0xca6   :  { %2930 = vmax.xlane.f32.xlu2 %v2929_v27  ;;  %3063 = vmax.xlane.f32.xlu1 %v3062_v28 }
 0xca8   :  { %v3055_v29 = vpop.f32.mrf.mxu0 }
 0xca9   :  { %v3059_v51 = vmul.f32 0.35355338, %v3055_v29 }
 0xcab   :  { %v3061_v21 = vadd.f32 %v7292_v12, %v3059_v51 }
 0xcad   :  { %v3065_v31 = vsel %vm139_vm2, %v3061_v21, -inf }
 0xcae   :  { %3066 = vmax.xlane.f32.xlu0 %v3065_v31 }
 0xcc2   :  { %7178 = vrot.lane.b32.xlu0 %v8372_v32, %s9191_s1 }
 0xcf9   :  { %v2664_v34 = vpop.xlane.xlu2 %2663 }
 0xcfa   :  { %v2668_v26 = vsub.f32 %v2660_v56, %v2664_v34 }
 0xcfc   :  { %v2670_v30 = vmul.f32 1.442695, %v2668_v26 }
 0xcfe   :  { %7253 = vpow2.f32 %v2670_v30 }
 0xd01   :  { %v2667_v36 = vpop.xlane.xlu1 %2666 }
 0xd02   :  { %v2669_v38 = vsub.f32 %v2661_v2, %v2667_v36 }
 0xd04   :  { %v8376_v39 = vpop.eup %7253  ;;  %v2672_v43 = vmul.f32 1.442695, %v2669_v38 }
 0xd05   :  { %v2674_v44 = vsel %vm139_vm2, %v8376_v39, 0.0 }
 0xd06   :  { %7255 = vpow2.f32 %v2672_v43  ;;  %2675 = vadd.xlane.f32.xlu1 %v2674_v44 }
 0xd08   :  { %v2928_v11 = vpop.xlane.xlu0 %2927 }
 0xd09   :  { %v2932_v63 = vsub.f32 %v2924_v13, %v2928_v11 }
 0xd0b   :  { %v2934_v60 = vmul.f32 1.442695, %v2932_v63 }
 0xd0c   :  { %v8380_v35 = vpop.eup %7255 }
 0xd0d   :  { %7257 = vpow2.f32 %v2934_v60  ;;  %v2677_v45 = vsel %vm139_vm2, %v8380_v35, 0.0 }
 0xd0e   :  { %2678 = vadd.xlane.f32.xlu0 %v2677_v45 }
 0xd10   :  { %v2792_v55 = vpop.xlane.xlu0 %2791 }
 0xd11   :  { %v2796_v47 = vsub.f32 %v2788_v8, %v2792_v55  ;;  %v2795_v10 = vpop.xlane.xlu2 %2794 }
 0xd12   :  { %v2797_v33 = vsub.f32 %v2789_v15, %v2795_v10 }
 0xd13   :  { %v8384_v24 = vpop.eup %7257  ;;  %v2798_v48 = vmul.f32 1.442695, %v2796_v47 }
 0xd14   :  { %v2938_v49 = vsel %vm139_vm2, %v8384_v24, 0.0  ;;  %v2800_v52 = vmul.f32 1.442695, %v2797_v33 }
 0xd15   :  { %7259 = vpow2.f32 %v2798_v48  ;;  %2939 = vadd.xlane.f32.xlu2 %v2938_v49 }
 0xd19   :  { %v2931_v37 = vpop.xlane.xlu2 %2930  ;;  %v3064_v53 = vpop.xlane.xlu1 %3063 }
 0xd1a   :  { %v2933_v42 = vsub.f32 %v2925_v23, %v2931_v37  ;;  %v3068_v22 = vsub.f32 %v3060_v25, %v3064_v53 }
 0xd1b   :  { %v8388_v62 = vpop.eup %7259 }
 0xd1c   :  { %v2936_v46 = vmul.f32 1.442695, %v2933_v42  ;;  %v2802_v50 = vsel %vm139_vm2, %v8388_v62, 0.0  ;;  %v3070_v57 = vmul.f32 1.442695, %v3068_v22 }
 0xd1d   :  { %2803 = vadd.xlane.f32.xlu2 %v2802_v50 }
 0xd1e   :  { %7261 = vpow2.f32 %v2936_v46 }
 0xd1f   :  { %7263 = vpow2.f32 %v2800_v52 }
 0xd20   :  { %7265 = vpow2.f32 %v3070_v57 }
 0xd21   :  { %v3067_v58 = vpop.xlane.xlu0 %3066 }
 0xd22   :  { %7188 = vrot.lane.b32.xlu0 %v8372_v32, %s9192_s30  ;;  %v3069_v12 = vsub.f32 %v3061_v21, %v3067_v58 }
 0xd24   :  { %v8394_v54 = vpop.eup %7261  ;;  %v3072_v3 = vmul.f32 1.442695, %v3069_v12 }
 0xd25   :  { %v2941_v56 = vsel %vm139_vm2, %v8394_v54, 0.0  ;;  %v8398_v59 = vpop.eup %7263 }
 0xd26   :  { %2942 = vadd.xlane.f32.xlu1 %v2941_v56  ;;  %v2805_v2 = vsel %vm139_vm2, %v8398_v59, 0.0  ;;  %v8402_v14 = vpop.eup %7265  ;;  %7267 = vpow2.f32 %v3072_v3 }
 0xd27   :  { %v3074_v13 = vsel %vm139_vm2, %v8402_v14, 0.0 }
 0xd2c   :  { %v8408_v6 = vpop.eup %7267 }
 0xd2d   :  { %v3077_v7 = vsel %vm139_vm2, %v8408_v6, 0.0 }
 0xd2e   :  { %2806 = vadd.xlane.f32.xlu1 %v2805_v2 }
 0xd34   :  { %v7179_v0 = vpop.permute.xlu0 %7178 }
 0xd35   :  { %v7180_v1 = vunpack.i.l.bf16 %v7179_v0  ;;  %7183 = vrot.lane.b32.xlu2 %v8372_v32, %s9193_s24  ;;  %v7181_v4 = vunpack.i.h.bf16 %v7179_v0 }
 0xd36   :  { %3075 = vadd.xlane.f32.xlu1 %v3074_v13 }
 0xd37   :  { %2736 = vmatpush.msrb.mxu2 %v7180_v1 }
 0xd39   :  { %2737 = vmatpush.msrb.mxu2 %v7181_v4 }
 0xd3e   :  { %3078 = vadd.xlane.f32.xlu1 %v3077_v7 }
 0xd57   :  { %7193 = vrot.lane.b32.xlu1 %v8372_v32, %s9194_s27 }
 0xd79   :  { %v2676_v8 = vpop.xlane.xlu1 %2675 }
 0xd7a   :  { %7269 = vrcp.f32 %v2676_v8  ;;  %v2691_v17 = vand.u32 2147483648, %v2676_v8  ;;  %v2689_v19 = vand.u32 2147483647, %v2676_v8  ;;  %vm2685_vm3 = vweird.f32 %v2676_v8 }
 0xd7c   :  { %v2692_v25 = vor.u32 1.1754944e-38, %v2691_v17  ;;  %vm2690_vm5 = vcmp.eq.f32.partialorder %v2689_v19, 8.507059e+37 }
 0xd80   :  { %v7270_v9 = vpop.eup %7269 }
 0xd81   :  { %v2681_v5 = vmul.f32 %v7270_v9, %v2676_v8  ;;  %v2679_v15 = vpop.xlane.xlu0 %2678  ;;  %vm2686_vm15 = vweird.f32 %v7270_v9 }
 0xd82   :  { %7271 = vrcp.f32 %v2679_v15  ;;  %vm2687_vm4 = vmor %vm2685_vm3, %vm2686_vm15  ;;  %v2705_v34 = vand.u32 2147483648, %v2679_v15  ;;  %v2703_v26 = vand.u32 2147483647, %v2679_v15  ;;  %vm2699_vm7 = vweird.f32 %v2679_v15 }
 0xd83   :  { %v2682_v16 = vsub.f32 1.0, %v2681_v5 }
 0xd84   :  { %v2706_v44 = vor.u32 1.1754944e-38, %v2705_v34  ;;  %vm2704_vm12 = vcmp.eq.f32.partialorder %v2703_v26, 8.507059e+37 }
 0xd85   :  { %v2683_v18 = vmul.f32 %v7270_v9, %v2682_v16 }
 0xd87   :  { %v2684_v20 = vadd.f32 %v7270_v9, %v2683_v18 }
 0xd88   :  { %v7272_v23 = vpop.eup %7271  ;;  %v2940_v27 = vpop.xlane.xlu2 %2939 }
 0xd89   :  { %v2688_v28 = vsel %vm2687_vm4, %v7270_v9, %v2684_v20  ;;  %v2695_v29 = vmul.f32 %v7272_v23, %v2679_v15  ;;  %7273 = vrcp.f32 %v2940_v27  ;;  %vm2700_vm6 = vweird.f32 %v7272_v23 }
 0xd8a   :  { %v2693_v51 = vsel %vm2690_vm5, %v2692_v25, %v2688_v28  ;;  %vm2701_vm8 = vmor %vm2699_vm7, %vm2700_vm6  ;;  %v2955_v60 = vand.u32 2147483648, %v2940_v27  ;;  %v2953_v55 = vand.u32 2147483647, %v2940_v27  ;;  %vm2949_vm14 = vweird.f32 %v2940_v27 }
 0xd8b   :  { %v2696_v21 = vsub.f32 1.0, %v2695_v29  ;;  %v2708_v31 = vmul.f32 %v8376_v39, %v2693_v51 }
 0xd8c   :  { %v2956_v42 = vor.u32 1.1754944e-38, %v2955_v60  ;;  %vm2954_vm3 = vcmp.eq.f32.partialorder %v2953_v55, 8.507059e+37 }
 0xd8d   :  { %v2697_v32 = vmul.f32 %v7272_v23, %v2696_v21  ;;  %5810 = vmatmul.msk.f32.vlgmr.msrb.gmra.mxu2 %vm139_vm2, %v2708_v31 }
 0xd8f   :  { %v7274_v30 = vpop.eup %7273  ;;  %v2698_v36 = vadd.f32 %v7272_v23, %v2697_v32 }
 0xd90   :  { %v2945_v38 = vmul.f32 %v7274_v30, %v2940_v27  ;;  %v2804_v43 = vpop.xlane.xlu2 %2803  ;;  %vm2950_vm13 = vweird.f32 %v7274_v30 }
 0xd91   :  { %7275 = vrcp.f32 %v2804_v43  ;;  %v2702_v63 = vsel %vm2701_vm8, %v7272_v23, %v2698_v36  ;;  %vm2951_vm15 = vmor %vm2949_vm14, %vm2950_vm13  ;;  %v2817_v3 = vand.u32 2147483647, %v2804_v43  ;;  %vm2813_vm5 = vweird.f32 %v2804_v43 }
 0xd92   :  { %v2946_v11 = vsub.f32 1.0, %v2945_v38  ;;  %v2707_v45 = vsel %vm2704_vm12, %v2706_v44, %v2702_v63 }
 0xd93   :  { %v2709_v10 = vmul.f32 %v8380_v35, %v2707_v45  ;;  %v2819_v35 = vand.u32 2147483648, %v2804_v43  ;;  %vm2818_vm7 = vcmp.eq.f32.partialorder %v2817_v3, 8.507059e+37 }
 0xd94   :  { %v2947_v39 = vmul.f32 %v7274_v30, %v2946_v11  ;;  %v7189_v47 = vpop.permute.xlu0 %7188 }
 0xd95   :  { %v7190_v48 = vunpack.i.l.bf16 %v7189_v47  ;;  %5811 = vmatmul.msk.f32.gmra.mxu2 %vm139_vm2, %v2709_v10  ;;  %v7191_v33 = vunpack.i.h.bf16 %v7189_v47  ;;  %v2820_v1 = vor.u32 1.1754944e-38, %v2819_v35 }
 0xd96   :  { %v2948_v49 = vadd.f32 %v7274_v30, %v2947_v39 }
 0xd97   :  { %v7276_v37 = vpop.eup %7275  ;;  %3000 = vmatpush.msra.mxu2 %v7190_v48 }
 0xd98   :  { %v2952_v46 = vsel %vm2951_vm15, %v7274_v30, %v2948_v49  ;;  %v2809_v50 = vmul.f32 %v7276_v37, %v2804_v43  ;;  %v7184_v52 = vpop.permute.xlu2 %7183  ;;  %vm2814_vm4 = vweird.f32 %v7276_v37 }
 0xd99   :  { %v2957_v53 = vsel %vm2954_vm3, %v2956_v42, %v2952_v46  ;;  %v7185_v22 = vunpack.i.l.bf16 %v7184_v52  ;;  %v2943_v56 = vpop.xlane.xlu1 %2942  ;;  %3001 = vmatpush.msra.mxu2 %v7191_v33  ;;  %v7186_v58 = vunpack.i.h.bf16 %v7184_v52  ;;  %vm2815_vm6 = vmor %vm2813_vm5, %vm2814_vm4 }
 0xd9a   :  { %v2810_v57 = vsub.f32 1.0, %v2809_v50  ;;  %7277 = vrcp.f32 %v2943_v56  ;;  %v2972_v12 = vmul.f32 %v8384_v24, %v2957_v53  ;;  %v2969_v16 = vand.u32 2147483648, %v2943_v56 }
 0xd9b   :  { %2864 = vmatpush.msrb.mxu1 %v7185_v22  ;;  %v2967_v17 = vand.u32 2147483647, %v2943_v56  ;;  %vm2963_vm12 = vweird.f32 %v2943_v56 }
 0xd9c   :  { %v2811_v2 = vmul.f32 %v7276_v37, %v2810_v57  ;;  %v2970_v20 = vor.u32 1.1754944e-38, %v2969_v16 }
 0xd9d   :  { %2865 = vmatpush.msrb.mxu1 %v7186_v58  ;;  %5822 = vmatmul.msk.f32.vlgmr.msra.gmra.mxu2 %vm139_vm2, %v2972_v12  ;;  %vm2968_vm14 = vcmp.eq.f32.partialorder %v2967_v17, 8.507059e+37 }
 0xd9e   :  { %v2812_v0 = vadd.f32 %v7276_v37, %v2811_v2 }
 0xda0   :  { %v7278_v13 = vpop.eup %7277  ;;  %v2816_v4 = vsel %vm2815_vm6, %v7276_v37, %v2812_v0 }
 0xda1   :  { %v2821_v7 = vsel %vm2818_vm7, %v2820_v1, %v2816_v4  ;;  %v2959_v8 = vmul.f32 %v7278_v13, %v2943_v56  ;;  %v2807_v9 = vpop.xlane.xlu1 %2806  ;;  %vm2964_vm8 = vweird.f32 %v7278_v13 }
 0xda2   :  { %7279 = vrcp.f32 %v2807_v9  ;;  %v2836_v5 = vmul.f32 %v8388_v62, %v2821_v7  ;;  %vm2965_vm13 = vmor %vm2963_vm12, %vm2964_vm8  ;;  %v2833_v21 = vand.u32 2147483648, %v2807_v9  ;;  %v2831_v31 = vand.u32 2147483647, %v2807_v9 }
 0xda3   :  { %v2960_v24 = vsub.f32 1.0, %v2959_v8  ;;  %vm2827_vm3 = vweird.f32 %v2807_v9 }
 0xda4   :  { %5816 = vmatmul.msk.f32.vlgmr.msrb.gmra.mxu1 %vm139_vm2, %v2836_v5  ;;  %v2834_v34 = vor.u32 1.1754944e-38, %v2833_v21  ;;  %vm2832_vm5 = vcmp.eq.f32.partialorder %v2831_v31, 8.507059e+37  ;;  %v6976_v5 = vld [vmem:[%s9155_s4 + $0x10] sm:$0xff] }
 0xda5   :  { %v2961_v15 = vmul.f32 %v7278_v13, %v2960_v24 }
 0xda7   :  { %v2962_v18 = vadd.f32 %v7278_v13, %v2961_v15 }
 0xda8   :  { %v7280_v19 = vpop.eup %7279 }
 0xda9   :  { %v2823_v23 = vmul.f32 %v7280_v19, %v2807_v9  ;;  %v3076_v25 = vpop.xlane.xlu1 %3075  ;;  %v2966_v27 = vsel %vm2965_vm13, %v7278_v13, %v2962_v18  ;;  %vm2828_vm15 = vweird.f32 %v7280_v19  ;;  %v6977_v9 = vld [vmem:[%s9155_s4 + $0x18] sm:$0xff] }
 0xdaa   :  { %v2971_v29 = vsel %vm2968_vm14, %v2970_v20, %v2966_v27  ;;  %7281 = vrcp.f32 %v3076_v25  ;;  %vm2829_vm4 = vmor %vm2827_vm3, %vm2828_vm15  ;;  %v3091_v55 = vand.u32 2147483648, %v3076_v25  ;;  %vm3085_vm7 = vweird.f32 %v3076_v25  ;;  %3189 = vmatpush.bf16.msrb.mxu3 %v6977_v9  ;;  %v7016_v9 = vld [vmem:[%s9159_s10 + $0x4f0] sm:$0xff] }
 0xdab   :  { %v2824_v28 = vsub.f32 1.0, %v2823_v23  ;;  %v2973_v62 = vmul.f32 %v8394_v54, %v2971_v29  ;;  %v3089_v47 = vand.u32 2147483647, %v3076_v25 }
 0xdac   :  { %v3092_v49 = vor.u32 1.1754944e-38, %v3091_v55 }
 0xdad   :  { %v2825_v51 = vmul.f32 %v7280_v19, %v2824_v28  ;;  %5823 = vmatmul.msk.f32.gmra.mxu2 %vm139_vm2, %v2973_v62  ;;  %vm3090_vm12 = vcmp.eq.f32.partialorder %v3089_v47, 8.507059e+37 }
 0xdae   :  { %3190 = vmatpush.bf16.msrb.mxu3 %v6976_v5  ;;  %v6988_v5 = vld [vmem:[%s9159_s10 + $0x430] sm:$0xff] }
 0xdaf   :  { %v2826_v32 = vadd.f32 %v7280_v19, %v2825_v51 }
 0xdb0   :  { %v7282_v38 = vpop.eup %7281 }
 0xdb1   :  { %v2830_v26 = vsel %vm2829_vm4, %v7280_v19, %v2826_v32  ;;  %v3079_v30 = vpop.xlane.xlu1 %3078  ;;  %v3081_v54 = vmul.f32 %v7282_v38, %v3076_v25  ;;  %vm3086_vm6 = vweird.f32 %v7282_v38  ;;  %v7205_v19 = vld [vmem:[%s9154_s5 + $0x1] ss:$0 sm:$0xff] }
 0xdb2   :  { %v2835_v36 = vsel %vm2832_vm5, %v2834_v34, %v2830_v26  ;;  %7283 = vrcp.f32 %v3079_v30  ;;  %vm3087_vm8 = vmor %vm3085_vm7, %vm3086_vm6  ;;  %v3105_v46 = vand.u32 2147483648, %v3079_v30  ;;  %vm3099_vm14 = vweird.f32 %v3079_v30 }
 0xdb3   :  { %v2837_v43 = vmul.f32 %v8398_v59, %v2835_v36  ;;  %v3082_v44 = vsub.f32 1.0, %v3081_v54  ;;  %v3103_v53 = vand.u32 2147483647, %v3079_v30  ;;  %v6981_v54 = vld [vmem:[%s9158_s8 + $0x1bc] sm:$0xf0] }
 0xdb4   :  { %v3106_v56 = vor.u32 1.1754944e-38, %v3105_v46 }
 0xdb5   :  { %5817 = vmatmul.msk.f32.gmra.mxu1 %vm139_vm2, %v2837_v43  ;;  %v3083_v63 = vmul.f32 %v7282_v38, %v3082_v44  ;;  %vm3104_vm3 = vcmp.eq.f32.partialorder %v3103_v53, 8.507059e+37  ;;  %v5861_v43 = vld [vmem:[%s9158_s8 + $0x180] sm:$0xf]  ;;  %v6980_v44 = vld [vmem:[%s9158_s8 + $0x184] sm:$0xf] }
 0xdb6   :  { %v5908_v53 = vld [vmem:[%s9158_s8 + $0x108] sm:$0xf] }
 0xdb7   :  { %v3084_v45 = vadd.f32 %v7282_v38, %v3083_v63  ;;  %v5863_v63 = vld [vmem:[%s9158_s8 + $0x1c0] sm:$0xf0] }
 0xdb8   :  { %v7284_v11 = vpop.eup %7283  ;;  %v5866_v55 = vor.u32 %v6980_v44, %v5863_v63 }
 0xdb9   :  { %v3095_v60 = vmul.f32 %v7284_v11, %v3079_v30  ;;  %v3088_v10 = vsel %vm3087_vm8, %v7282_v38, %v3084_v45  ;;  %vm3100_vm13 = vweird.f32 %v7284_v11  ;;  %v7001_v45 = vld [vmem:[%s9158_s8 + $0x1c4] sm:$0xf0] }
 0xdba   :  { %v3093_v37 = vsel %vm3090_vm12, %v3092_v49, %v3088_v10  ;;  %vm3101_vm15 = vmor %vm3099_vm14, %vm3100_vm13  ;;  %v7000_v10 = vld [vmem:[%s9158_s8 + $0x18c] sm:$0xf]  ;;  %3313 = vmatpush.bf16.msrb.mxu0 %v5866_v55  ;;  %v7004_v55 = vld [vmem:[%s9159_s10 + $0x490] sm:$0xff] }
 0xdbb   :  { %v3096_v39 = vsub.f32 1.0, %v3095_v60  ;;  %v3108_v52 = vmul.f32 %v8402_v14, %v3093_v37  ;;  %v5916_v60 = vld [vmem:[%s9158_s8 + $0x188] sm:$0xf]  ;;  %v5853_v37 = vld [vmem:[%s9158_s8 + $0x100] sm:$0xf] }
 0xdbc   :  { %v5917_v47 = vor.u32 %v7001_v45, %v5916_v60  ;;  %v7014_v45 = vld [vmem:[%s9159_s10 + $0x4e0] sm:$0xff] }
 0xdbd   :  { %v3097_v48 = vmul.f32 %v7284_v11, %v3096_v39 }
 0xdbf   :  { %v3098_v33 = vadd.f32 %v7284_v11, %v3097_v48  ;;  %v5918_v48 = vld [vmem:[%s9158_s8 + $0x1c8] sm:$0xf0] }
 0xdc1   :  { %v3102_v22 = vsel %vm3101_vm15, %v7284_v11, %v3098_v33  ;;  %v5862_v11 = vor.u32 %v6981_v54, %v5861_v43  ;;  %v6978_v33 = vld [vmem:[%s9158_s8 + $0x104] sm:$0xf] }
 0xdc2   :  { %v3107_v57 = vsel %vm3104_vm3, %v3106_v56, %v3102_v22  ;;  %v6999_v56 = vld [vmem:[%s9158_s8 + $0x144] sm:$0xf0] }
 0xdc3   :  { %v3109_v35 = vmul.f32 %v8408_v6, %v3107_v57  ;;  %3299 = vmatpush.bf16.msrb.mxu2 %v5862_v11  ;;  %v6998_v57 = vld [vmem:[%s9158_s8 + $0x10c] sm:$0xf] }
 0xdc9   :  { %v7194_v59 = vpop.permute.xlu1 %7193 }
 0xdca   :  { %v7195_v42 = vunpack.i.l.bf16 %v7194_v59  ;;  %v7196_v50 = vunpack.i.h.bf16 %v7194_v59  ;;  %v5921_v59 = vor.u32 %v7000_v10, %v5918_v48  ;;  %v7013_v10 = vld [vmem:[%s9159_s10 + $0x4d8] sm:$0xff] }
 0xdcb   :  { %v6985_v48 = vld [vmem:[%s9159_s10 + $0x418] sm:$0xff] }
 0xdcc   :  { %3136 = vmatpush.msra.mxu1 %v7195_v42  ;;  %v6979_v42 = vld [vmem:[%s9158_s8 + $0x13c] sm:$0xf0]  ;;  %3410 = vmatpush.bf16.msra.mxu3 %v5921_v59  ;;  %v6991_v59 = vld [vmem:[%s9159_s10 + $0x448] sm:$0xff] }
 0xdce   :  { %3137 = vmatpush.msra.mxu1 %v7196_v50  ;;  %v5854_v50 = vor.u32 %v6979_v42, %v5853_v37  ;;  %v7012_v37 = vld [vmem:[%s9159_s10 + $0x4d0] sm:$0xff] }
 0xdcf   :  { %5828 = vmatmul.msk.f32.vlgmr.msra.gmra.mxu1 %vm139_vm2, %v3108_v52  ;;  %v5855_v52 = vld [vmem:[%s9158_s8 + $0x140] sm:$0xf0]  ;;  %v6984_v42 = vld [vmem:[%s9159_s10 + $0x410] sm:$0xff] }
 0xdd0   :  { %3396 = vmatpush.bf16.msrb.mxu1 %v5917_v47  ;;  %v5858_v22 = vor.u32 %v6978_v33, %v5855_v52  ;;  %3300 = vmatpush.bf16.msrb.mxu2 %v5854_v50  ;;  %v6992_v47 = vld [vmem:[%s9159_s10 + $0x450] sm:$0xff]  ;;  %v7002_v33 = vld [vmem:[%s9159_s10 + $0x480] sm:$0xff]  ;;  %v7011_v50 = vld [vmem:[%s9159_s10 + $0x4c8] sm:$0xff] }
 0xdd1   :  { %v6983_v52 = vld [vmem:[%s9159_s10 + $0x408] sm:$0xff] }
 0xdd2   :  { %3314 = vmatpush.bf16.msrb.mxu0 %v5858_v22  ;;  %v6982_v22 = vld [vmem:[%s9159_s10 + $0x400] sm:$0xff] }
 0xdd7   :  { %5829 = vmatmul.msk.f32.gmra.mxu1 %vm139_vm2, %v3109_v35  ;;  %v5910_v35 = vld [vmem:[%s9158_s8 + $0x148] sm:$0xf0] }
 0xe10   :  { %v2739_v58 = vpop.f32.mrf.mxu2 }
 0xe11   :  { %2745 = vst.msk [vmem:[#allocation2] sm:$0xff] %vm103_vm1, %v2739_v58  ;;  %v5909_v58 = vor.u32 %v6999_v56, %v5908_v53  ;;  %v7010_v53 = vld [vmem:[%s9159_s10 + $0x4c0] sm:$0xff]  ;;  %v6099_v56 = vld [vmem:[%s9158_s8 + $0x190] sm:$0xf] }
 0xe13   :  { %3397 = vmatpush.bf16.msrb.mxu1 %v5909_v58 }
 0xe18   :  { %v2742_v12 = vpop.f32.mrf.mxu2 }
 0xe19   :  { %2746 = vst.msk [vmem:[#allocation2 + $0x8] sm:$0xff] %vm103_vm1, %v2742_v12  ;;  %v5913_v12 = vor.u32 %v6998_v57, %v5910_v35  ;;  %v7021_v57 = vld [vmem:[%s9158_s8 + $0x1cc] sm:$0xf0] }
 0xe1a   :  { %v6091_v35 = vld [vmem:[%s9158_s8 + $0x110] sm:$0xf]  ;;  %v6100_v58 = vor.u32 %v7021_v57, %v6099_v56  ;;  %v7027_v57 = vld [vmem:[%s9159_s10 + $0x528] sm:$0xff] }
 0xe1b   :  { %3411 = vmatpush.bf16.msra.mxu3 %v5913_v12  ;;  %v7019_v12 = vld [vmem:[%s9158_s8 + $0x14c] sm:$0xf0] }
 0xe1c   :  { %v7036_v56 = vld [vmem:[%s9159_s10 + $0x570] sm:$0xff] }
 0xe20   :  { %v3003_v2 = vpop.f32.mrf.mxu2 }
 0xe21   :  { %v2867_v14 = vpop.f32.mrf.mxu1 }
 0xe22   :  { %2875 = vrot.lane.b32.xlu0 %v2867_v14, %s9195_s29 }
 0xe2a   :  { %3011 = vrot.lane.b32.xlu0 %v3003_v2, %s9196_s23  ;;  %v7009_v2 = vld [vmem:[%s9159_s10 + $0x4b8] sm:$0xff] }
 0xe2b   :  { %3552 = vmatpush.bf16.msra.mxu2 %v7009_v2  ;;  %v6101_v2 = vld [vmem:[%s9158_s8 + $0x1d0] sm:$0xf0] }
 0xe30   :  { %v3006_v0 = vpop.f32.mrf.mxu2 }
 0xe32   :  { %v2870_v3 = vpop.f32.mrf.mxu1 }
 0xe33   :  { %2877 = vrot.lane.b32.xlu2 %v2870_v3, %s9195_s29  ;;  %v6997_v3 = vld [vmem:[%s9159_s10 + $0x478] sm:$0xff] }
 0xe3b   :  { %3013 = vrot.lane.b32.xlu2 %v3006_v0, %s9196_s23 }
 0xe4c   :  { %v3139_v6 = vpop.f32.mrf.mxu1 }
 0xe4d   :  { %3147 = vrot.lane.b32.xlu0 %v3139_v6, %s9197_s25  ;;  %v7017_v6 = vld [vmem:[%s9159_s10 + $0x4f8] sm:$0xff] }
 0xe4e   :  { %3565 = vmatpush.bf16.msra.mxu0 %v7017_v6  ;;  %v5850_v6 = vld [vmem:[%s9160_s9 + $0x10] sm:$0x3] }
 0xe52   :  { %3566 = vmatpush.bf16.msra.mxu0 %v7016_v9 }
 0xe54   :  { %v3142_v1 = vpop.f32.mrf.mxu1 }
 0xe55   :  { %3149 = vrot.lane.b32.xlu2 %v3142_v1, %s9197_s25  ;;  %v6989_v1 = vld [vmem:[%s9159_s10 + $0x438] sm:$0xff] }
 0xe56   :  { %3674 = vmatpush.bf16.msra.mxu1 %v6989_v1 }
 0xe5a   :  { %3675 = vmatpush.bf16.msra.mxu1 %v6988_v5  ;;  %v3267_v5 = vperm.slane %v5850_v6, 1 }
 0xe8d   :  { %v2878_v13 = vpop.permute.xlu2 %2877 }
 0xe8e   :  { %2882 = vst.msk [vmem:[#allocation2 + $0x8] sm:$0xff] %vm359_vm9, %v2878_v13  ;;  %v7008_v13 = vld [vmem:[%s9159_s10 + $0x4b0] sm:$0xff] }
 0xe8f   :  { %3553 = vmatpush.bf16.msra.mxu2 %v7008_v13  ;;  %v7018_v13 = vld [vmem:[%s9158_s8 + $0x114] sm:$0xf] }
 0xe94   :  { %v2876_v4 = vpop.permute.xlu0 %2875 }
 0xe95   :  { %2881 = vst.msk [vmem:[#allocation2] sm:$0xff] %vm359_vm9, %v2876_v4  ;;  %v3014_v7 = vpop.permute.xlu2 %3013  ;;  %v6996_v4 = vld [vmem:[%s9159_s10 + $0x470] sm:$0xff] }
 0xe96   :  { %3018 = vst.msk [vmem:[#allocation2 + $0x8] sm:$0xff] %vm496_vm10, %v3014_v7 }
 0xe9c   :  { %v3012_v8 = vpop.permute.xlu0 %3011 }
 0xe9d   :  { %3017 = vst.msk [vmem:[#allocation2] sm:$0xff] %vm496_vm10, %v3012_v8 }
 0xeaf   :  { %v3150_v24 = vpop.permute.xlu2 %3149 }
 0xeb0   :  { %3154 = vst.msk [vmem:[#allocation2 + $0x8] sm:$0xff] %vm633_vm11, %v3150_v24 }
 0xeb7   :  { %v3156_v17 = vld [vmem:[#allocation2 + $0x8] sm:$0xff] }
 0xebf   :  { %v3148_v15 = vpop.permute.xlu0 %3147 }
 0xec0   :  { %3153 = vst.msk [vmem:[#allocation2] sm:$0xff] %vm633_vm11, %v3148_v15 }
 0xec7   :  { %v3155_v16 = vld [vmem:[#allocation2] sm:$0xff] }
 0xec8   :  { %v3157_v18 = vpack.c.bf16 %v3156_v17, %v3155_v16  ;;  %v7007_v16 = vld [vmem:[%s9159_s10 + $0x4a8] sm:$0xff] }
 0xec9   :  { %v6995_v17 = vld [vmem:[%s9159_s10 + $0x468] sm:$0xff]  ;;  %3554 = vmatpush.bf16.msra.mxu2 %v7007_v16 }
 0xeca   :  { %5843 = vmatmul.msk.bf16.vlgmr.msrb.gmra.mxu3 %vm79_vm0, %v3157_v18  ;;  %v7015_v18 = vld [vmem:[%s9159_s10 + $0x4e8] sm:$0xff] }
 0xecb   :  { %3687 = vmatpush.bf16.msrb.mxu3 %v6997_v3  ;;  %3567 = vmatpush.bf16.msra.mxu0 %v7015_v18 }
 0xecf   :  { %3688 = vmatpush.bf16.msrb.mxu3 %v6996_v4  ;;  %3568 = vmatpush.bf16.msra.mxu0 %v7014_v45  ;;  %v6093_v4 = vld [vmem:[%s9158_s8 + $0x150] sm:$0xf0]  ;;  %v7040_v45 = vld [vmem:[%s9158_s8 + $0x19c] sm:$0xf] }
 0xed0   :  { %v6096_v9 = vor.u32 %v7018_v13, %v6093_v4  ;;  %v7048_v13 = vld [vmem:[%s9159_s10 + $0x5b0] sm:$0xff] }
 0xed1   :  { %v7056_v4 = vld [vmem:[%s9159_s10 + $0x5f0] sm:$0xff] }
 0xed3   :  { %3689 = vmatpush.bf16.msrb.mxu3 %v6995_v17  ;;  %3569 = vmatpush.bf16.msra.mxu0 %v7013_v10 }
 0xed7   :  { %3570 = vmatpush.bf16.msra.mxu0 %v7012_v37 }
 0xedb   :  { %3571 = vmatpush.bf16.msra.mxu0 %v7011_v50 }
 0xedf   :  { %3572 = vmatpush.bf16.msra.mxu0 %v7010_v53  ;;  %v7037_v53 = vld [vmem:[%s9159_s10 + $0x578] sm:$0xff] }
 0xf4d   :  { %v3192_v20 = vpop.f32.mrf.mxu3 }
 0xf4e   :  { %v3193_v23 = vadd.f32 %v7205_v19, %v3192_v20 }
 0xf50   :  { %v3197_v25 = vadd.f32 %v3193_v23, %v8296_v40 }
 0xf52   :  { %v3199_v27 = vsel %vm79_vm0, %v3197_v25, 0.0 }
 0xf53   :  { %3200 = vadd.xlane.f32.xlu0 %v3199_v27  ;;  %v6994_v27 = vld [vmem:[%s9159_s10 + $0x460] sm:$0xff] }
 0xf54   :  { %3690 = vmatpush.bf16.msrb.mxu3 %v6994_v27 }
 0xf55   :  { %v3194_v28 = vpop.f32.mrf.mxu3 }
 0xf56   :  { %v3195_v29 = vadd.f32 %v7205_v19, %v3194_v28  ;;  %v6987_v19 = vld [vmem:[%s9159_s10 + $0x428] sm:$0xff] }
 0xf57   :  { %3676 = vmatpush.bf16.msra.mxu1 %v6987_v19 }
 0xf58   :  { %v3198_v62 = vadd.f32 %v3195_v29, %v8298_v41 }
 0xf5a   :  { %v3202_v51 = vsel %vm79_vm0, %v3198_v62, 0.0 }
 0xf5b   :  { %3203 = vadd.xlane.f32.xlu1 %v3202_v51 }
 0xfc6   :  { %v3201_v21 = vpop.xlane.xlu0 %3200 }
 0xfc7   :  { %v3205_v31 = vmul.f32 %v3201_v21, %v7574_v61 }
 0xfc9   :  { %v8459_v32 = vsub.f32 %v3197_v25, %v3205_v31  ;;  %v7006_v25 = vld [vmem:[%s9159_s10 + $0x4a0] sm:$0xff] }
 0xfca   :  { %3555 = vmatpush.bf16.msra.mxu2 %v7006_v25 }
 0xfcb   :  { %v3209_v34 = vmul.f32 %v8459_v32, %v8459_v32 }
 0xfcd   :  { %v3211_v40 = vsel %vm79_vm0, %v3209_v34, 0.0 }
 0xfce   :  { %v3204_v26 = vpop.xlane.xlu1 %3203  ;;  %3212 = vadd.xlane.f32.xlu2 %v3211_v40  ;;  %v7206_v40 = vld [vmem:[%s9156_s6 + $0x1] ss:$0 sm:$0xff] }
 0xfcf   :  { %v3206_v30 = vmul.f32 %v3204_v26, %v7574_v61 }
 0xfd1   :  { %v8465_v36 = vsub.f32 %v3198_v62, %v3206_v30 }
 0xfd3   :  { %v3210_v41 = vmul.f32 %v8465_v36, %v8465_v36 }
 0xfd5   :  { %v3214_v38 = vsel %vm79_vm0, %v3210_v41, 0.0 }
 0xfd6   :  { %3215 = vadd.xlane.f32.xlu0 %v3214_v38  ;;  %v7207_v38 = vld [vmem:[%s9157_s7 + $0x1] ss:$0 sm:$0xff] }
0x1041   :  { %v3213_v39 = vpop.xlane.xlu2 %3212 }
0x1042   :  { %v3217_v49 = vmul.f32 %v3213_v39, %v7574_v61  ;;  %v6986_v39 = vld [vmem:[%s9159_s10 + $0x420] sm:$0xff] }
0x1043   :  { %3677 = vmatpush.bf16.msra.mxu1 %v6986_v39  ;;  %v6220_v39 = vld [vmem:[%s9158_s8 + $0x1d8] sm:$0xf0] }
0x1044   :  { %v3219_v46 = vadd.f32 1e-05, %v3217_v49  ;;  %v7003_v49 = vld [vmem:[%s9159_s10 + $0x488] sm:$0xff]  ;;  %v6223_v37 = vor.u32 %v7040_v45, %v6220_v39  ;;  %v6331_v39 = vld [vmem:[%s9158_s8 + $0x160] sm:$0xf0] }
0x1046   :  { %7285 = vrsqrt.f32 %v3219_v46  ;;  %vm3227_vm2 = vweird.f32 %v3219_v46 }
0x1047   :  { %3678 = vmatpush.bf16.msra.mxu1 %v6985_v48 }
0x1049   :  { %v3216_v14 = vpop.xlane.xlu0 %3215 }
0x104a   :  { %v3218_v0 = vmul.f32 %v3216_v14, %v7574_v61  ;;  %v7020_v14 = vld [vmem:[%s9158_s8 + $0x194] sm:$0xf] }
0x104b   :  { %3679 = vmatpush.bf16.msra.mxu1 %v6984_v42  ;;  %v6104_v3 = vor.u32 %v7020_v14, %v6101_v2  ;;  %v7025_v14 = vld [vmem:[%s9159_s10 + $0x518] sm:$0xff] }
0x104c   :  { %v7286_v7 = vpop.eup %7285  ;;  %v3220_v8 = vadd.f32 1e-05, %v3218_v0  ;;  %v6092_v0 = vor.u32 %v7019_v12, %v6091_v35  ;;  %v7035_v35 = vld [vmem:[%s9159_s10 + $0x568] sm:$0xff]  ;;  %v7034_v12 = vld [vmem:[%s9159_s10 + $0x560] sm:$0xff]  ;;  %v7033_v2 = vld [vmem:[%s9159_s10 + $0x558] sm:$0xff] }
0x104d   :  { %v3222_v24 = vmul.f32 %v7286_v7, %v3219_v46  ;;  %vm3228_vm1 = vweird.f32 %v7286_v7  ;;  %v6990_v46 = vld [vmem:[%s9159_s10 + $0x440] sm:$0xff] }
0x104e   :  { %7287 = vrsqrt.f32 %v3220_v8  ;;  %vm3229_vm9 = vmor %vm3227_vm2, %vm3228_vm1  ;;  %vm3237_vm11 = vweird.f32 %v3220_v8 }
0x104f   :  { %v3223_v15 = vmul.f32 %v7286_v7, %v3222_v24  ;;  %3680 = vmatpush.bf16.msra.mxu1 %v6983_v52  ;;  %v7029_v52 = vld [vmem:[%s9159_s10 + $0x538] sm:$0xff] }
0x1051   :  { %v3224_v20 = vmul.f32 0.5, %v3223_v15 }
0x1053   :  { %v3225_v23 = vsub.f32 1.5, %v3224_v20  ;;  %3681 = vmatpush.bf16.msra.mxu1 %v6982_v22  ;;  %v3266_v20 = vperm.slane %v5850_v6, 0  ;;  %v7028_v22 = vld [vmem:[%s9159_s10 + $0x530] sm:$0xff] }
0x1054   :  { %v7288_v28 = vpop.eup %7287  ;;  %v7024_v6 = vld [vmem:[%s9159_s10 + $0x510] sm:$0xff] }
0x1055   :  { %v3226_v29 = vmul.f32 %v7286_v7, %v3225_v23  ;;  %v3232_v62 = vmul.f32 %v7288_v28, %v3220_v8  ;;  %vm3238_vm10 = vweird.f32 %v7288_v28 }
0x1056   :  { %vm3239_vm4 = vmor %vm3237_vm11, %vm3238_vm10 }
0x1057   :  { %v3233_v51 = vmul.f32 %v7288_v28, %v3232_v62  ;;  %v3230_v21 = vsel %vm3229_vm9, %v7286_v7, %v3226_v29  ;;  %v5905_v7 = vld [vmem:[%s9160_s9 + $0x12] sm:$0x3]  ;;  %v6218_v29 = vld [vmem:[%s9158_s8 + $0x198] sm:$0xf] }
0x1058   :  { %v3241_v26 = vmul.f32 %v3230_v21, %v8459_v32  ;;  %v7005_v32 = vld [vmem:[%s9159_s10 + $0x498] sm:$0xff]  ;;  %v3366_v24 = vperm.slane %v5905_v7, 0  ;;  %v3367_v27 = vperm.slane %v5905_v7, 1  ;;  %v7023_v7 = vld [vmem:[%s9159_s10 + $0x508] sm:$0xff] }
0x1059   :  { %v3234_v31 = vmul.f32 0.5, %v3233_v51  ;;  %3556 = vmatpush.bf16.msra.mxu2 %v7005_v32  ;;  %v7041_v62 = vld [vmem:[%s9158_s8 + $0x1d4] sm:$0xf0] }
0x105a   :  { %v3248_v43 = vmul.f32 %v7206_v40, %v3241_v26 }
0x105b   :  { %v3235_v34 = vsub.f32 1.5, %v3234_v31 }
0x105c   :  { %v3255_v11 = vadd.f32 %v7207_v38, %v3248_v43 }
0x105d   :  { %v3236_v30 = vmul.f32 %v7288_v28, %v3235_v34  ;;  %3557 = vmatpush.bf16.msra.mxu2 %v7004_v55 }
0x105f   :  { %v3240_v41 = vsel %vm3239_vm4, %v7288_v28, %v3236_v30  ;;  %v6219_v30 = vor.u32 %v7041_v62, %v6218_v29  ;;  %v7052_v29 = vld [vmem:[%s9159_s10 + $0x5d0] sm:$0xff]  ;;  %v6337_v62 = vld [vmem:[%s9158_s8 + $0x1a0] sm:$0xf] }
0x1060   :  { %v3242_v54 = vmul.f32 %v3240_v41, %v8465_v36  ;;  %v6993_v36 = vld [vmem:[%s9159_s10 + $0x458] sm:$0xff] }
0x1061   :  { %3691 = vmatpush.bf16.msrb.mxu3 %v6993_v36  ;;  %3558 = vmatpush.bf16.msra.mxu2 %v7003_v49 }
0x1062   :  { %v3249_v44 = vmul.f32 %v7206_v40, %v3242_v54  ;;  %v6210_v54 = vld [vmem:[%s9158_s8 + $0x118] sm:$0xf] }
0x1064   :  { %v8570_v63 = vadd.f32 %v7207_v38, %v3249_v44  ;;  %v7039_v44 = vld [vmem:[%s9158_s8 + $0x154] sm:$0xf0] }
0x1065   :  { %3692 = vmatpush.bf16.msrb.mxu3 %v6992_v47  ;;  %3559 = vmatpush.bf16.msra.mxu2 %v7002_v33  ;;  %v6211_v10 = vor.u32 %v7039_v44, %v6210_v54  ;;  %v7038_v33 = vld [vmem:[%s9158_s8 + $0x11c] sm:$0xf]  ;;  %v6329_v54 = vld [vmem:[%s9158_s8 + $0x120] sm:$0xf] }
0x1066   :  { %v8573_v60 = vpack.c.bf16 %v8570_v63, %v3255_v11  ;;  %v7059_v44 = vld [vmem:[%s9158_s8 + $0x15c] sm:$0xf0] }
0x1067   :  { %v6330_v45 = vor.u32 %v7059_v44, %v6329_v54  ;;  %v7075_v54 = vld [vmem:[%s9159_s10 + $0x668] sm:$0xff]  ;;  %v7065_v44 = vld [vmem:[%s9159_s10 + $0x618] sm:$0xff] }
0x1068   :  { %5867 = vmatmul.msk.bf16.vlgmr.msrb.gmra.mxu2 %vm79_vm0, %v8573_v60  ;;  %5868 = vmatmul.msk.bf16.vlgmr.msrb.gmra.mxu0 %vm79_vm0, %v8573_v60 }
0x1069   :  { %5922 = vmatmul.msk.bf16.vlgmr.msrb.gmra.mxu1 %vm79_vm0, %v8573_v60  ;;  %5923 = vmatmul.msk.bf16.vlgmr.msra.gmra.mxu3 %vm79_vm0, %v8573_v60 }
0x106a   :  { %3693 = vmatpush.bf16.msrb.mxu3 %v6991_v59  ;;  %3736 = vmatpush.bf16.msrb.mxu2 %v6100_v58  ;;  %v7026_v58 = vld [vmem:[%s9159_s10 + $0x520] sm:$0xff] }
0x106b   :  { %3750 = vmatpush.bf16.msrb.mxu0 %v6104_v3  ;;  %3892 = vmatpush.bf16.msrb.mxu1 %v7029_v52  ;;  %v7049_v3 = vld [vmem:[%s9159_s10 + $0x5b8] sm:$0xff] }
0x106e   :  { %3694 = vmatpush.bf16.msrb.mxu3 %v6990_v46  ;;  %3737 = vmatpush.bf16.msrb.mxu2 %v6092_v0  ;;  %v6212_v46 = vld [vmem:[%s9158_s8 + $0x158] sm:$0xf0] }
0x106f   :  { %3751 = vmatpush.bf16.msrb.mxu0 %v6096_v9  ;;  %v6215_v50 = vor.u32 %v7038_v33, %v6212_v46  ;;  %3893 = vmatpush.bf16.msrb.mxu1 %v7028_v22  ;;  %v7057_v0 = vld [vmem:[%s9159_s10 + $0x5f8] sm:$0xff]  ;;  %v7047_v9 = vld [vmem:[%s9159_s10 + $0x5a8] sm:$0xff] }
0x1070   :  { %v6458_v33 = vld [vmem:[%s9158_s8 + $0x1e8] sm:$0xf0]  ;;  %v6448_v46 = vld [vmem:[%s9158_s8 + $0x128] sm:$0xf] }
0x1071   :  { %v6450_v22 = vld [vmem:[%s9158_s8 + $0x168] sm:$0xf0] }
0x1072   :  { %3905 = vmatpush.bf16.msra.mxu3 %v7037_v53  ;;  %v7078_v53 = vld [vmem:[%s9158_s8 + $0x12c] sm:$0xf] }
0x1073   :  { %3894 = vmatpush.bf16.msrb.mxu1 %v7027_v57 }
0x1076   :  { %3906 = vmatpush.bf16.msra.mxu3 %v7036_v56 }
0x1077   :  { %3895 = vmatpush.bf16.msrb.mxu1 %v7026_v58  ;;  %v6453_v58 = vor.u32 %v7078_v53, %v6450_v22  ;;  %v7070_v22 = vld [vmem:[%s9159_s10 + $0x640] sm:$0xff] }
0x107a   :  { %3907 = vmatpush.bf16.msra.mxu3 %v7035_v35 }
0x107b   :  { %3896 = vmatpush.bf16.msrb.mxu1 %v7025_v14 }
0x107e   :  { %3908 = vmatpush.bf16.msra.mxu3 %v7034_v12 }
0x107f   :  { %3897 = vmatpush.bf16.msrb.mxu1 %v7024_v6 }
0x1082   :  { %3909 = vmatpush.bf16.msra.mxu3 %v7033_v2 }
0x1083   :  { %3898 = vmatpush.bf16.msrb.mxu1 %v7023_v7 }
0x10e5   :  { %v3316_v1 = vpop.f32.mrf.mxu0 }
0x10e6   :  { %v3399_v8 = vpop.f32.mrf.mxu1  ;;  %v3317_v16 = vadd.f32 %v3316_v1, %v3267_v5  ;;  %v7032_v1 = vld [vmem:[%s9159_s10 + $0x550] sm:$0xff] }
0x10e7   :  { %v3400_v18 = vadd.f32 %v3399_v8, %v3366_v24  ;;  %3910 = vmatpush.bf16.msra.mxu3 %v7032_v1  ;;  %v7031_v8 = vld [vmem:[%s9159_s10 + $0x548] sm:$0xff] }
0x10e8   :  { %v3322_v51 = vmax.f32 %v3317_v16, 0.0  ;;  %v7046_v16 = vld [vmem:[%s9159_s10 + $0x5a0] sm:$0xff] }
0x10e9   :  { %v3418_v31 = vmax.f32 %v3400_v18, 0.0  ;;  %v7045_v18 = vld [vmem:[%s9159_s10 + $0x598] sm:$0xff] }
0x10eb   :  { %v3302_v15 = vpop.f32.mrf.mxu2  ;;  %3911 = vmatpush.bf16.msra.mxu3 %v7031_v8 }
0x10ec   :  { %v3413_v17 = vpop.f32.mrf.mxu3  ;;  %v3303_v40 = vadd.f32 %v3302_v15, %v3266_v20  ;;  %v7030_v15 = vld [vmem:[%s9159_s10 + $0x540] sm:$0xff] }
0x10ed   :  { %v3318_v19 = vpop.f32.mrf.mxu0  ;;  %v3414_v41 = vadd.f32 %v3413_v17, %v3367_v27  ;;  %v7054_v17 = vld [vmem:[%s9159_s10 + $0x5e0] sm:$0xff] }
0x10ee   :  { %v3319_v23 = vadd.f32 %v3318_v19, %v3267_v5  ;;  %v3401_v25 = vpop.f32.mrf.mxu1  ;;  %v3321_v55 = vmax.f32 %v3303_v40, 0.0  ;;  %v7055_v5 = vld [vmem:[%s9159_s10 + $0x5e8] sm:$0xff]  ;;  %v7053_v19 = vld [vmem:[%s9159_s10 + $0x5d8] sm:$0xff] }
0x10ef   :  { %v3402_v28 = vadd.f32 %v3401_v25, %v3366_v24  ;;  %v3419_v48 = vmax.f32 %v3414_v41, 0.0  ;;  %v7022_v24 = vld [vmem:[%s9159_s10 + $0x500] sm:$0xff]  ;;  %3912 = vmatpush.bf16.msra.mxu3 %v7030_v15 }
0x10f0   :  { %v3324_v21 = vmax.f32 %v3319_v23, 0.0  ;;  %3899 = vmatpush.bf16.msrb.mxu1 %v7022_v24 }
0x10f1   :  { %v3420_v34 = vmax.f32 %v3402_v28, 0.0  ;;  %v7044_v28 = vld [vmem:[%s9159_s10 + $0x590] sm:$0xff] }
0x10f2   :  { %v3326_v26 = vpack.c.bf16 %v3324_v21, %v3322_v51  ;;  %v7061_v51 = vld [vmem:[%s9158_s8 + $0x1dc] sm:$0xf0]  ;;  %v7060_v21 = vld [vmem:[%s9158_s8 + $0x1a4] sm:$0xf] }
0x10f3   :  { %v3422_v38 = vpack.c.bf16 %v3420_v34, %v3418_v31  ;;  %v3304_v43 = vpop.f32.mrf.mxu2  ;;  %v7043_v31 = vld [vmem:[%s9159_s10 + $0x588] sm:$0xff]  ;;  %v6338_v40 = vor.u32 %v7061_v51, %v6337_v62 }
0x10f4   :  { %v3305_v11 = vadd.f32 %v3304_v43, %v3266_v20  ;;  %v3415_v32 = vpop.f32.mrf.mxu3  ;;  %3695 = vmatmul.bf16.vlgmr.msrb.gmra.mxu3 %v3326_v26  ;;  %v7051_v34 = vld [vmem:[%s9159_s10 + $0x5c8] sm:$0xff]  ;;  %v6339_v26 = vld [vmem:[%s9158_s8 + $0x1e0] sm:$0xf0] }
0x10f5   :  { %v3416_v36 = vadd.f32 %v3415_v32, %v3367_v27  ;;  %3560 = vmatmul.bf16.vlgmr.msra.gmra.mxu2 %v3422_v38  ;;  %v7042_v32 = vld [vmem:[%s9159_s10 + $0x580] sm:$0xff] }
0x10f6   :  { %v3323_v47 = vmax.f32 %v3305_v11, 0.0  ;;  %3955 = vmatpush.bf16.msra.mxu2 %v6219_v30  ;;  %v6342_v30 = vor.u32 %v7060_v21, %v6339_v26  ;;  %v7058_v11 = vld [vmem:[%s9158_s8 + $0x124] sm:$0xf]  ;;  %v7077_v26 = vld [vmem:[%s9159_s10 + $0x678] sm:$0xff] }
0x10f7   :  { %v3421_v49 = vmax.f32 %v3416_v36, 0.0  ;;  %v7050_v36 = vld [vmem:[%s9159_s10 + $0x5c0] sm:$0xff] }
0x10f8   :  { %v3325_v59 = vpack.c.bf16 %v3323_v47, %v3321_v55  ;;  %4188 = vmatpush.bf16.msrb.mxu3 %v6342_v30  ;;  %v6334_v55 = vor.u32 %v7058_v11, %v6331_v39  ;;  %v6088_v47 = vld [vmem:[%s9160_s9 + $0x14] sm:$0x3]  ;;  %v7067_v30 = vld [vmem:[%s9159_s10 + $0x628] sm:$0xff]  ;;  %v7097_v11 = vld [vmem:[%s9159_s10 + $0x6f8] sm:$0xff] }
0x10f9   :  { %v3423_v42 = vpack.c.bf16 %v3421_v49, %v3419_v48  ;;  %v6456_v49 = vld [vmem:[%s9158_s8 + $0x1a8] sm:$0xf]  ;;  %v3706_v56 = vperm.slane %v6088_v47, 0  ;;  %v3707_v57 = vperm.slane %v6088_v47, 1  ;;  %v7073_v39 = vld [vmem:[%s9159_s10 + $0x658] sm:$0xff] }
0x10fa   :  { %3682 = vmatmul.bf16.vlgmr.msra.gmra.mxu1 %v3325_v59  ;;  %3956 = vmatpush.bf16.msra.mxu2 %v6211_v10  ;;  %v7081_v59 = vld [vmem:[%s9158_s8 + $0x1e4] sm:$0xf0] }
0x10fb   :  { %3573 = vmatmul.bf16.vlgmr.msra.gmra.mxu0 %v3423_v42  ;;  %4174 = vmatpush.bf16.msra.mxu1 %v6338_v40  ;;  %v6457_v42 = vor.u32 %v7081_v59, %v6456_v49  ;;  %v7068_v40 = vld [vmem:[%s9159_s10 + $0x630] sm:$0xff]  ;;  %v7063_v47 = vld [vmem:[%s9159_s10 + $0x608] sm:$0xff] }
0x10fc   :  { %3969 = vmatpush.bf16.msra.mxu0 %v6223_v37  ;;  %4189 = vmatpush.bf16.msrb.mxu3 %v6334_v55  ;;  %v7080_v37 = vld [vmem:[%s9158_s8 + $0x1ac] sm:$0xf]  ;;  %v7089_v55 = vld [vmem:[%s9159_s10 + $0x6b8] sm:$0xff]  ;;  %v7072_v49 = vld [vmem:[%s9159_s10 + $0x650] sm:$0xff] }
0x10fd   :  { %v6461_v52 = vor.u32 %v7080_v37, %v6458_v33  ;;  %v7088_v59 = vld [vmem:[%s9159_s10 + $0x6b0] sm:$0xff]  ;;  %v7062_v37 = vld [vmem:[%s9159_s10 + $0x600] sm:$0xff]  ;;  %v7071_v33 = vld [vmem:[%s9159_s10 + $0x648] sm:$0xff] }
0x10ff   :  { %4175 = vmatpush.bf16.msra.mxu1 %v6330_v45  ;;  %v7096_v45 = vld [vmem:[%s9159_s10 + $0x6f0] sm:$0xff] }
0x1100   :  { %3970 = vmatpush.bf16.msra.mxu0 %v6215_v50  ;;  %v7079_v50 = vld [vmem:[%s9158_s8 + $0x164] sm:$0xf0] }
0x1101   :  { %v6449_v35 = vor.u32 %v7079_v50, %v6448_v46  ;;  %v7087_v46 = vld [vmem:[%s9159_s10 + $0x6a8] sm:$0xff] }
0x1105   :  { %6105 = vmatmul.msk.bf16.vlgmr.msrb.gmra.mxu2 %vm79_vm0, %v8573_v60 }
0x1106   :  { %4111 = vmatpush.bf16.msrb.mxu2 %v7049_v3 }
0x110a   :  { %4112 = vmatpush.bf16.msrb.mxu2 %v7048_v13 }
0x110b   :  { %6106 = vmatmul.msk.bf16.vlgmr.msrb.gmra.mxu0 %vm79_vm0, %v8573_v60 }
0x110c   :  { %4124 = vmatpush.bf16.msrb.mxu0 %v7057_v0 }
0x110e   :  { %4113 = vmatpush.bf16.msrb.mxu2 %v7047_v9 }
0x1110   :  { %4125 = vmatpush.bf16.msrb.mxu0 %v7056_v4 }
0x1112   :  { %4114 = vmatpush.bf16.msrb.mxu2 %v7046_v16 }
0x1114   :  { %4126 = vmatpush.bf16.msrb.mxu0 %v7055_v5  ;;  %v6207_v5 = vld [vmem:[%s9160_s9 + $0x16] sm:$0x3] }
0x1115   :  { %6224 = vmatmul.msk.bf16.vlgmr.msra.gmra.mxu2 %vm79_vm0, %v8573_v60  ;;  %v3925_v16 = vperm.slane %v6207_v5, 0 }
0x1116   :  { %4115 = vmatpush.bf16.msrb.mxu2 %v7045_v18 }
0x1118   :  { %4127 = vmatpush.bf16.msrb.mxu0 %v7054_v17  ;;  %v3926_v17 = vperm.slane %v6207_v5, 1  ;;  %v6577_v5 = vld [vmem:[%s9158_s8 + $0x1f0] sm:$0xf0] }
0x111a   :  { %4116 = vmatpush.bf16.msrb.mxu2 %v7044_v28 }
0x111b   :  { %6225 = vmatmul.msk.bf16.vlgmr.msra.gmra.mxu0 %vm79_vm0, %v8573_v60 }
0x111c   :  { %4128 = vmatpush.bf16.msrb.mxu0 %v7053_v19 }
0x111e   :  { %4117 = vmatpush.bf16.msrb.mxu2 %v7043_v31 }
0x1120   :  { %4129 = vmatpush.bf16.msrb.mxu0 %v7052_v29 }
0x1122   :  { %4118 = vmatpush.bf16.msrb.mxu2 %v7042_v32  ;;  %v7074_v32 = vld [vmem:[%s9159_s10 + $0x660] sm:$0xff] }
0x1124   :  { %4130 = vmatpush.bf16.msrb.mxu0 %v7051_v34  ;;  %v7069_v34 = vld [vmem:[%s9159_s10 + $0x638] sm:$0xff] }
0x1126   :  { %4393 = vmatpush.bf16.msra.mxu2 %v6457_v42  ;;  %v7094_v42 = vld [vmem:[%s9159_s10 + $0x6e0] sm:$0xff] }
0x1128   :  { %4131 = vmatpush.bf16.msrb.mxu0 %v7050_v36  ;;  %v7064_v36 = vld [vmem:[%s9159_s10 + $0x610] sm:$0xff] }
0x112a   :  { %4394 = vmatpush.bf16.msra.mxu2 %v6449_v35  ;;  %v7085_v35 = vld [vmem:[%s9159_s10 + $0x698] sm:$0xff] }
0x112c   :  { %4407 = vmatpush.bf16.msra.mxu0 %v6461_v52  ;;  %v7093_v52 = vld [vmem:[%s9159_s10 + $0x6d8] sm:$0xff] }
0x1130   :  { %4408 = vmatpush.bf16.msra.mxu0 %v6453_v58 }
0x1177   :  { %v3683_v20 = vpop.f32.mrf.mxu1  ;;  %v3696_v23 = vpop.f32.mrf.mxu3 }
0x1178   :  { %v3561_v25 = vpop.f32.mrf.mxu2  ;;  %v3574_v27 = vpop.f32.mrf.mxu0 }
0x117f   :  { %v3697_v50 = vpop.f32.mrf.mxu3 }
0x1180   :  { %v3562_v41 = vpop.f32.mrf.mxu2  ;;  %v3575_v38 = vpop.f32.mrf.mxu0 }
0x1181   :  { %v8801_v43 = vadd.f32 %v3575_v38, %v3562_v41  ;;  %v7076_v41 = vld [vmem:[%s9159_s10 + $0x670] sm:$0xff]  ;;  %v7066_v38 = vld [vmem:[%s9159_s10 + $0x620] sm:$0xff] }
0x1188   :  { %v3739_v10 = vpop.f32.mrf.mxu2  ;;  %v3753_v48 = vpop.f32.mrf.mxu0 }
0x1189   :  { %v3740_v12 = vadd.f32 %v3739_v10, %v3706_v56  ;;  %v3754_v14 = vadd.f32 %v3753_v48, %v3707_v57  ;;  %v7095_v10 = vld [vmem:[%s9159_s10 + $0x6e8] sm:$0xff]  ;;  %v3684_v48 = vpop.f32.mrf.mxu1 }
0x118b   :  { %v3758_v1 = vmax.f32 %v3740_v12, 0.0  ;;  %v3759_v13 = vmax.f32 %v3754_v14, 0.0  ;;  %v6575_v12 = vld [vmem:[%s9158_s8 + $0x1b0] sm:$0xf] }
0x118c   :  { %v7101_v14 = vld [vmem:[%s9158_s8 + $0x1ec] sm:$0xf0] }
0x1190   :  { %v3741_v2 = vpop.f32.mrf.mxu2  ;;  %v3755_v3 = vpop.f32.mrf.mxu0 }
0x1191   :  { %v3742_v0 = vadd.f32 %v3741_v2, %v3706_v56  ;;  %v3756_v6 = vadd.f32 %v3755_v3, %v3707_v57  ;;  %v7086_v56 = vld [vmem:[%s9159_s10 + $0x6a0] sm:$0xff]  ;;  %v7092_v57 = vld [vmem:[%s9159_s10 + $0x6d0] sm:$0xff]  ;;  %v7091_v2 = vld [vmem:[%s9159_s10 + $0x6c8] sm:$0xff]  ;;  %v6576_v3 = vor.u32 %v7101_v14, %v6575_v12 }
0x1193   :  { %v3760_v4 = vmax.f32 %v3742_v0, 0.0  ;;  %v3761_v7 = vmax.f32 %v3756_v6, 0.0  ;;  %v7084_v6 = vld [vmem:[%s9159_s10 + $0x690] sm:$0xff] }
0x1195   :  { %v3762_v8 = vpack.c.bf16 %v3760_v4, %v3758_v1  ;;  %v3763_v9 = vpack.c.bf16 %v3761_v7, %v3759_v13  ;;  %v6567_v1 = vld [vmem:[%s9158_s8 + $0x130] sm:$0xf]  ;;  %v3685_v4 = vadd.f32 %v3684_v48, %v8801_v43  ;;  %v7090_v7 = vld [vmem:[%s9159_s10 + $0x6c0] sm:$0xff]  ;;  %v7083_v43 = vld [vmem:[%s9159_s10 + $0x688] sm:$0xff] }
0x1196   :  { %v7099_v13 = vld [vmem:[%s9158_s8 + $0x16c] sm:$0xf0] }
0x1197   :  { %3900 = vmatmul.bf16.vlgmr.msrb.gmra.mxu1 %v3762_v8  ;;  %3913 = vmatmul.bf16.vlgmr.msra.gmra.mxu3 %v3763_v9  ;;  %v6568_v8 = vor.u32 %v7099_v13, %v6567_v1  ;;  %v7100_v9 = vld [vmem:[%s9158_s8 + $0x1b4] sm:$0xf] }
0x1198   :  { %v3958_v24 = vpop.f32.mrf.mxu2  ;;  %v3972_v15 = vpop.f32.mrf.mxu0  ;;  %4330 = vmatpush.bf16.msrb.mxu1 %v7069_v34  ;;  %4343 = vmatpush.bf16.msra.mxu3 %v7077_v26  ;;  %v7118_v34 = vld [vmem:[%s9158_s8 + $0x13c] sm:$0xf] }
0x1199   :  { %v3959_v18 = vadd.f32 %v3958_v24, %v3925_v16  ;;  %v3973_v19 = vadd.f32 %v3972_v15, %v3926_v17  ;;  %v6580_v24 = vor.u32 %v7100_v9, %v6577_v5 }
0x119b   :  { %v3977_v28 = vmax.f32 %v3959_v18, 0.0  ;;  %v3978_v29 = vmax.f32 %v3973_v19, 0.0  ;;  %v7098_v19 = vld [vmem:[%s9158_s8 + $0x134] sm:$0xf] }
0x119c   :  { %4331 = vmatpush.bf16.msrb.mxu1 %v7068_v40  ;;  %4344 = vmatpush.bf16.msra.mxu3 %v7076_v41  ;;  %v6694_v41 = vld [vmem:[%s9158_s8 + $0x1b8] sm:$0xf] }
0x11a0   :  { %v3960_v20 = vpop.f32.mrf.mxu2  ;;  %v3974_v23 = vpop.f32.mrf.mxu0  ;;  %4332 = vmatpush.bf16.msrb.mxu1 %v7067_v30  ;;  %4345 = vmatpush.bf16.msra.mxu3 %v7075_v54  ;;  %v6688_v30 = vld [vmem:[%s9158_s8 + $0x178] sm:$0xf0] }
0x11a1   :  { %v3961_v25 = vadd.f32 %v3960_v20, %v3925_v16  ;;  %v3975_v27 = vadd.f32 %v3974_v23, %v3926_v17  ;;  %v3698_v16 = vadd.f32 %v3697_v50, %v3685_v4  ;;  %v6569_v20 = vld [vmem:[%s9158_s8 + $0x170] sm:$0xf0]  ;;  %v6445_v50 = vld [vmem:[%s9160_s9 + $0x1a] sm:$0x3] }
0x11a3   :  { %v3979_v62 = vmax.f32 %v3961_v25, 0.0  ;;  %v3980_v51 = vmax.f32 %v3975_v27, 0.0  ;;  %v6326_v25 = vld [vmem:[%s9160_s9 + $0x18] sm:$0x3] }
0x11a4   :  { %4333 = vmatpush.bf16.msrb.mxu1 %v7066_v38  ;;  %4346 = vmatpush.bf16.msra.mxu3 %v7074_v32  ;;  %v7121_v38 = vld [vmem:[%s9158_s8 + $0x1f4] sm:$0xf0] }
0x11a5   :  { %v3981_v21 = vpack.c.bf16 %v3979_v62, %v3977_v28  ;;  %v3982_v31 = vpack.c.bf16 %v3980_v51, %v3978_v29  ;;  %v7082_v28 = vld [vmem:[%s9159_s10 + $0x680] sm:$0xff]  ;;  %v6572_v29 = vor.u32 %v7098_v19, %v6569_v20  ;;  %v4144_v62 = vperm.slane %v6326_v25, 0  ;;  %v7116_v19 = vld [vmem:[%s9159_s10 + $0x770] sm:$0xff]  ;;  %v7137_v20 = vld [vmem:[%s9159_s10 + $0x7f8] sm:$0xff] }
0x11a7   :  { %4119 = vmatmul.bf16.vlgmr.msrb.gmra.mxu2 %v3981_v21  ;;  %4132 = vmatmul.bf16.vlgmr.msrb.gmra.mxu0 %v3982_v31  ;;  %v7120_v21 = vld [vmem:[%s9158_s8 + $0x1bc] sm:$0xf] }
0x11a8   :  { %6343 = vmatmul.msk.bf16.vlgmr.msra.gmra.mxu1 %vm79_vm0, %v8573_v60  ;;  %6344 = vmatmul.msk.bf16.vlgmr.msrb.gmra.mxu3 %vm79_vm0, %v8573_v60  ;;  %v6696_v31 = vld [vmem:[%s9158_s8 + $0x1f8] sm:$0xf0] }
0x11a9   :  { %4334 = vmatpush.bf16.msrb.mxu1 %v7065_v44  ;;  %4562 = vmatpush.bf16.msrb.mxu0 %v7097_v11  ;;  %v6699_v26 = vor.u32 %v7120_v21, %v6696_v31  ;;  %v6695_v11 = vor.u32 %v7121_v38, %v6694_v41  ;;  %v7113_v21 = vld [vmem:[%s9159_s10 + $0x758] sm:$0xff]  ;;  %v7111_v38 = vld [vmem:[%s9159_s10 + $0x748] sm:$0xff] }
0x11aa   :  { %4347 = vmatpush.bf16.msra.mxu3 %v7073_v39  ;;  %4549 = vmatpush.bf16.msrb.mxu2 %v7089_v55  ;;  %v7129_v31 = vld [vmem:[%s9159_s10 + $0x7b8] sm:$0xff] }
0x11ad   :  { %4335 = vmatpush.bf16.msrb.mxu1 %v7064_v36  ;;  %4563 = vmatpush.bf16.msrb.mxu0 %v7096_v45  ;;  %v6691_v36 = vor.u32 %v7118_v34, %v6688_v30  ;;  %v4145_v45 = vperm.slane %v6326_v25, 1  ;;  %v7115_v25 = vld [vmem:[%s9159_s10 + $0x768] sm:$0xff]  ;;  %v7134_v34 = vld [vmem:[%s9159_s10 + $0x7e0] sm:$0xff]  ;;  %v7133_v30 = vld [vmem:[%s9159_s10 + $0x7d8] sm:$0xff] }
0x11ae   :  { %4348 = vmatpush.bf16.msra.mxu3 %v7072_v49  ;;  %4550 = vmatpush.bf16.msrb.mxu2 %v7088_v59 }
0x11b1   :  { %4336 = vmatpush.bf16.msrb.mxu1 %v7063_v47  ;;  %4564 = vmatpush.bf16.msrb.mxu0 %v7095_v10 }
0x11b2   :  { %4349 = vmatpush.bf16.msra.mxu3 %v7071_v33  ;;  %4551 = vmatpush.bf16.msrb.mxu2 %v7087_v46  ;;  %v7119_v33 = vld [vmem:[%s9158_s8 + $0x174] sm:$0xf0] }
0x11b5   :  { %4337 = vmatpush.bf16.msrb.mxu1 %v7062_v37  ;;  %4565 = vmatpush.bf16.msrb.mxu0 %v7094_v42  ;;  %v6686_v42 = vld [vmem:[%s9158_s8 + $0x138] sm:$0xf] }
0x11b6   :  { %4350 = vmatpush.bf16.msra.mxu3 %v7070_v22  ;;  %4552 = vmatpush.bf16.msrb.mxu2 %v7086_v56 }
0x11b7   :  { %6462 = vmatmul.msk.bf16.vlgmr.msra.gmra.mxu2 %vm79_vm0, %v8573_v60  ;;  %6463 = vmatmul.msk.bf16.vlgmr.msra.gmra.mxu0 %vm79_vm0, %v8573_v60 }
0x11b9   :  { %4566 = vmatpush.bf16.msrb.mxu0 %v7093_v52  ;;  %4612 = vmatpush.bf16.msra.mxu1 %v6576_v3  ;;  %v4363_v3 = vperm.slane %v6445_v50, 0 }
0x11ba   :  { %4553 = vmatpush.bf16.msrb.mxu2 %v7085_v35  ;;  %4626 = vmatpush.bf16.msrb.mxu3 %v6580_v24  ;;  %v4364_v35 = vperm.slane %v6445_v50, 1  ;;  %v7109_v24 = vld [vmem:[%s9159_s10 + $0x738] sm:$0xff]  ;;  %v7122_v50 = vld [vmem:[%s9159_s10 + $0x780] sm:$0xff] }
0x11bd   :  { %4567 = vmatpush.bf16.msrb.mxu0 %v7092_v57  ;;  %4613 = vmatpush.bf16.msra.mxu1 %v6568_v8 }
0x11be   :  { %4554 = vmatpush.bf16.msrb.mxu2 %v7084_v6  ;;  %4627 = vmatpush.bf16.msrb.mxu3 %v6572_v29  ;;  %v7114_v29 = vld [vmem:[%s9159_s10 + $0x760] sm:$0xff] }
0x11c1   :  { %4568 = vmatpush.bf16.msrb.mxu0 %v7091_v2 }
0x11c2   :  { %4555 = vmatpush.bf16.msrb.mxu2 %v7083_v43 }
0x11c5   :  { %4569 = vmatpush.bf16.msrb.mxu0 %v7090_v7 }
0x11c6   :  { %4556 = vmatpush.bf16.msrb.mxu2 %v7082_v28  ;;  %v7103_v28 = vld [vmem:[%s9159_s10 + $0x708] sm:$0xff] }
0x11c9   :  { %4845 = vmatpush.bf16.msra.mxu0 %v6699_v26  ;;  %v7128_v26 = vld [vmem:[%s9159_s10 + $0x7b0] sm:$0xff] }
0x11ca   :  { %4831 = vmatpush.bf16.msra.mxu2 %v6695_v11  ;;  %v7110_v11 = vld [vmem:[%s9159_s10 + $0x740] sm:$0xff] }
0x11cd   :  { %4846 = vmatpush.bf16.msra.mxu0 %v6691_v36  ;;  %v7131_v36 = vld [vmem:[%s9159_s10 + $0x7c8] sm:$0xff] }
0x1214   :  { %v3901_v53 = vpop.f32.mrf.mxu1 }
0x1215   :  { %v6687_v53 = vor.u32 %v7119_v33, %v6686_v42 }
0x1217   :  { %4832 = vmatpush.bf16.msra.mxu2 %v6687_v53 }
0x121a   :  { %v3914_v58 = vpop.f32.mrf.mxu3 }
0x121c   :  { %v3902_v0 = vpop.f32.mrf.mxu1 }
0x1222   :  { %v3915_v15 = vpop.f32.mrf.mxu3 }
0x1223   :  { %v3916_v17 = vadd.f32 %v3915_v15, %v3902_v0  ;;  %v7108_v15 = vld [vmem:[%s9159_s10 + $0x730] sm:$0xff] }
0x1224   :  { %v4133_v18 = vpop.f32.mrf.mxu0 }
0x1225   :  { %v3918_v23 = vadd.f32 %v3916_v17, %v3698_v16  ;;  %v4177_v27 = vpop.f32.mrf.mxu1  ;;  %v7107_v16 = vld [vmem:[%s9159_s10 + $0x728] sm:$0xff]  ;;  %v7106_v17 = vld [vmem:[%s9159_s10 + $0x720] sm:$0xff]  ;;  %v7105_v18 = vld [vmem:[%s9159_s10 + $0x718] sm:$0xff] }
0x1226   :  { %v4178_v54 = vadd.f32 %v4177_v27, %v4144_v62  ;;  %v7136_v27 = vld [vmem:[%s9159_s10 + $0x7f0] sm:$0xff] }
0x1228   :  { %v4196_v55 = vmax.f32 %v4178_v54, 0.0  ;;  %v7127_v54 = vld [vmem:[%s9159_s10 + $0x7a8] sm:$0xff] }
0x122a   :  { %v4120_v51 = vpop.f32.mrf.mxu2 }
0x122b   :  { %v4191_v40 = vpop.f32.mrf.mxu3  ;;  %v7102_v51 = vld [vmem:[%s9159_s10 + $0x700] sm:$0xff] }
0x122c   :  { %v4134_v44 = vpop.f32.mrf.mxu0  ;;  %v4192_v10 = vadd.f32 %v4191_v40, %v4145_v45  ;;  %v7112_v40 = vld [vmem:[%s9159_s10 + $0x750] sm:$0xff] }
0x122d   :  { %v4179_v32 = vpop.f32.mrf.mxu1 }
0x122e   :  { %v4180_v39 = vadd.f32 %v4179_v32, %v4144_v62  ;;  %v4197_v56 = vmax.f32 %v4192_v10, 0.0  ;;  %v7135_v62 = vld [vmem:[%s9159_s10 + $0x7e8] sm:$0xff]  ;;  %v7126_v32 = vld [vmem:[%s9159_s10 + $0x7a0] sm:$0xff]  ;;  %v7124_v10 = vld [vmem:[%s9159_s10 + $0x790] sm:$0xff] }
0x1230   :  { %v4198_v47 = vmax.f32 %v4180_v39, 0.0  ;;  %v7125_v39 = vld [vmem:[%s9159_s10 + $0x798] sm:$0xff] }
0x1232   :  { %v4200_v48 = vpack.c.bf16 %v4198_v47, %v4196_v55  ;;  %v4121_v49 = vpop.f32.mrf.mxu2  ;;  %v7130_v55 = vld [vmem:[%s9159_s10 + $0x7c0] sm:$0xff] }
0x1233   :  { %v4135_v59 = vadd.f32 %v4134_v44, %v4121_v49  ;;  %v4193_v37 = vpop.f32.mrf.mxu3  ;;  %v7132_v44 = vld [vmem:[%s9159_s10 + $0x7d0] sm:$0xff]  ;;  %v6564_v49 = vld [vmem:[%s9160_s9 + $0x1c] sm:$0x3] }
0x1234   :  { %v4194_v46 = vadd.f32 %v4193_v37, %v4145_v45  ;;  %4338 = vmatmul.bf16.vlgmr.msrb.gmra.mxu1 %v4200_v48  ;;  %v4410_v52 = vpop.f32.mrf.mxu0  ;;  %v7123_v37 = vld [vmem:[%s9159_s10 + $0x788] sm:$0xff]  ;;  %v4582_v42 = vperm.slane %v6564_v49, 0 }
0x1235   :  { %v9010_v22 = vadd.f32 %v4135_v59, %v3918_v23  ;;  %v4411_v14 = vadd.f32 %v4410_v52, %v4364_v35  ;;  %4768 = vmatpush.bf16.msrb.mxu1 %v7109_v24  ;;  %v7104_v23 = vld [vmem:[%s9159_s10 + $0x710] sm:$0xff] }
0x1236   :  { %v4199_v57 = vmax.f32 %v4194_v46, 0.0 }
0x1237   :  { %v4416_v6 = vmax.f32 %v4411_v14, 0.0 }
0x1238   :  { %v4201_v58 = vpack.c.bf16 %v4199_v57, %v4197_v56 }
0x1239   :  { %4769 = vmatpush.bf16.msrb.mxu1 %v7108_v15 }
0x123a   :  { %4351 = vmatmul.bf16.vlgmr.msra.gmra.mxu3 %v4201_v58  ;;  %v4396_v12 = vpop.f32.mrf.mxu2 }
0x123b   :  { %v4397_v13 = vadd.f32 %v4396_v12, %v4363_v3 }
0x123c   :  { %v4412_v2 = vpop.f32.mrf.mxu0 }
0x123d   :  { %v4413_v0 = vadd.f32 %v4412_v2, %v4364_v35  ;;  %v4415_v9 = vmax.f32 %v4397_v13, 0.0  ;;  %4770 = vmatpush.bf16.msrb.mxu1 %v7107_v16 }
0x123f   :  { %v4418_v1 = vmax.f32 %v4413_v0, 0.0  ;;  %v4583_v0 = vperm.slane %v6564_v49, 1 }
0x1241   :  { %v4420_v4 = vpack.c.bf16 %v4418_v1, %v4416_v6  ;;  %4771 = vmatpush.bf16.msrb.mxu1 %v7106_v17  ;;  %v6683_v6 = vld [vmem:[%s9160_s9 + $0x1e] sm:$0x3] }
0x1242   :  { %v4398_v7 = vpop.f32.mrf.mxu2  ;;  %v4802_v13 = vperm.slane %v6683_v6, 1 }
0x1243   :  { %v4399_v8 = vadd.f32 %v4398_v7, %v4363_v3  ;;  %4570 = vmatmul.bf16.vlgmr.msrb.gmra.mxu0 %v4420_v4 }
0x1244   :  { %6581 = vmatmul.msk.bf16.vlgmr.msra.gmra.mxu1 %vm79_vm0, %v8573_v60  ;;  %5000 = vmatpush.bf16.msrb.mxu0 %v7137_v20 }
0x1245   :  { %v4417_v5 = vmax.f32 %v4399_v8, 0.0  ;;  %4772 = vmatpush.bf16.msrb.mxu1 %v7105_v18 }
0x1247   :  { %v4419_v43 = vpack.c.bf16 %v4417_v5, %v4415_v9 }
0x1248   :  { %5001 = vmatpush.bf16.msrb.mxu0 %v7136_v27 }
0x1249   :  { %4557 = vmatmul.bf16.vlgmr.msrb.gmra.mxu2 %v4419_v43  ;;  %4773 = vmatpush.bf16.msrb.mxu1 %v7104_v23 }
0x124a   :  { %6582 = vmatmul.msk.bf16.vlgmr.msrb.gmra.mxu3 %vm79_vm0, %v8573_v60  ;;  %4987 = vmatpush.bf16.msrb.mxu2 %v7129_v31 }
0x124c   :  { %5002 = vmatpush.bf16.msrb.mxu0 %v7135_v62 }
0x124d   :  { %4774 = vmatpush.bf16.msrb.mxu1 %v7103_v28 }
0x124e   :  { %4988 = vmatpush.bf16.msrb.mxu2 %v7128_v26 }
0x1250   :  { %5003 = vmatpush.bf16.msrb.mxu0 %v7134_v34 }
0x1251   :  { %4775 = vmatpush.bf16.msrb.mxu1 %v7102_v51 }
0x1252   :  { %4989 = vmatpush.bf16.msrb.mxu2 %v7127_v54 }
0x1253   :  { %6701 = vmatmul.msk.bf16.vlgmr.msra.gmra.mxu0 %vm79_vm0, %v8573_v60 }
0x1254   :  { %5004 = vmatpush.bf16.msrb.mxu0 %v7133_v30 }
0x1256   :  { %4990 = vmatpush.bf16.msrb.mxu2 %v7126_v32 }
0x1258   :  { %5005 = vmatpush.bf16.msrb.mxu0 %v7132_v44 }
0x1259   :  { %6700 = vmatmul.msk.bf16.vlgmr.msra.gmra.mxu2 %vm79_vm0, %v8573_v60  ;;  %v7117_v60 = vld [vmem:[%s9159_s10 + $0x778] sm:$0xff] }
0x125a   :  { %4781 = vmatpush.bf16.msra.mxu3 %v7117_v60  ;;  %4991 = vmatpush.bf16.msrb.mxu2 %v7125_v39 }
0x125c   :  { %5006 = vmatpush.bf16.msrb.mxu0 %v7131_v36  ;;  %v7208_v36 = vld [vmem:[%s9161_s11 + $0x1] ss:$0 sm:$0xff] }
0x125e   :  { %4782 = vmatpush.bf16.msra.mxu3 %v7116_v19  ;;  %4992 = vmatpush.bf16.msrb.mxu2 %v7124_v10 }
0x1260   :  { %5007 = vmatpush.bf16.msrb.mxu0 %v7130_v55 }
0x1262   :  { %4783 = vmatpush.bf16.msra.mxu3 %v7115_v25  ;;  %4993 = vmatpush.bf16.msrb.mxu2 %v7123_v37  ;;  %v4801_v25 = vperm.slane %v6683_v6, 0 }
0x1266   :  { %4784 = vmatpush.bf16.msra.mxu3 %v7114_v29  ;;  %4994 = vmatpush.bf16.msrb.mxu2 %v7122_v50 }
0x126a   :  { %4785 = vmatpush.bf16.msra.mxu3 %v7113_v21 }
0x126e   :  { %4786 = vmatpush.bf16.msra.mxu3 %v7112_v40 }
0x1272   :  { %4787 = vmatpush.bf16.msra.mxu3 %v7111_v38 }
0x1276   :  { %4788 = vmatpush.bf16.msra.mxu3 %v7110_v11 }
0x12b1   :  { %v4339_v41 = vpop.f32.mrf.mxu1 }
0x12b9   :  { %v4340_v45 = vpop.f32.mrf.mxu1 }
0x12bd   :  { %v4352_v47 = vpop.f32.mrf.mxu3 }
0x12c0   :  { %v4571_v48 = vpop.f32.mrf.mxu0 }
0x12c1   :  { %v4615_v59 = vpop.f32.mrf.mxu1 }
0x12c2   :  { %v4616_v52 = vadd.f32 %v4615_v59, %v4582_v42 }
0x12c4   :  { %v4634_v58 = vmax.f32 %v4616_v52, 0.0 }
0x12c5   :  { %v4353_v33 = vpop.f32.mrf.mxu3 }
0x12c6   :  { %v4354_v46 = vadd.f32 %v4353_v33, %v4340_v45 }
0x12c8   :  { %v4356_v53 = vadd.f32 %v4354_v46, %v9010_v22  ;;  %v4572_v56 = vpop.f32.mrf.mxu0 }
0x12c9   :  { %v4617_v57 = vpop.f32.mrf.mxu1 }
0x12ca   :  { %v4618_v35 = vadd.f32 %v4617_v57, %v4582_v42  ;;  %v7139_v42 = vld [vmem:[%s9164_s14 + $0x8] sm:$0xff] }
0x12cb   :  { %5082 = vmatpush.bf16.msra.mxu1 %v7139_v42 }
0x12cc   :  { %v4636_v12 = vmax.f32 %v4618_v35, 0.0  ;;  %v4558_v14 = vpop.f32.mrf.mxu2 }
0x12cd   :  { %v4629_v2 = vpop.f32.mrf.mxu3 }
0x12ce   :  { %v4638_v3 = vpack.c.bf16 %v4636_v12, %v4634_v58  ;;  %v4630_v4 = vadd.f32 %v4629_v2, %v4583_v0  ;;  %v7209_v12 = vld [vmem:[%s9162_s12 + $0x1] ss:$0 sm:$0xff] }
0x12d0   :  { %4776 = vmatmul.bf16.vlgmr.msrb.gmra.mxu1 %v4638_v3  ;;  %v4848_v1 = vpop.f32.mrf.mxu0  ;;  %v4635_v24 = vmax.f32 %v4630_v4, 0.0 }
0x12d1   :  { %v4849_v5 = vadd.f32 %v4848_v1, %v4802_v13  ;;  %v5060_v1 = vld [vmem:[%s9165_s15] sm:$0x1] }
0x12d3   :  { %v4854_v18 = vmax.f32 %v4849_v5, 0.0 }
0x12d4   :  { %v4559_v7 = vpop.f32.mrf.mxu2 }
0x12d5   :  { %v4573_v22 = vadd.f32 %v4572_v56, %v4559_v7  ;;  %v4631_v8 = vpop.f32.mrf.mxu3 }
0x12d6   :  { %v4632_v9 = vadd.f32 %v4631_v8, %v4583_v0 }
0x12d7   :  { %v4575_v43 = vadd.f32 %v4573_v22, %v4356_v53 }
0x12d8   :  { %v4637_v15 = vmax.f32 %v4632_v9, 0.0  ;;  %v4850_v16 = vpop.f32.mrf.mxu0 }
0x12d9   :  { %v4851_v17 = vadd.f32 %v4850_v16, %v4802_v13 }
0x12da   :  { %v4639_v60 = vpack.c.bf16 %v4637_v15, %v4635_v24 }
0x12db   :  { %v4856_v19 = vmax.f32 %v4851_v17, 0.0 }
0x12dc   :  { %4789 = vmatmul.bf16.vlgmr.msra.gmra.mxu3 %v4639_v60  ;;  %v4834_v20 = vpop.f32.mrf.mxu2 }
0x12dd   :  { %v4858_v23 = vpack.c.bf16 %v4856_v19, %v4854_v18  ;;  %v4835_v27 = vadd.f32 %v4834_v20, %v4801_v25 }
0x12df   :  { %5008 = vmatmul.bf16.vlgmr.msrb.gmra.mxu0 %v4858_v23  ;;  %v4853_v62 = vmax.f32 %v4835_v27, 0.0 }
0x12e4   :  { %v4836_v28 = vpop.f32.mrf.mxu2 }
0x12e5   :  { %v4837_v29 = vadd.f32 %v4836_v28, %v4801_v25 }
0x12e7   :  { %v4855_v51 = vmax.f32 %v4837_v29, 0.0 }
0x12e9   :  { %v4857_v21 = vpack.c.bf16 %v4855_v51, %v4853_v62 }
0x12eb   :  { %4995 = vmatmul.bf16.vlgmr.msrb.gmra.mxu2 %v4857_v21 }
0x134d   :  { %v4777_v31 = vpop.f32.mrf.mxu1 }
0x1355   :  { %v4778_v41 = vpop.f32.mrf.mxu1 }
0x135c   :  { %v5009_v34 = vpop.f32.mrf.mxu0 }
0x135f   :  { %v4790_v40 = vpop.f32.mrf.mxu3 }
0x1364   :  { %v5010_v54 = vpop.f32.mrf.mxu0 }
0x1367   :  { %v4791_v30 = vpop.f32.mrf.mxu3 }
0x1368   :  { %v4792_v38 = vadd.f32 %v4791_v30, %v4778_v41 }
0x136a   :  { %v4794_v11 = vadd.f32 %v4792_v38, %v4575_v43 }
0x136e   :  { %v4996_v26 = vpop.f32.mrf.mxu2 }
0x1376   :  { %v4997_v44 = vpop.f32.mrf.mxu2 }
0x1377   :  { %v5011_v32 = vadd.f32 %v5010_v54, %v4997_v44 }
0x1379   :  { %v5013_v45 = vadd.f32 %v5011_v32, %v4794_v11 }
0x137b   :  { %v5019_v39 = vadd.f32 %v7208_v36, %v5013_v45 }
0x137d   :  { %v5020_v55 = vadd.f32 %v5019_v39, %v8570_v63  ;;  %v7138_v63 = vld [vmem:[%s9164_s14] sm:$0xff] }
0x137e   :  { %5083 = vmatpush.bf16.msra.mxu1 %v7138_v63 }
0x137f   :  { %v5021_v47 = vsel %vm79_vm0, %v5020_v55, 0.0 }
0x1380   :  { %5022 = vadd.xlane.f32.xlu1 %v5021_v47 }
0x13f3   :  { %v5023_v10 = vpop.xlane.xlu1 %5022 }
0x13f4   :  { %v5024_v48 = vmul.f32 %v5023_v10, %v7574_v61 }
0x13f6   :  { %v5025_v49 = vsub.f32 %v5020_v55, %v5024_v48 }
0x13f8   :  { %v5026_v59 = vmul.f32 %v5025_v49, %v5025_v49 }
0x13fa   :  { %v5027_v37 = vsel %vm79_vm0, %v5026_v59, 0.0 }
0x13fb   :  { %5028 = vadd.xlane.f32.xlu2 %v5027_v37 }
0x146e   :  { %v5029_v33 = vpop.xlane.xlu2 %5028 }
0x146f   :  { %v5030_v46 = vmul.f32 %v5029_v33, %v7574_v61  ;;  %v7210_v61 = vld [vmem:[%s9163_s13 + $0x1] ss:$0 sm:$0xff] }
0x1471   :  { %v5031_v50 = vadd.f32 1e-05, %v5030_v46 }
0x1473   :  { %7289 = vrsqrt.f32 %v5031_v50  ;;  %vm5038_vm6 = vweird.f32 %v5031_v50 }
0x1479   :  { %v7290_v52 = vpop.eup %7289 }
0x147a   :  { %v5033_v53 = vmul.f32 %v7290_v52, %v5031_v50  ;;  %vm5039_vm5 = vweird.f32 %v7290_v52 }
0x147b   :  { %vm5040_vm7 = vmor %vm5038_vm6, %vm5039_vm5 }
0x147c   :  { %v5034_v56 = vmul.f32 %v7290_v52, %v5033_v53 }
0x147e   :  { %v5035_v57 = vmul.f32 0.5, %v5034_v56 }
0x1480   :  { %v5036_v35 = vsub.f32 1.5, %v5035_v57 }
0x1482   :  { %v5037_v58 = vmul.f32 %v7290_v52, %v5036_v35 }
0x1484   :  { %v5041_v14 = vsel %vm5040_vm7, %v7290_v52, %v5037_v58 }
0x1485   :  { %v5042_v2 = vmul.f32 %v5041_v14, %v5025_v49 }
0x1487   :  { %v5048_v3 = vmul.f32 %v7209_v12, %v5042_v2 }
0x1489   :  { %v5054_v0 = vadd.f32 %v7210_v61, %v5048_v3 }
0x148b   :  { %v5055_v6 = vpack.c.bf16 %v5054_v0, %v5054_v0 }
0x148d   :  { %6809 = vmatmul.msk.bf16.vlgmr.msra.gmra.mxu1 %vm79_vm0, %v5055_v6 }
0x150a   :  { %v5085_v13 = vpop.f32.mrf.mxu1 }
0x150b   :  { %v5086_v4 = vadd.f32 %v5085_v13, %v5060_v1 }
0x150d   :  { %5089 = vst [vmem:[%s9166_s16] sm:$0x1] %v5086_v4 }
0x1512   :  { %v5087_v7 = vpop.f32.mrf.mxu1 }

</bundles_post_ra>
